<compile_context>
chip_gen: v6e
topology: v6e:2x2x1
jax: 0.10.0
libtpu: 0.0.40
codegen_flags: <defaults>
</compile_context>

<pallas_src>
import functools

import jax
import jax.numpy as jnp
import numpy as np
from jax.experimental import pallas as pl
from jax.experimental.pallas import tpu as pltpu


def _triplet_kernel(lhs_ref, rhs_ref, sqr_ref, sqc_ref, lblr_ref, lblc_ref,
                    loss_ref, corr_ref, maxp_ref, minn_ref,
                    *, margin, n_valid, col_tile, mask_cols):
    j = pl.program_id(1)

    # Init running accumulators at the start of each row tile's column reduction.
    @pl.when(j == 0)
    def _():
        maxp_ref[...] = jnp.full_like(maxp_ref, -jnp.inf)
        minn_ref[...] = jnp.full_like(minn_ref, jnp.inf)

    # Gram block on the MXU: native (TM, D) x (D, TN) layout, f32 accumulation.
    gram = jax.lax.dot_general(
        lhs_ref[...], rhs_ref[...],
        (((1,), (0,)), ((), ())),
        preferred_element_type=jnp.float32)                       # (TM, TN)

    # Squared euclidean distances; the sqrt is deferred to the finalize step
    # (monotone, so max/min selection and the correct-flag are unchanged).
    d2 = sqr_ref[...] + sqc_ref[...] - 2.0 * gram                 # (TM, TN)

    sim = lblr_ref[...] == lblc_ref[...]                          # (TM, TN) bool

    if mask_cols:
        # Exclude padded columns (global column index >= n_valid).
        col_ids = j * col_tile + jax.lax.broadcasted_iota(jnp.int32, d2.shape, 1)
        valid = col_ids < n_valid
        pos_mask = jnp.logical_and(sim, valid)
        neg_mask = jnp.logical_and(jnp.logical_not(sim), valid)
    else:
        pos_mask = sim
        neg_mask = jnp.logical_not(sim)

    pos = jnp.where(pos_mask, d2, -jnp.inf)
    neg = jnp.where(neg_mask, d2, jnp.inf)

    maxp_ref[...] = jnp.maximum(maxp_ref[...], jnp.max(pos, axis=1, keepdims=True))
    minn_ref[...] = jnp.minimum(minn_ref[...], jnp.min(neg, axis=1, keepdims=True))

    # Finalize: sqrt only the (TM, 1) hard values; write lane-dense (1, TM) rows.
    @pl.when(j == pl.num_programs(1) - 1)
    def _():
        hard_p = jnp.sqrt(jnp.maximum(maxp_ref[...], 1e-12))      # (TM, 1)
        hard_n = jnp.sqrt(jnp.maximum(minn_ref[...], 1e-12))      # (TM, 1); +inf if no negative
        loss_ref[...] = jnp.maximum(hard_p - hard_n + margin, 0.0).T
        corr_ref[...] = (hard_n > hard_p).astype(jnp.float32).T


def _default_row_tile():
    # 256 fills the 256-wide MXU on v6e/v7x; 128 matches v5e (and older) and its
    # smaller default scoped-VMEM budget.
    try:
        kind = jax.devices()[0].device_kind.lower()
    except Exception:
        return 128
    if any(tag in kind for tag in ("v2", "v3", "v4", "v5")):
        return 128
    return 256


def triplet_loss(emb, label, *, margin=0.3, normalize_feature=False,
                 row_tile=None, col_tile=512, matmul_dtype=jnp.bfloat16):
    """JAX/Pallas equivalent of TripletLoss(margin, normalize_feature).forward(emb, label).

    row_tile should be a multiple of 8 (128/256 recommended); col_tile a multiple of 128.
    """
    emb = jnp.asarray(emb).astype(jnp.float32)
    label = jnp.asarray(label).astype(jnp.int32)
    N, D = emb.shape

    tm = _default_row_tile() if row_tile is None else int(row_tile)
    tn = int(col_tile)

    if normalize_feature:
        # F.normalize: x / max(||x||_2, 1e-12), hoisted out of the kernel (stationary work).
        nrm = jnp.sqrt(jnp.sum(emb * emb, axis=1, keepdims=True))
        emb = emb / jnp.maximum(nrm, 1e-12)

    # Squared norms computed once in the wrapper (not once per grid step).
    sq = jnp.sum(emb * emb, axis=1)

    n_row_tiles = pl.cdiv(N, tm)
    n_col_tiles = pl.cdiv(N, tn)
    np_rows = n_row_tiles * tm
    nc_cols = n_col_tiles * tn

    # Pre-cast to the matmul dtype and lay the stationary operand out MXU-native (D, Nc).
    emb_mm = emb.astype(matmul_dtype)
    lhs = jnp.pad(emb_mm, ((0, np_rows - N), (0, 0)))             # (Np, D)  anchor rows
    rhs = jnp.pad(emb_mm.T, ((0, 0), (0, nc_cols - N)))           # (D, Nc)  columns
    sqr = jnp.pad(sq, (0, np_rows - N)).reshape(np_rows, 1)
    sqc = jnp.pad(sq, (0, nc_cols - N)).reshape(1, nc_cols)
    lblr = jnp.pad(label, (0, np_rows - N), constant_values=-1).reshape(np_rows, 1)
    lblc = jnp.pad(label, (0, nc_cols - N), constant_values=-1).reshape(1, nc_cols)

    kernel = functools.partial(
        _triplet_kernel,
        margin=float(margin),
        n_valid=N,
        col_tile=tn,
        mask_cols=(nc_cols != N),
    )

    mm_bytes = jnp.dtype(matmul_dtype).itemsize
    # Double-buffered blocks + f32 (TM, TN) temporaries, with headroom; capped at 64 MiB
    # (physical VMEM per core on v7x).
    vmem_bytes = (2 * (tm * D + D * tn) * mm_bytes        # lhs/rhs blocks (x2 buffers)
                  + 2 * (2 * tm + 2 * tn) * 4             # sq/label blocks
                  + 2 * 2 * tm * 4                        # outputs
                  + 2 * tm * 4                            # scratch accumulators
                  + 6 * tm * tn * 4)                      # gram/d2/pos/neg temporaries
    vmem_limit = int(min(2 * vmem_bytes + (4 << 20), 64 << 20))

    cost = pl.CostEstimate(
        flops=2 * np_rows * nc_cols * D,
        transcendentals=2 * np_rows,
        bytes_accessed=(np_rows * D + n_row_tiles * nc_cols * D) * mm_bytes
                       + (np_rows + n_row_tiles * nc_cols) * 8
                       + 2 * np_rows * 4,
    )

    loss_rows, corr_rows = pl.pallas_call(
        kernel,
        out_shape=(
            jax.ShapeDtypeStruct((1, np_rows), jnp.float32),
            jax.ShapeDtypeStruct((1, np_rows), jnp.float32),
        ),
        grid=(n_row_tiles, n_col_tiles),
        in_specs=[
            pl.BlockSpec((tm, D), lambda i, j: (i, 0)),   # anchor rows (resident across j)
            pl.BlockSpec((D, tn), lambda i, j: (0, j)),   # columns (pre-cast, transposed)
            pl.BlockSpec((tm, 1), lambda i, j: (i, 0)),   # ||x||^2 of anchor rows
            pl.BlockSpec((1, tn), lambda i, j: (0, j)),   # ||x||^2 of columns
            pl.BlockSpec((tm, 1), lambda i, j: (i, 0)),   # labels of anchor rows
            pl.BlockSpec((1, tn), lambda i, j: (0, j)),   # labels of columns
        ],
        out_specs=(
            pl.BlockSpec((1, tm), lambda i, j: (0, i)),   # lane-dense per-row loss
            pl.BlockSpec((1, tm), lambda i, j: (0, i)),   # lane-dense per-row correct flag
        ),
        scratch_shapes=[
            pltpu.VMEM((tm, 1), jnp.float32),             # running max of positive d^2
            pltpu.VMEM((tm, 1), jnp.float32),             # running min of negative d^2
        ],
        compiler_params=pltpu.CompilerParams(
            dimension_semantics=("parallel", "arbitrary"),
            vmem_limit_bytes=vmem_limit),
        cost_estimate=cost,
    )(lhs, rhs, sqr, sqc, lblr, lblc)

    losses = loss_rows[0, :N]     # padded rows are simply sliced away
    correct = corr_rows[0, :N]
    loss = jnp.mean(losses)       # MarginRankingLoss(margin) with y=1, mean reduction
    prec = jnp.mean(correct)      # sum(dist_an > dist_ap) / N
    return loss, prec


def _reference(emb, label, margin, normalize_feature=False):
    """Pure-JAX reference mirroring the PyTorch module (f32 everywhere)."""
    emb = emb.astype(jnp.float32)
    if normalize_feature:
        nrm = jnp.sqrt(jnp.sum(emb * emb, axis=1, keepdims=True))
        emb = emb / jnp.maximum(nrm, 1e-12)
    xx = jnp.sum(emb * emb, axis=1, keepdims=True)
    dist = jnp.sqrt(jnp.maximum(xx + xx.T - 2.0 * emb @ emb.T, 1e-12))
    sim = (label[:, None] == label[None, :]).astype(jnp.float32)
    hard_p = jnp.max(dist - 9999999.0 * (1.0 - sim), axis=1)
    hard_n = jnp.min(dist + 9999999.0 * sim, axis=1)
    loss = jnp.mean(jnp.maximum(hard_p - hard_n + margin, 0.0))
    prec = jnp.sum(hard_n > hard_p) / hard_p.shape[0]
    return loss, prec


if __name__ == "__main__":
    margin = 0.3
    key = jax.random.PRNGKey(0)
    k0, k1 = jax.random.split(key)

    # Small case matching the module's expected use: N anchors, D-dim embeddings,
    # 4 identities x 2 samples each (every anchor has a valid positive & negative).
    N, D = 8, 32
    emb = jax.random.normal(k0, (N, D), dtype=jnp.float32)
    label = jnp.array([0, 0, 1, 1, 2, 2, 3, 3], dtype=jnp.int32)

    ref_loss, ref_prec = _reference(emb, label, margin)

    # 1) f32 MXU path -> tight match against the f32 reference.
    loss32, prec32 = jax.block_until_ready(
        triplet_loss(emb, label, margin=margin, matmul_dtype=jnp.float32))
    np.testing.assert_allclose(np.asarray(loss32), np.asarray(ref_loss), rtol=1e-5, atol=1e-5)
    np.testing.assert_allclose(np.asarray(prec32), np.asarray(ref_prec), rtol=1e-5, atol=1e-5)

    # 2) normalize_feature=True (F.normalize hoisted to the wrapper), f32 path.
    ref_loss_n, ref_prec_n = _reference(emb, label, margin, normalize_feature=True)
    loss_n, prec_n = jax.block_until_ready(
        triplet_loss(emb, label, margin=margin, normalize_feature=True,
                     matmul_dtype=jnp.float32))
    np.testing.assert_allclose(np.asarray(loss_n), np.asarray(ref_loss_n), rtol=1e-5, atol=1e-5)
    np.testing.assert_allclose(np.asarray(prec_n), np.asarray(ref_prec_n), rtol=1e-5, atol=1e-5)

    # 3) default fast path: bf16 MXU inputs with f32 accumulation (looser tolerance).
    loss_bf, prec_bf = jax.block_until_ready(triplet_loss(emb, label, margin=margin))
    np.testing.assert_allclose(np.asarray(loss_bf), np.asarray(ref_loss), rtol=2e-2, atol=2e-2)
    np.testing.assert_allclose(np.asarray(prec_bf), np.asarray(ref_prec), atol=0.13)

    # 4) multi-tile + padding path: N not a multiple of either tile, several row and
    #    column grid steps (exercises the running-accumulator / column-mask code).
    N2, D2 = 200, 64
    emb2 = jax.random.normal(k1, (N2, D2), dtype=jnp.float32)
    label2 = jnp.repeat(jnp.arange(100, dtype=jnp.int32), 2)   # every id has 2 samples
    ref_loss2, ref_prec2 = _reference(emb2, label2, margin)
    loss2, prec2 = jax.block_until_ready(
        triplet_loss(emb2, label2, margin=margin, matmul_dtype=jnp.float32,
                     row_tile=128, col_tile=128))
    np.testing.assert_allclose(np.asarray(loss2), np.asarray(ref_loss2), rtol=1e-4, atol=1e-5)
    np.testing.assert_allclose(np.asarray(prec2), np.asarray(ref_prec2), atol=0.011)

    print("KERNEL_OK")
</pallas_src>

<mosaic_0001>
module attributes {stable_mosaic.version = 11 : i64} {
  func.func @_triplet_kernel(%arg0: i32, %arg1: i32, %arg2: memref<256x32xf32, #tpu.memory_space<vmem>>, %arg3: memref<32x512xf32, #tpu.memory_space<vmem>>, %arg4: memref<256x1xf32, #tpu.memory_space<vmem>>, %arg5: memref<1x512xf32, #tpu.memory_space<vmem>>, %arg6: memref<256x1xi32, #tpu.memory_space<vmem>>, %arg7: memref<1x512xi32, #tpu.memory_space<vmem>>, %arg8: memref<1x256xf32, #tpu.memory_space<vmem>>, %arg9: memref<1x256xf32, #tpu.memory_space<vmem>>, %arg10: memref<256x1xf32, #tpu.memory_space<vmem>>, %arg11: memref<256x1xf32, #tpu.memory_space<vmem>>) attributes {dimension_semantics = [#tpu.dimension_semantics<parallel>, #tpu.dimension_semantics<arbitrary>], iteration_bounds = array<i64: 1, 1>, scalar_prefetch = 0 : i64, scratch_operands = 2 : i64, tpu.core_type = #tpu.core_type<tc>, window_params = [{transform_indices = @transform_0, window_bounds = array<i64: 256, 32>}, {transform_indices = @transform_1, window_bounds = array<i64: 32, 512>}, {transform_indices = @transform_2, window_bounds = array<i64: 256, 1>}, {transform_indices = @transform_3, window_bounds = array<i64: 1, 512>}, {transform_indices = @transform_4, window_bounds = array<i64: 256, 1>}, {transform_indices = @transform_5, window_bounds = array<i64: 1, 512>}, {transform_indices = @transform_6, window_bounds = array<i64: 1, 256>}, {transform_indices = @transform_7, window_bounds = array<i64: 1, 256>}]} {
    %c0_i32 = arith.constant 0 : i32
    %0 = arith.cmpi eq, %arg1, %c0_i32 : i32
    %1 = arith.extui %0 : i1 to i32
    %c0_i32_0 = arith.constant 0 : i32
    %2 = arith.cmpi ne, %1, %c0_i32_0 : i32
    scf.if %2 {
      %cst_28 = arith.constant 0xFF800000 : f32
      %45 = vector.broadcast %cst_28 : f32 to vector<256x1xf32>
      %c0_29 = arith.constant 0 : index
      %c0_30 = arith.constant 0 : index
      %46 = vector.load %arg10[%c0_29, %c0_30] : memref<256x1xf32, #tpu.memory_space<vmem>>, vector<256x1xf32>
      tpu.vector_store %arg10[%c0_29, %c0_30], %45 {strides = array<i32>} : memref<256x1xf32, #tpu.memory_space<vmem>>, vector<256x1xf32>,
      %cst_31 = arith.constant 0x7F800000 : f32
      %47 = vector.broadcast %cst_31 : f32 to vector<256x1xf32>
      %c0_32 = arith.constant 0 : index
      %c0_33 = arith.constant 0 : index
      %48 = vector.load %arg11[%c0_32, %c0_33] : memref<256x1xf32, #tpu.memory_space<vmem>>, vector<256x1xf32>
      tpu.vector_store %arg11[%c0_32, %c0_33], %47 {strides = array<i32>} : memref<256x1xf32, #tpu.memory_space<vmem>>, vector<256x1xf32>,
    } else {
    }
    %c0 = arith.constant 0 : index
    %c0_1 = arith.constant 0 : index
    %3 = vector.load %arg2[%c0, %c0_1] : memref<256x32xf32, #tpu.memory_space<vmem>>, vector<256x32xf32>
    %c0_2 = arith.constant 0 : index
    %c0_3 = arith.constant 0 : index
    %4 = vector.load %arg3[%c0_2, %c0_3] : memref<32x512xf32, #tpu.memory_space<vmem>>, vector<32x512xf32>
    %cst = arith.constant dense<0.000000e+00> : vector<256x512xf32>
    %5 = tpu.matmul %3, %4, %cst {dimension_numbers = #tpu.dot_dimension_numbers<[1], [0], [0], [1], [0, 0, 1, 1], [], []>} : vector<256x32xf32>, vector<32x512xf32>, vector<256x512xf32> -> vector<256x512xf32>
    %c0_4 = arith.constant 0 : index
    %c0_5 = arith.constant 0 : index
    %6 = vector.load %arg4[%c0_4, %c0_5] : memref<256x1xf32, #tpu.memory_space<vmem>>, vector<256x1xf32>
    %c0_6 = arith.constant 0 : index
    %c0_7 = arith.constant 0 : index
    %7 = vector.load %arg5[%c0_6, %c0_7] : memref<1x512xf32, #tpu.memory_space<vmem>>, vector<1x512xf32>
    %8 = vector.broadcast %6 : vector<256x1xf32> to vector<256x512xf32>
    %9 = vector.broadcast %7 : vector<1x512xf32> to vector<256x512xf32>
    %10 = arith.addf %8, %9 : vector<256x512xf32>
    %cst_8 = arith.constant 2.000000e+00 : f32
    %11 = vector.broadcast %cst_8 : f32 to vector<256x512xf32>
    %12 = arith.mulf %11, %5 : vector<256x512xf32>
    %13 = arith.subf %10, %12 : vector<256x512xf32>
    %c0_9 = arith.constant 0 : index
    %c0_10 = arith.constant 0 : index
    %14 = vector.load %arg6[%c0_9, %c0_10] : memref<256x1xi32, #tpu.memory_space<vmem>>, vector<256x1xi32>
    %c0_11 = arith.constant 0 : index
    %c0_12 = arith.constant 0 : index
    %15 = vector.load %arg7[%c0_11, %c0_12] : memref<1x512xi32, #tpu.memory_space<vmem>>, vector<1x512xi32>
    %16 = vector.broadcast %14 : vector<256x1xi32> to vector<256x512xi32>
    %17 = vector.broadcast %15 : vector<1x512xi32> to vector<256x512xi32>
    %18 = arith.cmpi eq, %16, %17 : vector<256x512xi32>
    %c512_i32 = arith.constant 512 : i32
    %19 = arith.muli %arg1, %c512_i32 : i32
    %20 = tpu.iota {dimensions = array<i32: 1>} : vector<256x512xi32>
    %21 = vector.broadcast %19 : i32 to vector<256x512xi32>
    %22 = arith.addi %21, %20 : vector<256x512xi32>
    %c8_i32 = arith.constant 8 : i32
    %23 = vector.broadcast %c8_i32 : i32 to vector<256x512xi32>
    %24 = arith.cmpi slt, %22, %23 : vector<256x512xi32>
    %25 = arith.andi %18, %24 : vector<256x512xi1>
    %cst_13 = arith.constant dense<true> : vector<256x512xi1>
    %26 = arith.xori %18, %cst_13 : vector<256x512xi1>
    %27 = arith.andi %26, %24 : vector<256x512xi1>
    %cst_14 = arith.constant 0xFF800000 : f32
    %28 = vector.broadcast %cst_14 : f32 to vector<256x512xf32>
    %29 = arith.select %25, %13, %28 : vector<256x512xi1>, vector<256x512xf32>
    %cst_15 = arith.constant 0x7F800000 : f32
    %30 = vector.broadcast %cst_15 : f32 to vector<256x512xf32>
    %31 = arith.select %27, %13, %30 : vector<256x512xi1>, vector<256x512xf32>
    %c0_16 = arith.constant 0 : index
    %c0_17 = arith.constant 0 : index
    %32 = vector.load %arg10[%c0_16, %c0_17] : memref<256x1xf32, #tpu.memory_space<vmem>>, vector<256x1xf32>
    %cst_18 = arith.constant dense<0xFF800000> : vector<256xf32>
    %33 = vector.multi_reduction <maximumf>, %29, %cst_18 [1] : vector<256x512xf32> to vector<256xf32>
    %34 = vector.shape_cast %33 : vector<256xf32> to vector<256x1xf32>
    %35 = arith.maximumf %32, %34 : vector<256x1xf32>
    %c0_19 = arith.constant 0 : index
    %c0_20 = arith.constant 0 : index
    %36 = vector.load %arg10[%c0_19, %c0_20] : memref<256x1xf32, #tpu.memory_space<vmem>>, vector<256x1xf32>
    tpu.vector_store %arg10[%c0_19, %c0_20], %35 {strides = array<i32>} : memref<256x1xf32, #tpu.memory_space<vmem>>, vector<256x1xf32>,
    %c0_21 = arith.constant 0 : index
    %c0_22 = arith.constant 0 : index
    %37 = vector.load %arg11[%c0_21, %c0_22] : memref<256x1xf32, #tpu.memory_space<vmem>>, vector<256x1xf32>
    %cst_23 = arith.constant dense<0x7F800000> : vector<256xf32>
    %38 = vector.multi_reduction <minimumf>, %31, %cst_23 [1] : vector<256x512xf32> to vector<256xf32>
    %39 = vector.shape_cast %38 : vector<256xf32> to vector<256x1xf32>
    %40 = arith.minimumf %37, %39 : vector<256x1xf32>
    %c0_24 = arith.constant 0 : index
    %c0_25 = arith.constant 0 : index
    %41 = vector.load %arg11[%c0_24, %c0_25] : memref<256x1xf32, #tpu.memory_space<vmem>>, vector<256x1xf32>
    tpu.vector_store %arg11[%c0_24, %c0_25], %40 {strides = array<i32>} : memref<256x1xf32, #tpu.memory_space<vmem>>, vector<256x1xf32>,
    %c0_i32_26 = arith.constant 0 : i32
    %42 = arith.cmpi eq, %arg1, %c0_i32_26 : i32
    %43 = arith.extui %42 : i1 to i32
    %c0_i32_27 = arith.constant 0 : i32
    %44 = arith.cmpi ne, %43, %c0_i32_27 : i32
    scf.if %44 {
      %c0_28 = arith.constant 0 : index
      %c0_29 = arith.constant 0 : index
      %45 = vector.load %arg10[%c0_28, %c0_29] : memref<256x1xf32, #tpu.memory_space<vmem>>, vector<256x1xf32>
      %cst_30 = arith.constant 9.99999996E-13 : f32
      %46 = vector.broadcast %cst_30 : f32 to vector<256x1xf32>
      %47 = arith.maximumf %45, %46 : vector<256x1xf32>
      %48 = math.sqrt %47 : vector<256x1xf32>
      %c0_31 = arith.constant 0 : index
      %c0_32 = arith.constant 0 : index
      %49 = vector.load %arg11[%c0_31, %c0_32] : memref<256x1xf32, #tpu.memory_space<vmem>>, vector<256x1xf32>
      %cst_33 = arith.constant 9.99999996E-13 : f32
      %50 = vector.broadcast %cst_33 : f32 to vector<256x1xf32>
      %51 = arith.maximumf %49, %50 : vector<256x1xf32>
      %52 = math.sqrt %51 : vector<256x1xf32>
      %53 = arith.subf %48, %52 : vector<256x1xf32>
      %cst_34 = arith.constant 3.000000e-01 : f32
      %54 = vector.broadcast %cst_34 : f32 to vector<256x1xf32>
      %55 = arith.addf %53, %54 : vector<256x1xf32>
      %cst_35 = arith.constant 0.000000e+00 : f32
      %56 = vector.broadcast %cst_35 : f32 to vector<256x1xf32>
      %57 = arith.maximumf %55, %56 : vector<256x1xf32>
      %58 = tpu.transpose %57, [1, 0] : vector<256x1xf32> -> vector<1x256xf32>
      %c0_36 = arith.constant 0 : index
      %c0_37 = arith.constant 0 : index
      %59 = vector.load %arg8[%c0_36, %c0_37] : memref<1x256xf32, #tpu.memory_space<vmem>>, vector<1x256xf32>
      tpu.vector_store %arg8[%c0_36, %c0_37], %58 {strides = array<i32>} : memref<1x256xf32, #tpu.memory_space<vmem>>, vector<1x256xf32>,
      %60 = arith.cmpf ogt, %52, %48 : vector<256x1xf32>
      %61 = arith.extui %60 : vector<256x1xi1> to vector<256x1xi32>
      %62 = arith.sitofp %61 : vector<256x1xi32> to vector<256x1xf32>
      %63 = tpu.transpose %62, [1, 0] : vector<256x1xf32> -> vector<1x256xf32>
      %c0_38 = arith.constant 0 : index
      %c0_39 = arith.constant 0 : index
      %64 = vector.load %arg9[%c0_38, %c0_39] : memref<1x256xf32, #tpu.memory_space<vmem>>, vector<1x256xf32>
      tpu.vector_store %arg9[%c0_38, %c0_39], %63 {strides = array<i32>} : memref<1x256xf32, #tpu.memory_space<vmem>>, vector<1x256xf32>,
    } else {
    }
    return
  }
  func.func @transform_0(%arg0: i32, %arg1: i32) -> (i32, i32) {
    %c0_i32 = arith.constant 0 : i32
    %c0_i32_0 = arith.constant 0 : i32
    return %arg0, %c0_i32 : i32, i32
  }
  func.func @transform_1(%arg0: i32, %arg1: i32) -> (i32, i32) {
    %c0_i32 = arith.constant 0 : i32
    %c0_i32_0 = arith.constant 0 : i32
    return %c0_i32, %arg1 : i32, i32
  }
  func.func @transform_2(%arg0: i32, %arg1: i32) -> (i32, i32) {
    %c0_i32 = arith.constant 0 : i32
    %c0_i32_0 = arith.constant 0 : i32
    return %arg0, %c0_i32 : i32, i32
  }
  func.func @transform_3(%arg0: i32, %arg1: i32) -> (i32, i32) {
    %c0_i32 = arith.constant 0 : i32
    %c0_i32_0 = arith.constant 0 : i32
    return %c0_i32, %arg1 : i32, i32
  }
  func.func @transform_4(%arg0: i32, %arg1: i32) -> (i32, i32) {
    %c0_i32 = arith.constant 0 : i32
    %c0_i32_0 = arith.constant 0 : i32
    return %arg0, %c0_i32 : i32, i32
  }
  func.func @transform_5(%arg0: i32, %arg1: i32) -> (i32, i32) {
    %c0_i32 = arith.constant 0 : i32
    %c0_i32_0 = arith.constant 0 : i32
    return %c0_i32, %arg1 : i32, i32
  }
  func.func @transform_6(%arg0: i32, %arg1: i32) -> (i32, i32) {
    %c0_i32 = arith.constant 0 : i32
    %c0_i32_0 = arith.constant 0 : i32
    return %c0_i32, %arg0 : i32, i32
  }
  func.func @transform_7(%arg0: i32, %arg1: i32) -> (i32, i32) {
    %c0_i32 = arith.constant 0 : i32
    %c0_i32_0 = arith.constant 0 : i32
    return %c0_i32, %arg0 : i32, i32
  }
}

</mosaic_0001>

<bundles_post_ra>
// kernel: tpu_custom_call.1
= control target key start
LH: loop header
LB: loop body
LE: loop exit
PB: predicated region body
PF: predicated region fallthrough
CT: control target
= control target key end

     0   :  { %13 = vsyncpa [#allocation5], 0  ;;  %v4097_v3 = vmov 0   ;;  %v7074_v11 = vmov 0.0   ;;  %vm7059_vm0 = vcmask 261120   ;;  %s7045_s0 = inlined_call_operand.vmem [shape: f32[256,32], index: 0, kind: input, shape index: {}]   ;;  %s7046_s1 = inlined_call_operand.vmem [shape: f32[32,512], index: 1, kind: input, shape index: {}]   ;;  %s7047_s2 = inlined_call_operand.vmem [shape: f32[256,1], index: 2, kind: input, shape index: {}]   ;;  %s7048_s3 = inlined_call_operand.vmem [shape: f32[1,512], index: 3, kind: input, shape index: {}]   ;;  %s7049_s4 = inlined_call_operand.vmem [shape: s32[256,1], index: 4, kind: input, shape index: {}]   ;;  %s7050_s5 = inlined_call_operand.vmem [shape: s32[1,512], index: 5, kind: input, shape index: {}]   ;;  %s7051_s6 = inlined_call_operand.hbm [shape: f32[1,256], index: 6, kind: output, shape index: {0}]   ;;  %s7052_s7 = inlined_call_operand.hbm [shape: f32[1,256], index: 7, kind: output, shape index: {1}]  }
   0x1   :  { %v141_v0 = vld [vmem:[%s7046_s1 + $0x68] sm:$0xff]  ;;  %v757_v1 = vld [vmem:[%s7047_s2 + $0x10] sm:$0xff]  ;;  %v755_v2 = vld [vmem:[%s7047_s2] sm:$0xff]  ;;  %3868 = vset.pattern.permute.xlu1 %v4097_v3  ;;  %3867 = vset.pattern.permute.xlu0 %v4097_v3 }
   0x2   :  { %v140_v4 = vld [vmem:[%s7046_s1 + $0x60] sm:$0xff]  ;;  %v137_v5 = vld [vmem:[%s7046_s1 + $0x48] sm:$0xff]  ;;  %265 = vmatprep.subr.mxu0 %v141_v0  ;;  %800 = vperm.xlu1 %3868, %v757_v1   ;;  %v758_v8 = vld [vmem:[%s7047_s2 + $0x18] sm:$0xff] }
   0x3   :  { %v136_v6 = vld [vmem:[%s7046_s1 + $0x40] sm:$0xff]  ;;  %790 = vperm.xlu0 %3867, %v755_v2   ;;  %266 = vmatpush1.msra.mxu0 %v140_v4  ;;  %v133_v7 = vld [vmem:[%s7046_s1 + $0x28] sm:$0xff]  ;;  %v762_v18 = vld [vmem:[%s7047_s2 + $0x38] sm:$0xff] }
   0x4   :  { %267 = vmatprep.subr.mxu0 %v137_v5  ;;  %v756_v9 = vld [vmem:[%s7047_s2 + $0x8] sm:$0xff]  ;;  %v132_v10 = vld [vmem:[%s7046_s1 + $0x20] sm:$0xff]  ;;  %305 = vmatprep.mubr.f32.mxu0 %v7074_v11  ;;  %v761_v19 = vld [vmem:[%s7047_s2 + $0x30] sm:$0xff] }
   0x5   :  { %268 = vmatpush1.msra.mxu0 %v136_v6  ;;  %v129_v12 = vld [vmem:[%s7046_s1 + $0x8] sm:$0xff]  ;;  %562 = vmatprep.mubr.f32.mxu1 %v7074_v11  ;;  %v128_v13 = vld [vmem:[%s7046_s1] sm:$0xff]  ;;  %v4214_v20 = vld [vmem:[%s7045_s0 + $0x10] sm:$0xff] }
   0x6   :  { %269 = vmatprep.subr.mxu0 %v133_v7  ;;  %805 = vperm.xlu1 %3868, %v758_v8   ;;  %v4186_v14 = vld [vmem:[%s7045_s0] sm:$0xff]  ;;  %v760_v15 = vld [vmem:[%s7047_s2 + $0x28] sm:$0xff]  ;;  %v4228_v23 = vld [vmem:[%s7045_s0 + $0x18] sm:$0xff] }
   0x7   :  { %795 = vperm.xlu0 %3867, %v756_v9   ;;  %270 = vmatpush1.msra.mxu0 %v132_v10  ;;  %v759_v16 = vld [vmem:[%s7047_s2 + $0x20] sm:$0xff]  ;;  %v4200_v17 = vld [vmem:[%s7045_s0 + $0x8] sm:$0xff]  ;;  %v766_v24 = vld [vmem:[%s7047_s2 + $0x58] sm:$0xff] }
   0x8   :  { %271 = vmatprep.subr.mxu0 %v129_v12  ;;  %v764_v21 = vld [vmem:[%s7047_s2 + $0x48] sm:$0xff]  ;;  %v763_v22 = vld [vmem:[%s7047_s2 + $0x40] sm:$0xff]  ;;  %v765_v25 = vld [vmem:[%s7047_s2 + $0x50] sm:$0xff] }
   0x9   :  { %272 = vmatpush1.msra.mxu0 %v128_v13  ;;  %v4242_v26 = vld [vmem:[%s7045_s0 + $0x20] sm:$0xff]  ;;  %v768_v27 = vld [vmem:[%s7047_s2 + $0x68] sm:$0xff]  ;;  %v770_v30 = vld [vmem:[%s7047_s2 + $0x78] sm:$0xff] }
   0xa   :  { %3763 = vmatmul.mubr.msk.f32.vlgmr.msra.gmra.mxu0 %vm7059_vm0, %v4186_v14  ;;  %815 = vperm.xlu1 %3868, %v760_v15   ;;  %v767_v28 = vld [vmem:[%s7047_s2 + $0x60] sm:$0xff]  ;;  %v4256_v29 = vld [vmem:[%s7045_s0 + $0x28] sm:$0xff]  ;;  %v769_v31 = vld [vmem:[%s7047_s2 + $0x70] sm:$0xff] }
   0xb   :  { %810 = vperm.xlu0 %3867, %v759_v16   ;;  %311 = vmatprep.mubr.f32.mxu0 %v7074_v11  ;;  %v4270_v32 = vld [vmem:[%s7045_s0 + $0x30] sm:$0xff]  ;;  %v772_v33 = vld [vmem:[%s7047_s2 + $0x88] sm:$0xff]  ;;  %v771_v34 = vld [vmem:[%s7047_s2 + $0x80] sm:$0xff] }
   0xc   :  { %v4284_v35 = vld [vmem:[%s7045_s0 + $0x38] sm:$0xff] }
   0xd   :  { %v774_v36 = vld [vmem:[%s7047_s2 + $0x98] sm:$0xff] }
   0xe   :  { %3764 = vmatmul.mubr.msk.f32.gmra.mxu0 %vm7059_vm0, %v4200_v17  ;;  %825 = vperm.xlu1 %3868, %v762_v18  }
   0xf   :  { %820 = vperm.xlu0 %3867, %v761_v19   ;;  %317 = vmatprep.mubr.f32.mxu0 %v7074_v11 }
  0x12   :  { %3765 = vmatmul.mubr.msk.f32.gmra.mxu0 %vm7059_vm0, %v4214_v20  ;;  %835 = vperm.xlu1 %3868, %v764_v21  }
  0x13   :  { %830 = vperm.xlu0 %3867, %v763_v22   ;;  %323 = vmatprep.mubr.f32.mxu0 %v7074_v11 }
  0x16   :  { %3766 = vmatmul.mubr.msk.f32.gmra.mxu0 %vm7059_vm0, %v4228_v23  ;;  %845 = vperm.xlu1 %3868, %v766_v24  }
  0x17   :  { %840 = vperm.xlu0 %3867, %v765_v25   ;;  %329 = vmatprep.mubr.f32.mxu0 %v7074_v11 }
  0x1a   :  { %3767 = vmatmul.mubr.msk.f32.gmra.mxu0 %vm7059_vm0, %v4242_v26  ;;  %855 = vperm.xlu1 %3868, %v768_v27  }
  0x1b   :  { %850 = vperm.xlu0 %3867, %v767_v28   ;;  %335 = vmatprep.mubr.f32.mxu0 %v7074_v11 }
  0x1e   :  { %3768 = vmatmul.mubr.msk.f32.gmra.mxu0 %vm7059_vm0, %v4256_v29  ;;  %865 = vperm.xlu1 %3868, %v770_v30  }
  0x1f   :  { %860 = vperm.xlu0 %3867, %v769_v31   ;;  %341 = vmatprep.mubr.f32.mxu0 %v7074_v11 }
  0x22   :  { %3769 = vmatmul.mubr.msk.f32.gmra.mxu0 %vm7059_vm0, %v4270_v32  ;;  %875 = vperm.xlu1 %3868, %v772_v33  }
  0x23   :  { %870 = vperm.xlu0 %3867, %v771_v34   ;;  %347 = vmatprep.mubr.f32.mxu0 %v7074_v11 }
  0x24   :  { %14 = vsyncpa [#allocation7], 0  ;;  %v773_v37 = vld [vmem:[%s7047_s2 + $0x90] sm:$0xff]  ;;  %v4298_v38 = vld [vmem:[%s7045_s0 + $0x40] sm:$0xff]  ;;  %vm7061_vm4 = vmmov 1  }
  0x25   :  { %v776_v39 = vld [vmem:[%s7047_s2 + $0xa8] sm:$0xff]  ;;  %v775_v40 = vld [vmem:[%s7047_s2 + $0xa0] sm:$0xff]  ;;  %v778_v42 = vld [vmem:[%s7047_s2 + $0xb8] sm:$0xff] }
  0x26   :  { %3770 = vmatmul.mubr.msk.f32.gmra.mxu0 %vm7059_vm0, %v4284_v35  ;;  %885 = vperm.xlu1 %3868, %v774_v36   ;;  %v4312_v41 = vld [vmem:[%s7045_s0 + $0x48] sm:$0xff]  ;;  %v777_v43 = vld [vmem:[%s7047_s2 + $0xb0] sm:$0xff]  ;;  %v779_v46 = vld [vmem:[%s7047_s2 + $0xc0] sm:$0xff] }
  0x27   :  { %880 = vperm.xlu0 %3867, %v773_v37   ;;  %353 = vmatprep.mubr.f32.mxu0 %v7074_v11  ;;  %v4326_v44 = vld [vmem:[%s7045_s0 + $0x50] sm:$0xff]  ;;  %v780_v45 = vld [vmem:[%s7047_s2 + $0xc8] sm:$0xff]  ;;  %v4340_v47 = vld [vmem:[%s7045_s0 + $0x58] sm:$0xff] }
  0x28   :  { %v782_v48 = vld [vmem:[%s7047_s2 + $0xd8] sm:$0xff]  ;;  %v781_v49 = vld [vmem:[%s7047_s2 + $0xd0] sm:$0xff]  ;;  %v4354_v50 = vld [vmem:[%s7045_s0 + $0x60] sm:$0xff] }
  0x29   :  { %v784_v51 = vld [vmem:[%s7047_s2 + $0xe8] sm:$0xff]  ;;  %v783_v52 = vld [vmem:[%s7047_s2 + $0xe0] sm:$0xff]  ;;  %v786_v54 = vld [vmem:[%s7047_s2 + $0xf8] sm:$0xff] }
  0x2a   :  { %3771 = vmatmul.mubr.msk.f32.gmra.mxu0 %vm7059_vm0, %v4298_v38  ;;  %895 = vperm.xlu1 %3868, %v776_v39   ;;  %v109_v53 = vld [vmem:[%s7045_s0 + $0x68] sm:$0xff]  ;;  %v785_v55 = vld [vmem:[%s7047_s2 + $0xf0] sm:$0xff]  ;;  %v1353_v58 = vld [vmem:[%s7049_s4] sm:$0xff] }
  0x2b   :  { %890 = vperm.xlu0 %3867, %v775_v40   ;;  %359 = vmatprep.mubr.f32.mxu0 %v7074_v11  ;;  %v110_v56 = vld [vmem:[%s7045_s0 + $0x70] sm:$0xff]  ;;  %v1354_v57 = vld [vmem:[%s7049_s4 + $0x8] sm:$0xff]  ;;  %v111_v59 = vld [vmem:[%s7045_s0 + $0x78] sm:$0xff] }
  0x2c   :  { %v1356_v60 = vld [vmem:[%s7049_s4 + $0x18] sm:$0xff]  ;;  %v1355_v61 = vld [vmem:[%s7049_s4 + $0x10] sm:$0xff]  ;;  %v112_v62 = vld [vmem:[%s7045_s0 + $0x80] sm:$0xff] }
  0x2d   :  { %v1358_v63 = vld [vmem:[%s7049_s4 + $0x28] sm:$0xff]  ;;  %v1357_v0 = vld [vmem:[%s7049_s4 + $0x20] sm:$0xff]  ;;  %v1360_v2 = vld [vmem:[%s7049_s4 + $0x38] sm:$0xff] }
  0x2e   :  { %3772 = vmatmul.mubr.msk.f32.gmra.mxu0 %vm7059_vm0, %v4312_v41  ;;  %905 = vperm.xlu1 %3868, %v778_v42   ;;  %v113_v1 = vld [vmem:[%s7045_s0 + $0x88] sm:$0xff]  ;;  %v1359_v3 = vld [vmem:[%s7049_s4 + $0x30] sm:$0xff]  ;;  %v1361_v6 = vld [vmem:[%s7049_s4 + $0x40] sm:$0xff] }
  0x2f   :  { %900 = vperm.xlu0 %3867, %v777_v43   ;;  %365 = vmatprep.mubr.f32.mxu0 %v7074_v11  ;;  %v114_v4 = vld [vmem:[%s7045_s0 + $0x90] sm:$0xff]  ;;  %v1362_v5 = vld [vmem:[%s7049_s4 + $0x48] sm:$0xff]  ;;  %v115_v7 = vld [vmem:[%s7045_s0 + $0x98] sm:$0xff] }
  0x30   :  { %v1364_v8 = vld [vmem:[%s7049_s4 + $0x58] sm:$0xff]  ;;  %v1363_v9 = vld [vmem:[%s7049_s4 + $0x50] sm:$0xff]  ;;  %v116_v10 = vld [vmem:[%s7045_s0 + $0xa0] sm:$0xff] }
  0x31   :  { %v1366_v12 = vld [vmem:[%s7049_s4 + $0x68] sm:$0xff]  ;;  %v1365_v13 = vld [vmem:[%s7049_s4 + $0x60] sm:$0xff]  ;;  %v1368_v16 = vld [vmem:[%s7049_s4 + $0x78] sm:$0xff] }
  0x32   :  { %3773 = vmatmul.mubr.msk.f32.gmra.mxu0 %vm7059_vm0, %v4326_v44  ;;  %915 = vperm.xlu1 %3868, %v780_v45   ;;  %v117_v15 = vld [vmem:[%s7045_s0 + $0xa8] sm:$0xff]  ;;  %v1367_v18 = vld [vmem:[%s7049_s4 + $0x70] sm:$0xff]  ;;  %v1369_v22 = vld [vmem:[%s7049_s4 + $0x80] sm:$0xff] }
  0x33   :  { %910 = vperm.xlu0 %3867, %v779_v46   ;;  %371 = vmatprep.mubr.f32.mxu0 %v7074_v11  ;;  %v118_v19 = vld [vmem:[%s7045_s0 + $0xb0] sm:$0xff]  ;;  %v1370_v21 = vld [vmem:[%s7049_s4 + $0x88] sm:$0xff]  ;;  %v119_v24 = vld [vmem:[%s7045_s0 + $0xb8] sm:$0xff] }
  0x34   :  { %v1372_v25 = vld [vmem:[%s7049_s4 + $0x98] sm:$0xff]  ;;  %v1371_v27 = vld [vmem:[%s7049_s4 + $0x90] sm:$0xff]  ;;  %v120_v28 = vld [vmem:[%s7045_s0 + $0xc0] sm:$0xff] }
  0x35   :  { %v1374_v30 = vld [vmem:[%s7049_s4 + $0xa8] sm:$0xff]  ;;  %v1373_v31 = vld [vmem:[%s7049_s4 + $0xa0] sm:$0xff]  ;;  %v1376_v34 = vld [vmem:[%s7049_s4 + $0xb8] sm:$0xff] }
  0x36   :  { %3774 = vmatmul.mubr.msk.f32.gmra.mxu0 %vm7059_vm0, %v4340_v47  ;;  %925 = vperm.xlu1 %3868, %v782_v48   ;;  %v121_v33 = vld [vmem:[%s7045_s0 + $0xc8] sm:$0xff]  ;;  %v1375_v36 = vld [vmem:[%s7049_s4 + $0xb0] sm:$0xff]  ;;  %v1377_v40 = vld [vmem:[%s7049_s4 + $0xc0] sm:$0xff] }
  0x37   :  { %920 = vperm.xlu0 %3867, %v781_v49   ;;  %377 = vmatprep.mubr.f32.mxu0 %v7074_v11  ;;  %v122_v37 = vld [vmem:[%s7045_s0 + $0xd0] sm:$0xff]  ;;  %v1378_v39 = vld [vmem:[%s7049_s4 + $0xc8] sm:$0xff]  ;;  %v123_v42 = vld [vmem:[%s7045_s0 + $0xd8] sm:$0xff] }
  0x38   :  { %v1380_v43 = vld [vmem:[%s7049_s4 + $0xd8] sm:$0xff]  ;;  %v1379_v45 = vld [vmem:[%s7049_s4 + $0xd0] sm:$0xff]  ;;  %v124_v46 = vld [vmem:[%s7045_s0 + $0xe0] sm:$0xff] }
  0x39   :  { %v1382_v48 = vld [vmem:[%s7049_s4 + $0xe8] sm:$0xff]  ;;  %v1381_v49 = vld [vmem:[%s7049_s4 + $0xe0] sm:$0xff] }
  0x3a   :  { %3775 = vmatmul.mubr.msk.f32.gmra.mxu0 %vm7059_vm0, %v4354_v50  ;;  %935 = vperm.xlu1 %3868, %v784_v51   ;;  %v125_v51 = vld [vmem:[%s7045_s0 + $0xe8] sm:$0xff] }
  0x3b   :  { %930 = vperm.xlu0 %3867, %v783_v52   ;;  %383 = vmatprep.mubr.f32.mxu0 %v7074_v11  ;;  %v1384_v52 = vld [vmem:[%s7049_s4 + $0xf8] sm:$0xff] }
  0x3e   :  { %3776 = vmatmul.mubr.msk.f32.gmra.mxu0 %vm7059_vm0, %v109_v53  ;;  %945 = vperm.xlu1 %3868, %v786_v54   ;;  %v1383_v53 = vld [vmem:[%s7049_s4 + $0xf0] sm:$0xff] }
  0x3f   :  { %940 = vperm.xlu0 %3867, %v785_v55   ;;  %389 = vmatprep.mubr.f32.mxu0 %v7074_v11 }
  0x42   :  { %3777 = vmatmul.mubr.msk.f32.gmra.mxu0 %vm7059_vm0, %v110_v56  ;;  %1390 = vperm.xlu1 %3868, %v1354_v57   ;;  %v126_v56 = vld [vmem:[%s7045_s0 + $0xf0] sm:$0xff] }
  0x43   :  { %1387 = vperm.xlu0 %3867, %v1353_v58   ;;  %395 = vmatprep.mubr.f32.mxu0 %v7074_v11 }
  0x46   :  { %3778 = vmatmul.mubr.msk.f32.gmra.mxu0 %vm7059_vm0, %v111_v59  ;;  %1396 = vperm.xlu1 %3868, %v1356_v60   ;;  %v127_v59 = vld [vmem:[%s7045_s0 + $0xf8] sm:$0xff] }
  0x47   :  { %1393 = vperm.xlu0 %3867, %v1355_v61   ;;  %401 = vmatprep.mubr.f32.mxu0 %v7074_v11 }
  0x4a   :  { %3779 = vmatmul.mubr.msk.f32.gmra.mxu0 %vm7059_vm0, %v112_v62  ;;  %1402 = vperm.xlu1 %3868, %v1358_v63  }
  0x4b   :  { %1399 = vperm.xlu0 %3867, %v1357_v0   ;;  %407 = vmatprep.mubr.f32.mxu0 %v7074_v11 }
  0x4e   :  { %3780 = vmatmul.mubr.msk.f32.gmra.mxu0 %vm7059_vm0, %v113_v1  ;;  %1408 = vperm.xlu1 %3868, %v1360_v2  }
  0x4f   :  { %1405 = vperm.xlu0 %3867, %v1359_v3   ;;  %413 = vmatprep.mubr.f32.mxu0 %v7074_v11 }
  0x52   :  { %3781 = vmatmul.mubr.msk.f32.gmra.mxu0 %vm7059_vm0, %v114_v4  ;;  %1414 = vperm.xlu1 %3868, %v1362_v5  }
  0x53   :  { %1411 = vperm.xlu0 %3867, %v1361_v6   ;;  %419 = vmatprep.mubr.f32.mxu0 %v7074_v11 }
  0x56   :  { %3782 = vmatmul.mubr.msk.f32.gmra.mxu0 %vm7059_vm0, %v115_v7  ;;  %1420 = vperm.xlu1 %3868, %v1364_v8  }
  0x57   :  { %1417 = vperm.xlu0 %3867, %v1363_v9   ;;  %425 = vmatprep.mubr.f32.mxu0 %v7074_v11 }
  0x5a   :  { %3783 = vmatmul.mubr.msk.f32.gmra.mxu0 %vm7059_vm0, %v116_v10  ;;  %1426 = vperm.xlu1 %3868, %v1366_v12  }
  0x5b   :  { %1423 = vperm.xlu0 %3867, %v1365_v13   ;;  %431 = vmatprep.mubr.f32.mxu0 %v7074_v11 }
  0x5e   :  { %3784 = vmatmul.mubr.msk.f32.gmra.mxu0 %vm7059_vm0, %v117_v15  ;;  %1432 = vperm.xlu1 %3868, %v1368_v16  }
  0x5f   :  { %1429 = vperm.xlu0 %3867, %v1367_v18   ;;  %437 = vmatprep.mubr.f32.mxu0 %v7074_v11 }
  0x62   :  { %3785 = vmatmul.mubr.msk.f32.gmra.mxu0 %vm7059_vm0, %v118_v19  ;;  %1438 = vperm.xlu1 %3868, %v1370_v21   ;;  %v7073_v19 = vlaneseq }
  0x63   :  { %1435 = vperm.xlu0 %3867, %v1369_v22   ;;  %443 = vmatprep.mubr.f32.mxu0 %v7074_v11 }
  0x66   :  { %3786 = vmatmul.mubr.msk.f32.gmra.mxu0 %vm7059_vm0, %v119_v24  ;;  %1444 = vperm.xlu1 %3868, %v1372_v25   ;;  %v4610_v24 = vshrl.u32 %v7073_v19, 7 }
  0x67   :  { %1441 = vperm.xlu0 %3867, %v1371_v27   ;;  %449 = vmatprep.mubr.f32.mxu0 %v7074_v11 }
  0x68   :  { %7086 = vst [vmem:[#allocation10_spill] sm:$0xff] %v4610_v24 }
  0x6a   :  { %3787 = vmatmul.mubr.msk.f32.gmra.mxu0 %vm7059_vm0, %v120_v28  ;;  %1450 = vperm.xlu1 %3868, %v1374_v30   ;;  %v951_v28 = vsub.s32 0, %v4610_v24  ;;  %v787_v30 = vld [vmem:[%s7048_s3] sm:$0xf] }
  0x6b   :  { %1447 = vperm.xlu0 %3867, %v1373_v31   ;;  %455 = vmatprep.mubr.f32.mxu0 %v7074_v11 }
  0x6e   :  { %3788 = vmatmul.mubr.msk.f32.gmra.mxu0 %vm7059_vm0, %v121_v33  ;;  %1456 = vperm.xlu1 %3868, %v1376_v34   ;;  %v4622_v33 = vrot.slane %v787_v30, %v951_v28 }
  0x6f   :  { %1453 = vperm.xlu0 %3867, %v1375_v36   ;;  %461 = vmatprep.mubr.f32.mxu0 %v7074_v11 }
  0x72   :  { %3789 = vmatmul.mubr.msk.f32.gmra.mxu0 %vm7059_vm0, %v122_v37  ;;  %1462 = vperm.xlu1 %3868, %v1378_v39  }
  0x73   :  { %1459 = vperm.xlu0 %3867, %v1377_v40   ;;  %467 = vmatprep.mubr.f32.mxu0 %v7074_v11  ;;  %v1385_v40 = vld [vmem:[%s7050_s5] sm:$0xf] }
  0x76   :  { %3790 = vmatmul.mubr.msk.f32.gmra.mxu0 %vm7059_vm0, %v123_v42  ;;  %1468 = vperm.xlu1 %3868, %v1380_v43   ;;  %v4634_v42 = vrot.slane %v1385_v40, %v951_v28 }
  0x77   :  { %1465 = vperm.xlu0 %3867, %v1379_v45   ;;  %473 = vmatprep.mubr.f32.mxu0 %v7074_v11 }
  0x7a   :  { %3791 = vmatmul.mubr.msk.f32.gmra.mxu0 %vm7059_vm0, %v124_v46  ;;  %1474 = vperm.xlu1 %3868, %v1382_v48   ;;  %v4637_v46 = vand.u32 127, %v7073_v19 }
  0x7b   :  { %1471 = vperm.xlu0 %3867, %v1381_v49   ;;  %479 = vmatprep.mubr.f32.mxu0 %v7074_v11 }
  0x7c   :  { %vm1637_vm3 = vcmp.lt.s32.totalorder %v4637_v46, 8  ;;  %v4048_v46 = vld [vmem:[%s7045_s0 + $0xd8] sm:$0xff] }
  0x7d   :  { %v4550_v54 = vpop.permute.xlu1 %800 }
  0x7e   :  { %v791_v55 = vpop.permute.xlu0 %790  ;;  %3792 = vmatmul.mubr.msk.f32.gmra.mxu0 %vm7059_vm0, %v125_v51  ;;  %1480 = vperm.xlu1 %3868, %v1384_v52  }
  0x7f   :  { %1477 = vperm.xlu0 %3867, %v1383_v53   ;;  %485 = vmatprep.mubr.f32.mxu0 %v7074_v11  ;;  %v969_v49 = vadd.f32 %v4622_v33, %v791_v55 }
  0x81   :  { %v4557_v57 = vpop.permute.xlu1 %805 }
  0x82   :  { %v796_v58 = vpop.permute.xlu0 %795  ;;  %3793 = vmatmul.mubr.msk.f32.gmra.mxu0 %vm7059_vm0, %v126_v56 }
  0x83   :  { %491 = vmatprep.mubr.f32.mxu0 %v7074_v11  ;;  %v973_v28 = vadd.f32 %v4622_v33, %v796_v58 }
  0x85   :  { %v4564_v60 = vpop.permute.xlu1 %815 }
  0x86   :  { %v4566_v61 = vpop.permute.xlu0 %810  ;;  %3794 = vmatmul.mubr.msk.f32.gmra.mxu0 %vm7059_vm0, %v127_v59 }
  0x89   :  { %v4569_v62 = vpop.permute.xlu1 %825 }
  0x8a   :  { %v4571_v63 = vpop.permute.xlu0 %820 }
  0x8d   :  { %v4573_v0 = vpop.permute.xlu1 %835 }
  0x8e   :  { %v4575_v1 = vpop.permute.xlu0 %830 }
  0x91   :  { %v4577_v2 = vpop.permute.xlu1 %845 }
  0x92   :  { %v4579_v3 = vpop.permute.xlu0 %840 }
  0x95   :  { %v4581_v4 = vpop.permute.xlu1 %855 }
  0x96   :  { %v4583_v5 = vpop.permute.xlu0 %850 }
  0x99   :  { %v4585_v6 = vpop.permute.xlu1 %865 }
  0x9a   :  { %v4587_v7 = vpop.permute.xlu0 %860 }
  0x9d   :  { %v4589_v8 = vpop.permute.xlu1 %875 }
  0x9e   :  { %v4591_v9 = vpop.permute.xlu0 %870 }
  0xa1   :  { %v4593_v10 = vpop.permute.xlu1 %885 }
  0xa2   :  { %v4595_v12 = vpop.permute.xlu0 %880 }
  0xa5   :  { %v4597_v13 = vpop.permute.xlu1 %895 }
  0xa6   :  { %v4599_v15 = vpop.permute.xlu0 %890 }
  0xa9   :  { %v4601_v16 = vpop.permute.xlu1 %905 }
  0xaa   :  { %v4603_v18 = vpop.permute.xlu0 %900 }
  0xad   :  { %v4605_v21 = vpop.permute.xlu1 %915 }
  0xae   :  { %v4607_v22 = vpop.permute.xlu0 %910 }
  0xb1   :  { %v4612_v25 = vpop.permute.xlu1 %925 }
  0xb2   :  { %v4614_v27 = vpop.permute.xlu0 %920 }
  0xb5   :  { %v4620_v31 = vpop.permute.xlu1 %935 }
  0xb6   :  { %v4624_v34 = vpop.permute.xlu0 %930 }
  0xb9   :  { %v946_v36 = vpop.permute.xlu1 %945 }
  0xba   :  { %v4627_v37 = vadd.f32 %v4622_v33, %v946_v36  ;;  %v4629_v39 = vpop.permute.xlu0 %940 }
  0xbd   :  { %v1391_v45 = vpop.permute.xlu1 %1390 }
  0xbe   :  { %v1388_v43 = vpop.permute.xlu0 %1387  ;;  %vm1502_vm2 = vcmp.eq.s32.totalorder %v1391_v45, %v4634_v42  ;;  %v143_v45 = vld [vmem:[%s7046_s1 + $0x78] sm:$0xff] }
  0xbf   :  { %vm1498_vm1 = vcmp.eq.s32.totalorder %v1388_v43, %v4634_v42  ;;  %vm4649_vm6 = vmxor %vm1502_vm2, %vm7061_vm4  ;;  %522 = vmatprep.subr.mxu1 %v143_v45  ;;  %v985_v45 = vadd.f32 %v4622_v33, %v4566_v61 }
  0xc0   :  { %vm1769_vm5 = vmxor %vm1498_vm1, %vm7061_vm4 }
  0xc1   :  { %vm1897_vm7 = vmand %vm1769_vm5, %vm1637_vm3 }
  0xc2   :  { %v1394_v53 = vpop.permute.xlu0 %1393  ;;  %vm1641_vm8 = vmand %vm1498_vm1, %vm1637_vm3 }
  0xc3   :  { %vm1506_vm9 = vcmp.eq.s32.totalorder %v1394_v53, %v4634_v42  ;;  %vm1901_vm10 = vmand %vm4649_vm6, %vm1637_vm3 }
  0xc4   :  { %vm1645_vm11 = vmand %vm1502_vm2, %vm1637_vm3 }
  0xc5   :  { %vm1777_vm12 = vmxor %vm1506_vm9, %vm7061_vm4 }
  0xc6   :  { %vm1905_vm13 = vmand %vm1777_vm12, %vm1637_vm3 }
  0xc7   :  { %vm1649_vm15 = vmand %vm1506_vm9, %vm1637_vm3 }
  0xca   :  { %v307_v48 = vpop.f32.mrf.mxu0 }
  0xcb   :  { %v1097_v51 = vmul.f32 2.0, %v307_v48 }
  0xcc   :  { %v309_v56 = vpop.f32.mrf.mxu0 }
  0xcd   :  { %v1225_v59 = vsub.f32 %v969_v49, %v1097_v51  ;;  %v977_v49 = vadd.f32 %v4622_v33, %v4550_v54  ;;  %v1397_v51 = vpop.permute.xlu1 %1396  ;;  %v981_v54 = vadd.f32 %v4622_v33, %v4557_v57  ;;  %v142_v57 = vld [vmem:[%s7046_s1 + $0x70] sm:$0xff] }
  0xce   :  { %v313_v30 = vpop.f32.mrf.mxu0  ;;  %vm1510_vm14 = vcmp.eq.s32.totalorder %v1397_v51, %v4634_v42  ;;  %523 = vmatpush1.msra.mxu1 %v142_v57 }
  0xcf   :  { %v1101_v55 = vmul.f32 2.0, %v313_v30  ;;  %v2153_v36 = vsel %vm1897_vm7, %v1225_v59, inf  ;;  %v2025_v40 = vsel %vm1641_vm8, %v1225_v59, -inf  ;;  %vm4689_vm1 = vmxor %vm1510_vm14, %vm7061_vm4 }
  0xd0   :  { %2573 = vmin.xlane.f32.xlu1 %v2153_v36  ;;  %2316 = vmax.xlane.f32.xlu0 %v2025_v40  ;;  %v315_v48 = vpop.f32.mrf.mxu0  ;;  %vm1653_vm5 = vmand %vm1510_vm14, %vm1637_vm3 }
  0xd1   :  { %v1229_v58 = vsub.f32 %v973_v28, %v1101_v55  ;;  %v1400_v55 = vpop.permute.xlu0 %1399  ;;  %vm4724_vm8 = vmand %vm4689_vm1, %vm1637_vm3 }
  0xd2   :  { %v319_v43 = vpop.f32.mrf.mxu0  ;;  %vm1514_vm2 = vcmp.eq.s32.totalorder %v1400_v55, %v4634_v42  ;;  %v1005_v55 = vadd.f32 %v4622_v33, %v4573_v0 }
  0xd3   :  { %v1105_v56 = vmul.f32 2.0, %v319_v43  ;;  %v2157_v59 = vsel %vm1901_vm10, %v1229_v58, inf  ;;  %v2029_v30 = vsel %vm1645_vm11, %v1229_v58, -inf  ;;  %vm4715_vm6 = vmxor %vm1514_vm2, %vm7061_vm4 }
  0xd4   :  { %2578 = vmin.xlane.f32.xlu0 %v2157_v59  ;;  %2321 = vmax.xlane.f32.xlu1 %v2029_v30  ;;  %v321_v52 = vpop.f32.mrf.mxu0  ;;  %v1403_v59 = vpop.permute.xlu1 %1402  ;;  %vm1657_vm9 = vmand %vm1514_vm2, %vm1637_vm3 }
  0xd5   :  { %v1233_v28 = vsub.f32 %v977_v49, %v1105_v56  ;;  %v139_v56 = vld [vmem:[%s7046_s1 + $0x58] sm:$0xff]  ;;  %v138_v52 = vld [vmem:[%s7046_s1 + $0x50] sm:$0xff]  ;;  %vm1518_vm7 = vcmp.eq.s32.totalorder %v1403_v59, %v4634_v42  ;;  %v1406_v57 = vpop.permute.xlu0 %1405  ;;  %vm1913_vm12 = vmand %vm4715_vm6, %vm1637_vm3  ;;  %v997_v59 = vadd.f32 %v4622_v33, %v4569_v62  ;;  %vm7053_vm6 = vcmask 7168  }
  0xd6   :  { %v325_v36 = vpop.f32.mrf.mxu0  ;;  %524 = vmatprep.subr.mxu1 %v139_v56  ;;  %v130_v49 = vld [vmem:[%s7046_s1 + $0x10] sm:$0xff]  ;;  %vm4748_vm10 = vmxor %vm1518_vm7, %vm7061_vm4  ;;  %vm1522_vm11 = vcmp.eq.s32.totalorder %v1406_v57, %v4634_v42 }
  0xd7   :  { %v1109_v40 = vmul.f32 2.0, %v325_v36  ;;  %v2161_v48 = vsel %vm1905_vm13, %v1233_v28, inf  ;;  %v2033_v58 = vsel %vm1649_vm15, %v1233_v28, -inf  ;;  %v135_v28 = vld [vmem:[%s7046_s1 + $0x38] sm:$0xff]  ;;  %525 = vmatpush1.msra.mxu1 %v138_v52  ;;  %vm1661_vm13 = vmand %vm1518_vm7, %vm1637_vm3 }
  0xd8   :  { %2583 = vmin.xlane.f32.xlu1 %v2161_v48  ;;  %2326 = vmax.xlane.f32.xlu0 %v2033_v58  ;;  %v327_v43 = vpop.f32.mrf.mxu0  ;;  %v134_v58 = vld [vmem:[%s7046_s1 + $0x30] sm:$0xff]  ;;  %v4766_v51 = vpop.permute.xlu1 %1408  ;;  %vm4771_vm14 = vmxor %vm1522_vm11, %vm7061_vm4 }
  0xd9   :  { %v1237_v53 = vsub.f32 %v981_v54, %v1109_v40  ;;  %526 = vmatprep.subr.mxu1 %v135_v28  ;;  %v131_v43 = vld [vmem:[%s7046_s1 + $0x18] sm:$0xff]  ;;  %vm1917_vm15 = vmand %vm4748_vm10, %vm1637_vm3  ;;  %vm1526_vm2 = vcmp.eq.s32.totalorder %v4766_v51, %v4634_v42 }
  0xda   :  { %v331_v30 = vpop.f32.mrf.mxu0  ;;  %527 = vmatpush1.msra.mxu1 %v134_v58  ;;  %vm1665_vm1 = vmand %vm1522_vm11, %vm1637_vm3 }
  0xdb   :  { %v1113_v36 = vmul.f32 2.0, %v331_v30  ;;  %v2037_v54 = vsel %vm1653_vm5, %v1237_v53, -inf  ;;  %v989_v30 = vadd.f32 %v4622_v33, %v4564_v60  ;;  %v2165_v28 = vsel %vm4724_vm8, %v1237_v53, inf  ;;  %528 = vmatprep.subr.mxu1 %v131_v43  ;;  %vm4799_vm5 = vmand %vm4771_vm14, %vm1637_vm3 }
  0xdc   :  { %2331 = vmax.xlane.f32.xlu0 %v2037_v54  ;;  %v333_v40 = vpop.f32.mrf.mxu0  ;;  %529 = vmatpush1.msra.mxu1 %v130_v49  ;;  %v993_v54 = vadd.f32 %v4622_v33, %v4571_v63  ;;  %vm4814_vm7 = vmand %vm1526_vm2, %vm1637_vm3 }
  0xdd   :  { %v1241_v48 = vsub.f32 %v985_v45, %v1113_v36  ;;  %3795 = vmatmul.mubr.msk.f32.vlgmr.msra.gmra.mxu1 %vm7059_vm0, %v4186_v14  ;;  %vm1797_vm8 = vmxor %vm1526_vm2, %vm7061_vm4 }
  0xde   :  { %v337_v56 = vpop.f32.mrf.mxu0  ;;  %568 = vmatprep.mubr.f32.mxu1 %v7074_v11 }
  0xdf   :  { %v1117_v52 = vmul.f32 2.0, %v337_v56  ;;  %v2041_v45 = vsel %vm1657_vm9, %v1241_v48, -inf  ;;  %v2169_v61 = vsel %vm1913_vm12, %v1241_v48, inf  ;;  %v4791_v56 = vpop.permute.xlu0 %1411  ;;  %vm1925_vm9 = vmand %vm1797_vm8, %vm1637_vm3 }
  0xe0   :  { %2588 = vmin.xlane.f32.xlu0 %v2165_v28  ;;  %2336 = vmax.xlane.f32.xlu1 %v2041_v45  ;;  %v339_v36 = vpop.f32.mrf.mxu0  ;;  %v4805_v28 = vpop.permute.xlu1 %1414  ;;  %vm1530_vm10 = vcmp.eq.s32.totalorder %v4791_v56, %v4634_v42 }
  0xe1   :  { %v1245_v60 = vsub.f32 %v989_v30, %v1117_v52  ;;  %3796 = vmatmul.mubr.msk.f32.gmra.mxu1 %vm7059_vm0, %v4200_v17  ;;  %v4100_v36 = vmov inf   ;;  %vm1673_vm11 = vmand %vm1530_vm10, %vm1637_vm3 }
  0xe2   :  { %v343_v53 = vpop.f32.mrf.mxu0  ;;  %574 = vmatprep.mubr.f32.mxu1 %v7074_v11  ;;  %64 = vst.msk [vmem:[#allocation3] sm:$0xff] %vm7053_vm6, %v4100_v36  ;;  %65 = vst.msk [vmem:[#allocation3 + $0x8] sm:$0xff] %vm7053_vm6, %v4100_v36 }
  0xe3   :  { %v1121_v40 = vmul.f32 2.0, %v343_v53  ;;  %v2045_v58 = vsel %vm1661_vm13, %v1245_v60, -inf  ;;  %v2173_v30 = vsel %vm1917_vm15, %v1245_v60, inf  ;;  %66 = vst.msk [vmem:[#allocation3 + $0x10] sm:$0xff] %vm7053_vm6, %v4100_v36  ;;  %67 = vst.msk [vmem:[#allocation3 + $0x18] sm:$0xff] %vm7053_vm6, %v4100_v36  ;;  %vm1534_vm13 = vcmp.eq.s32.totalorder %v4805_v28, %v4634_v42 }
  0xe4   :  { %2593 = vmin.xlane.f32.xlu1 %v2169_v61  ;;  %2341 = vmax.xlane.f32.xlu0 %v2045_v58  ;;  %v345_v14 = vpop.f32.mrf.mxu0  ;;  %68 = vst.msk [vmem:[#allocation3 + $0x20] sm:$0xff] %vm7053_vm6, %v4100_v36  ;;  %69 = vst.msk [vmem:[#allocation3 + $0x28] sm:$0xff] %vm7053_vm6, %v4100_v36  ;;  %v4903_v51 = vpop.permute.xlu1 %1420 }
  0xe5   :  { %v4779_v63 = vsub.f32 %v993_v54, %v1121_v40  ;;  %3797 = vmatmul.mubr.msk.f32.gmra.mxu1 %vm7059_vm0, %v4214_v20  ;;  %70 = vst.msk [vmem:[#allocation3 + $0x30] sm:$0xff] %vm7053_vm6, %v4100_v36  ;;  %71 = vst.msk [vmem:[#allocation3 + $0x38] sm:$0xff] %vm7053_vm6, %v4100_v36  ;;  %v4101_v20 = vmov -inf   ;;  %v4895_v40 = vpop.permute.xlu0 %1417  ;;  %vm7054_vm2 = vcmp.eq.s32.totalorder %v4903_v51, %v4634_v42 }
  0xe6   :  { %v349_v48 = vpop.f32.mrf.mxu0  ;;  %72 = vst.msk [vmem:[#allocation3 + $0x40] sm:$0xff] %vm7053_vm6, %v4100_v36  ;;  %73 = vst.msk [vmem:[#allocation3 + $0x48] sm:$0xff] %vm7053_vm6, %v4100_v36  ;;  %580 = vmatprep.mubr.f32.mxu1 %v7074_v11 }
  0xe7   :  { %v1125_v49 = vmul.f32 2.0, %v349_v48  ;;  %v2049_v52 = vsel %vm1665_vm1, %v4779_v63, -inf  ;;  %74 = vst.msk [vmem:[#allocation3 + $0x50] sm:$0xff] %vm7053_vm6, %v4100_v36  ;;  %75 = vst.msk [vmem:[#allocation3 + $0x58] sm:$0xff] %vm7053_vm6, %v4100_v36  ;;  %v2177_v60 = vsel %vm4799_vm5, %v4779_v63, inf  ;;  %vm1538_vm1 = vcmp.eq.s32.totalorder %v4895_v40, %v4634_v42 }
  0xe8   :  { %2598 = vmin.xlane.f32.xlu0 %v2173_v30  ;;  %2346 = vmax.xlane.f32.xlu1 %v2049_v52  ;;  %v351_v62 = vpop.f32.mrf.mxu0  ;;  %76 = vst.msk [vmem:[#allocation3 + $0x60] sm:$0xff] %vm7053_vm6, %v4100_v36  ;;  %77 = vst.msk [vmem:[#allocation3 + $0x68] sm:$0xff] %vm7053_vm6, %v4100_v36 }
  0xe9   :  { %v4803_v57 = vsub.f32 %v997_v59, %v1125_v49  ;;  %78 = vst.msk [vmem:[#allocation3 + $0x70] sm:$0xff] %vm7053_vm6, %v4100_v36  ;;  %79 = vst.msk [vmem:[#allocation3 + $0x78] sm:$0xff] %vm7053_vm6, %v4100_v36  ;;  %3798 = vmatmul.mubr.msk.f32.gmra.mxu1 %vm7059_vm0, %v4228_v23  ;;  %v4907_v63 = vpop.permute.xlu0 %1423  ;;  %v1001_v23 = vadd.f32 %v4622_v33, %v4575_v1  ;;  %v4913_v49 = vpop.permute.xlu1 %1426 }
  0xea   :  { %v4807_v45 = vpop.f32.mrf.mxu0  ;;  %80 = vst.msk [vmem:[#allocation3 + $0x80] sm:$0xff] %vm7053_vm6, %v4100_v36  ;;  %81 = vst.msk [vmem:[#allocation3 + $0x88] sm:$0xff] %vm7053_vm6, %v4100_v36  ;;  %586 = vmatprep.mubr.f32.mxu1 %v7074_v11 }
  0xeb   :  { %82 = vst.msk [vmem:[#allocation3 + $0x90] sm:$0xff] %vm7053_vm6, %v4100_v36  ;;  %83 = vst.msk [vmem:[#allocation3 + $0x98] sm:$0xff] %vm7053_vm6, %v4100_v36  ;;  %v2053_v53 = vsel %vm4814_vm7, %v4803_v57, -inf  ;;  %v2181_v58 = vsel %vm1925_vm9, %v4803_v57, inf  ;;  %v1129_v59 = vmul.f32 2.0, %v4807_v45  ;;  %vm7055_vm9 = vcmp.eq.s32.totalorder %v4907_v63, %v4634_v42 }
  0xec   :  { %84 = vst.msk [vmem:[#allocation3 + $0xa0] sm:$0xff] %vm7053_vm6, %v4100_v36  ;;  %85 = vst.msk [vmem:[#allocation3 + $0xa8] sm:$0xff] %vm7053_vm6, %v4100_v36  ;;  %2603 = vmin.xlane.f32.xlu1 %v2177_v60  ;;  %2351 = vmax.xlane.f32.xlu0 %v2053_v53  ;;  %v357_v54 = vpop.f32.mrf.mxu0 }
  0xed   :  { %86 = vst.msk [vmem:[#allocation3 + $0xb0] sm:$0xff] %vm7053_vm6, %v4100_v36  ;;  %87 = vst.msk [vmem:[#allocation3 + $0xb8] sm:$0xff] %vm7053_vm6, %v4100_v36  ;;  %3799 = vmatmul.mubr.msk.f32.gmra.mxu1 %vm7059_vm0, %v4242_v26  ;;  %v1257_v26 = vsub.f32 %v1001_v23, %v1129_v59  ;;  %v4922_v62 = vpop.permute.xlu0 %1429 }
  0xee   :  { %88 = vst.msk [vmem:[#allocation3 + $0xc0] sm:$0xff] %vm7053_vm6, %v4100_v36  ;;  %89 = vst.msk [vmem:[#allocation3 + $0xc8] sm:$0xff] %vm7053_vm6, %v4100_v36  ;;  %v361_v61 = vpop.f32.mrf.mxu0  ;;  %592 = vmatprep.mubr.f32.mxu1 %v7074_v11 }
  0xef   :  { %90 = vst.msk [vmem:[#allocation3 + $0xd0] sm:$0xff] %vm7053_vm6, %v4100_v36  ;;  %91 = vst.msk [vmem:[#allocation3 + $0xd8] sm:$0xff] %vm7053_vm6, %v4100_v36  ;;  %v1133_v1 = vmul.f32 2.0, %v361_v61  ;;  %v2057_v57 = vsel %vm1673_vm11, %v1257_v26, -inf }
  0xf0   :  { %92 = vst.msk [vmem:[#allocation3 + $0xe0] sm:$0xff] %vm7053_vm6, %v4100_v36  ;;  %93 = vst.msk [vmem:[#allocation3 + $0xe8] sm:$0xff] %vm7053_vm6, %v4100_v36  ;;  %2608 = vmin.xlane.f32.xlu0 %v2181_v58  ;;  %v363_v43 = vpop.f32.mrf.mxu0  ;;  %2356 = vmax.xlane.f32.xlu1 %v2057_v57 }
  0xf1   :  { %94 = vst.msk [vmem:[#allocation3 + $0xf0] sm:$0xff] %vm7053_vm6, %v4100_v36  ;;  %95 = vst.msk [vmem:[#allocation3 + $0xf8] sm:$0xff] %vm7053_vm6, %v4100_v36  ;;  %3800 = vmatmul.mubr.msk.f32.gmra.mxu1 %vm7059_vm0, %v4256_v29  ;;  %v4934_v29 = vpop.permute.xlu1 %1432 }
  0xf2   :  { %32 = vst.msk [vmem:[#allocation2] sm:$0xff] %vm7053_vm6, %v4101_v20  ;;  %33 = vst.msk [vmem:[#allocation2 + $0x8] sm:$0xff] %vm7053_vm6, %v4101_v20  ;;  %v367_v14 = vpop.f32.mrf.mxu0  ;;  %598 = vmatprep.mubr.f32.mxu1 %v7074_v11 }
  0xf3   :  { %34 = vst.msk [vmem:[#allocation2 + $0x10] sm:$0xff] %vm7053_vm6, %v4101_v20  ;;  %35 = vst.msk [vmem:[#allocation2 + $0x18] sm:$0xff] %vm7053_vm6, %v4101_v20  ;;  %v1137_v56 = vmul.f32 2.0, %v367_v14 }
  0xf4   :  { %36 = vst.msk [vmem:[#allocation2 + $0x20] sm:$0xff] %vm7053_vm6, %v4101_v20  ;;  %37 = vst.msk [vmem:[#allocation2 + $0x28] sm:$0xff] %vm7053_vm6, %v4101_v20  ;;  %v369_v48 = vpop.f32.mrf.mxu0 }
  0xf5   :  { %38 = vst.msk [vmem:[#allocation2 + $0x30] sm:$0xff] %vm7053_vm6, %v4101_v20  ;;  %39 = vst.msk [vmem:[#allocation2 + $0x38] sm:$0xff] %vm7053_vm6, %v4101_v20  ;;  %3801 = vmatmul.mubr.msk.f32.gmra.mxu1 %vm7059_vm0, %v4270_v32  ;;  %v4946_v32 = vpop.permute.xlu0 %1435  ;;  %v1439_v0 = vpop.permute.xlu1 %1438  ;;  %v1069_v48 = vadd.f32 %v4622_v33, %v4605_v21 }
  0xf6   :  { %40 = vst.msk [vmem:[#allocation2 + $0x40] sm:$0xff] %vm7053_vm6, %v4101_v20  ;;  %41 = vst.msk [vmem:[#allocation2 + $0x48] sm:$0xff] %vm7053_vm6, %v4101_v20  ;;  %v4915_v30 = vpop.f32.mrf.mxu0  ;;  %604 = vmatprep.mubr.f32.mxu1 %v7074_v11  ;;  %vm1566_vm5 = vcmp.eq.s32.totalorder %v1439_v0, %v4634_v42 }
  0xf7   :  { %42 = vst.msk [vmem:[#allocation2 + $0x50] sm:$0xff] %vm7053_vm6, %v4101_v20  ;;  %43 = vst.msk [vmem:[#allocation2 + $0x58] sm:$0xff] %vm7053_vm6, %v4101_v20  ;;  %v1141_v57 = vmul.f32 2.0, %v4915_v30  ;;  %v1013_v30 = vadd.f32 %v4622_v33, %v4577_v2  ;;  %v1037_v2 = vadd.f32 %v4622_v33, %v4589_v8  ;;  %v1017_v8 = vadd.f32 %v4622_v33, %v4583_v5 }
  0xf8   :  { %44 = vst.msk [vmem:[#allocation2 + $0x60] sm:$0xff] %vm7053_vm6, %v4101_v20  ;;  %45 = vst.msk [vmem:[#allocation2 + $0x68] sm:$0xff] %vm7053_vm6, %v4101_v20  ;;  %v375_v52 = vpop.f32.mrf.mxu0  ;;  %v7125_v5 = vmov 0 }
  0xf9   :  { %46 = vst.msk [vmem:[#allocation2 + $0x70] sm:$0xff] %vm7053_vm6, %v4101_v20  ;;  %47 = vst.msk [vmem:[#allocation2 + $0x78] sm:$0xff] %vm7053_vm6, %v4101_v20  ;;  %3802 = vmatmul.mubr.msk.f32.gmra.mxu1 %vm7059_vm0, %v4284_v35  ;;  %v1442_v58 = vpop.permute.xlu0 %1441  ;;  %v1445_v14 = vpop.permute.xlu1 %1444 }
  0xfa   :  { %48 = vst.msk [vmem:[#allocation2 + $0x80] sm:$0xff] %vm7053_vm6, %v4101_v20  ;;  %49 = vst.msk [vmem:[#allocation2 + $0x88] sm:$0xff] %vm7053_vm6, %v4101_v20  ;;  %v4924_v17 = vpop.f32.mrf.mxu0  ;;  %610 = vmatprep.mubr.f32.mxu1 %v7074_v11 }
  0xfb   :  { %50 = vst.msk [vmem:[#allocation2 + $0x90] sm:$0xff] %vm7053_vm6, %v4101_v20  ;;  %51 = vst.msk [vmem:[#allocation2 + $0x98] sm:$0xff] %vm7053_vm6, %v4101_v20  ;;  %v1145_v0 = vmul.f32 2.0, %v4924_v17  ;;  %v4051_v17 = vld [vmem:[%s7045_s0 + $0xf0] sm:$0xff] }
  0xfc   :  { %52 = vst.msk [vmem:[#allocation2 + $0xa0] sm:$0xff] %vm7053_vm6, %v4101_v20  ;;  %53 = vst.msk [vmem:[#allocation2 + $0xa8] sm:$0xff] %vm7053_vm6, %v4101_v20  ;;  %v381_v45 = vpop.f32.mrf.mxu0 }
  0xfd   :  { %54 = vst.msk [vmem:[#allocation2 + $0xb0] sm:$0xff] %vm7053_vm6, %v4101_v20  ;;  %55 = vst.msk [vmem:[#allocation2 + $0xb8] sm:$0xff] %vm7053_vm6, %v4101_v20  ;;  %3803 = vmatmul.mubr.msk.f32.gmra.mxu1 %vm7059_vm0, %v4298_v38  ;;  %v1009_v38 = vadd.f32 %v4622_v33, %v4579_v3  ;;  %v5024_v52 = vpop.permute.xlu0 %1447 }
  0xfe   :  { %56 = vst.msk [vmem:[#allocation2 + $0xc0] sm:$0xff] %vm7053_vm6, %v4101_v20  ;;  %57 = vst.msk [vmem:[#allocation2 + $0xc8] sm:$0xff] %vm7053_vm6, %v4101_v20  ;;  %v4938_v36 = vpop.f32.mrf.mxu0  ;;  %616 = vmatprep.mubr.f32.mxu1 %v7074_v11 }
  0xff   :  { %58 = vst.msk [vmem:[#allocation2 + $0xd0] sm:$0xff] %vm7053_vm6, %v4101_v20  ;;  %59 = vst.msk [vmem:[#allocation2 + $0xd8] sm:$0xff] %vm7053_vm6, %v4101_v20 }
 0x100   :  { %60 = vst.msk [vmem:[#allocation2 + $0xe0] sm:$0xff] %vm7053_vm6, %v4101_v20  ;;  %61 = vst.msk [vmem:[#allocation2 + $0xe8] sm:$0xff] %vm7053_vm6, %v4101_v20  ;;  %v387_v60 = vpop.f32.mrf.mxu0 }
 0x101   :  { %62 = vst.msk [vmem:[#allocation2 + $0xf0] sm:$0xff] %vm7053_vm6, %v4101_v20  ;;  %63 = vst.msk [vmem:[#allocation2 + $0xf8] sm:$0xff] %vm7053_vm6, %v4101_v20  ;;  %v1261_v20 = vsub.f32 %v1005_v55, %v1133_v1  ;;  %3804 = vmatmul.mubr.msk.f32.gmra.mxu1 %vm7059_vm0, %v4312_v41  ;;  %v4989_v41 = vsub.f32 %v1009_v38, %v1137_v56  ;;  %v7119_v56 = vmov 0 }
 0x102   :  { %vm1801_vm12 = vmxor %vm1530_vm10, %vm7061_vm4  ;;  %v4953_v53 = vpop.f32.mrf.mxu0  ;;  %622 = vmatprep.mubr.f32.mxu1 %v7074_v11 }
 0x103   :  { %vm1929_vm14 = vmand %vm1801_vm12, %vm1637_vm3  ;;  %vm7056_vm12 = vcmp.eq.s32.totalorder %v4913_v49, %v4634_v42 }
 0x104   :  { %v2185_v35 = vsel %vm1929_vm14, %v1257_v26, inf  ;;  %vm1677_vm15 = vmand %vm1534_vm13, %vm1637_vm3  ;;  %v393_v61 = vpop.f32.mrf.mxu0  ;;  %vm1570_vm14 = vcmp.eq.s32.totalorder %v1442_v58, %v4634_v42  ;;  %v1149_v58 = vmul.f32 2.0, %v4938_v36  ;;  %v1021_v36 = vadd.f32 %v4622_v33, %v4581_v4 }
 0x105   :  { %2613 = vmin.xlane.f32.xlu1 %v2185_v35  ;;  %v2061_v54 = vsel %vm1677_vm15, %v1261_v20, -inf  ;;  %vm1805_vm7 = vmxor %vm1534_vm13, %vm7061_vm4  ;;  %3805 = vmatmul.mubr.msk.f32.gmra.mxu1 %vm7059_vm0, %v4326_v44  ;;  %v1269_v61 = vsub.f32 %v1013_v30, %v1141_v57  ;;  %v1041_v57 = vadd.f32 %v4622_v33, %v4595_v12  ;;  %v5147_v4 = vsub.f32 %v1017_v8, %v1145_v0 }
 0x106   :  { %2361 = vmax.xlane.f32.xlu0 %v2061_v54  ;;  %v4970_v43 = vpop.f32.mrf.mxu0  ;;  %vm4983_vm8 = vmxor %vm1538_vm1, %vm7061_vm4  ;;  %628 = vmatprep.mubr.f32.mxu1 %v7074_v11  ;;  %v1153_v12 = vmul.f32 2.0, %v4953_v53  ;;  %v5183_v0 = vsub.f32 %v1021_v36, %v1149_v58  ;;  %v1073_v44 = vadd.f32 %v4622_v33, %v4614_v27 }
 0x107   :  { %vm4995_vm10 = vmxor %vm7054_vm2, %vm7061_vm4  ;;  %vm7058_vm2 = vcmp.eq.s32.totalorder %v4922_v62, %v4634_v42 }
 0x108   :  { %v399_v59 = vpop.f32.mrf.mxu0  ;;  %vm1837_vm11 = vmxor %vm1566_vm5, %vm7061_vm4 }
 0x109   :  { %vm5004_vm13 = vmand %vm1566_vm5, %vm1637_vm3  ;;  %vm7057_vm5 = vcmp.eq.s32.totalorder %v1445_v14, %v4634_v42  ;;  %3806 = vmatmul.mubr.msk.f32.gmra.mxu1 %vm7059_vm0, %v4340_v47  ;;  %v4034_v59 = vld [vmem:[%s7045_s0 + $0x68] sm:$0xff] }
 0x10a   :  { %vm1933_vm15 = vmand %vm1805_vm7, %vm1637_vm3  ;;  %v5011_v23 = vpop.f32.mrf.mxu0  ;;  %634 = vmatprep.mubr.f32.mxu1 %v7074_v11 }
 0x10b   :  { %vm5019_vm6 = vmxor %vm7055_vm9, %vm7061_vm4  ;;  %v2189_v1 = vsel %vm1933_vm15, %v1261_v20, inf  ;;  %vm7060_vm15 = vcmp.eq.s32.totalorder %v4934_v29, %v4634_v42  ;;  %v1161_v58 = vmul.f32 2.0, %v5011_v23 }
 0x10c   :  { %vm1681_vm7 = vmand %vm1538_vm1, %vm1637_vm3  ;;  %2618 = vmin.xlane.f32.xlu0 %v2189_v1  ;;  %v405_v55 = vpop.f32.mrf.mxu0 }
 0x10d   :  { %vm5036_vm9 = vmand %vm1837_vm11, %vm1637_vm3  ;;  %v2065_v45 = vsel %vm1681_vm7, %v4989_v41, -inf  ;;  %v7133_v55 = vmov 0 }
 0x10e   :  { %vm5046_vm1 = vmxor %vm7056_vm12, %vm7061_vm4  ;;  %2366 = vmax.xlane.f32.xlu1 %v2065_v45  ;;  %v409_v35 = vpop.f32.mrf.mxu0  ;;  %v7131_v45 = vmov 0 }
 0x10f   :  { %vm5053_vm11 = vmxor %vm1570_vm14, %vm7061_vm4  ;;  %v1165_v47 = vmul.f32 2.0, %v409_v35  ;;  %v1157_v35 = vmul.f32 2.0, %v4970_v43  ;;  %v1045_v43 = vadd.f32 %v4622_v33, %v4593_v10 }
 0x110   :  { %vm5064_vm7 = vmxor %vm7057_vm5, %vm7061_vm4  ;;  %v411_v38 = vpop.f32.mrf.mxu0 }
 0x111   :  { %vm5079_vm5 = vmxor %vm7058_vm2, %vm7061_vm4  ;;  %vm7127_vm2 = vcmp.eq.s32.totalorder %v5024_v52, %v4634_v42  ;;  %v5121_v1 = vsub.f32 %v1037_v2, %v1165_v47  ;;  %v1029_v47 = vadd.f32 %v4622_v33, %v4585_v6 }
 0x112   :  { %v7120_v56 = vsel %vm5079_vm5, 4294967295, %v7119_v56  ;;  %vm5087_vm12 = vmand %vm1570_vm14, %vm1637_vm3 }
 0x113   :  { %vm5100_vm0 = vmand %vm5053_vm11, %vm1637_vm3  ;;  %v2221_v3 = vsel %vm5036_vm9, %v5121_v1, inf }
 0x114   :  { %vm5109_vm14 = vmxor %vm7060_vm15, %vm7061_vm4  ;;  %vm7130_vm15 = vcmp.eq.s32.totalorder %v1445_v14, %v4634_v42  ;;  %v415_v14 = vpop.f32.mrf.mxu0 }
 0x115   :  { %v7126_v5 = vsel %vm5109_vm14, 4294967295, %v7125_v5  ;;  %vm5117_vm11 = vmxor %vm7127_vm2, %vm7061_vm4  ;;  %v1169_v53 = vmul.f32 2.0, %v415_v14 }
 0x116   :  { %vm5131_vm14 = vmand %vm7130_vm15, %vm1637_vm3  ;;  %vm7135_vm15 = vcmask 261120   ;;  %v417_v2 = vpop.f32.mrf.mxu0 }
 0x117   :  { %v7132_v45 = vsel %vm5131_vm14, 4294967295, %v7131_v45  ;;  %vm5139_vm2 = vmand %vm5064_vm7, %vm1637_vm3  ;;  %3807 = vmatmul.mubr.msk.f32.gmra.mxu1 %vm7135_vm15, %v4354_v50  ;;  %vm7136_vm14 = vmmov 1   ;;  %vm7137_vm7 = vcmp.eq.s32.totalorder %v4946_v32, %v4634_v42  ;;  %v2093_v50 = vsel %vm5004_vm13, %v5121_v1, -inf }
 0x118   :  { %v7134_v55 = vsel %vm5139_vm2, 4294967295, %v7133_v55  ;;  %vm1937_vm4 = vmand %vm4983_vm8, %vm1637_vm3  ;;  %vm7140_vm8 = vcmp.eq.s32.totalorder %v4903_v51, %v4634_v42  ;;  %640 = vmatprep.mubr.f32.mxu1 %v7074_v11  ;;  %v5199_v8 = vsub.f32 %v1041_v57, %v1169_v53  ;;  %vm7146_vm15 = vcmp.eq.s32.totalorder %v5024_v52, %v4634_v42  ;;  %v421_v38 = vpop.f32.mrf.mxu0 }
 0x119   :  { %vm5156_vm5 = vmxor %vm7137_vm7, %vm7136_vm14  ;;  %v2193_v30 = vsel %vm1937_vm4, %v4989_v41, inf  ;;  %v1025_v41 = vadd.f32 %v4622_v33, %v4587_v7  ;;  %v1173_v23 = vmul.f32 2.0, %v421_v38  ;;  %v1049_v51 = vadd.f32 %v4622_v33, %v4599_v15 }
 0x11a   :  { %vm1685_vm2 = vmand %vm7140_vm8, %vm1637_vm3  ;;  %2623 = vmin.xlane.f32.xlu1 %v2193_v30  ;;  %v2097_v57 = vsel %vm5087_vm12, %v5199_v8, -inf  ;;  %v5270_v30 = vsub.f32 %v1029_v47, %v1157_v35  ;;  %v423_v53 = vpop.f32.mrf.mxu0  ;;  %v4035_v47 = vld [vmem:[%s7045_s0 + $0x70] sm:$0xff] }
 0x11b   :  { %v2069_v60 = vsel %vm1685_vm2, %v1269_v61, -inf  ;;  %vm5179_vm4 = vmand %vm4995_vm10, %vm1637_vm3  ;;  %vm7143_vm10 = vcmp.eq.s32.totalorder %v4907_v63, %v4634_v42 }
 0x11c   :  { %2371 = vmax.xlane.f32.xlu0 %v2069_v60  ;;  %v2197_v7 = vsel %vm5179_vm4, %v1269_v61, inf  ;;  %vm5195_vm2 = vmand %vm7143_vm10, %vm1637_vm3  ;;  %v5231_v61 = vsub.f32 %v1025_v41, %v1153_v12  ;;  %v2225_v12 = vsel %vm5100_vm0, %v5199_v8, inf  ;;  %v1451_v41 = vpop.permute.xlu1 %1450  ;;  %v5284_v60 = vsub.f32 %v1045_v43, %v1173_v23  ;;  %v427_v2 = vpop.f32.mrf.mxu0  ;;  %v4036_v23 = vld [vmem:[%s7045_s0 + $0x78] sm:$0xff] }
 0x11d   :  { %vm5208_vm7 = vmand %vm7146_vm15, %vm1637_vm3  ;;  %v2073_v10 = vsel %vm5195_vm2, %v5147_v4, -inf  ;;  %vm7159_vm15 = vcmp.eq.s32.totalorder %v4922_v62, %v4634_v42 }
 0x11e   :  { %vm5216_vm8 = vmand %vm5117_vm11, %vm1637_vm3  ;;  %vm7153_vm11 = vcmask 261120   ;;  %2376 = vmax.xlane.f32.xlu1 %v2073_v10  ;;  %v429_v52 = vpop.f32.mrf.mxu0 }
 0x11f   :  { %vm5227_vm4 = vmand %vm5019_vm6, %vm1637_vm3  ;;  %3808 = vmatmul.mubr.msk.f32.gmra.mxu1 %vm7153_vm11, %v4034_v59  ;;  %vm7154_vm6 = vcmp.eq.s32.totalorder %v4913_v49, %v4634_v42  ;;  %v1053_v59 = vadd.f32 %v4622_v33, %v4597_v13  ;;  %v4038_v52 = vld [vmem:[%s7045_s0 + $0x88] sm:$0xff] }
 0x120   :  { %v2201_v36 = vsel %vm5227_vm4, %v5147_v4, inf  ;;  %vm5246_vm10 = vmand %vm7154_vm6, %vm1637_vm3  ;;  %646 = vmatprep.mubr.f32.mxu1 %v7074_v11  ;;  %v1033_v4 = vadd.f32 %v4622_v33, %v4591_v9  ;;  %2628 = vmin.xlane.f32.xlu0 %v2197_v7  ;;  %vm7165_vm6 = vcmask 261120   ;;  %v1177_v7 = vmul.f32 2.0, %v427_v2  ;;  %v1457_v53 = vpop.permute.xlu1 %1456 }
 0x121   :  { %v2077_v49 = vsel %vm5246_vm10, %v5183_v0, -inf  ;;  %vm5266_vm2 = vmand %vm5046_vm1, %vm1637_vm3  ;;  %vm7162_vm1 = vnez %v7120_v56  ;;  %vm7166_vm10 = vcmp.eq.s32.totalorder %v4934_v29, %v4634_v42 }
 0x122   :  { %v2205_v9 = vsel %vm5266_vm2, %v5183_v0, inf  ;;  %vm5280_vm4 = vmand %vm7159_vm15, %vm1637_vm3  ;;  %v5299_v62 = vsub.f32 %v1033_v4, %v1161_v58  ;;  %vm7169_vm15 = vnez %v7132_v45  ;;  %2633 = vmin.xlane.f32.xlu1 %v2201_v36  ;;  %v4037_v0 = vld [vmem:[%s7045_s0 + $0x80] sm:$0xff]  ;;  %v1077_v45 = vadd.f32 %v4622_v33, %v4612_v25 }
 0x123   :  { %v2081_v35 = vsel %vm5280_vm4, %v5231_v61, -inf  ;;  %vm5295_vm11 = vmand %vm7162_vm1, %vm1637_vm3  ;;  %3809 = vmatmul.mubr.msk.f32.gmra.mxu1 %vm7165_vm6, %v4035_v47  ;;  %v2101_v28 = vsel %vm7169_vm15, %v5284_v60, -inf  ;;  %vm7170_vm4 = vnez %v7134_v55  ;;  %vm1582_vm1 = vcmp.eq.s32.totalorder %v1451_v41, %v4634_v42 }
 0x124   :  { %v2209_v15 = vsel %vm5295_vm11, %v5231_v61, inf  ;;  %vm5313_vm2 = vmand %vm7166_vm10, %vm1637_vm3  ;;  %v2229_v43 = vsel %vm7170_vm4, %v5284_v60, inf  ;;  %652 = vmatprep.mubr.f32.mxu1 %v7074_v11  ;;  %vm7171_vm11 = vnez %v7126_v5  ;;  %v1454_v61 = vpop.permute.xlu0 %1453  ;;  %2381 = vmax.xlane.f32.xlu0 %v2077_v49  ;;  %vm7174_vm10 = vcmp.eq.s32.totalorder %v4946_v32, %v4634_v42  ;;  %v433_v32 = vpop.f32.mrf.mxu0 }
 0x125   :  { %v2085_v29 = vsel %vm5313_vm2, %v5270_v30, -inf  ;;  %vm5332_vm6 = vmand %vm7171_vm11, %vm1637_vm3  ;;  %v5348_v5 = vsub.f32 %v1049_v51, %v1177_v7  ;;  %v1181_v20 = vmul.f32 2.0, %v433_v32  ;;  %v1057_v41 = vadd.f32 %v4622_v33, %v4603_v18  ;;  %v1463_v32 = vpop.permute.xlu1 %1462 }
 0x126   :  { %v2213_v58 = vsel %vm5332_vm6, %v5270_v30, inf  ;;  %vm5344_vm2 = vmand %vm7174_vm10, %vm1637_vm3  ;;  %vm7179_vm6 = vcmask 261120   ;;  %2386 = vmax.xlane.f32.xlu1 %v2081_v35  ;;  %v435_v14 = vpop.f32.mrf.mxu0  ;;  %vm7203_vm13 = vcmp.eq.s32.totalorder %v1463_v32, %v4634_v42  ;;  %v4041_v32 = vld [vmem:[%s7045_s0 + $0xa0] sm:$0xff]  ;;  %v1081_v55 = vadd.f32 %v4622_v33, %v4624_v34 }
 0x127   :  { %v2089_v36 = vsel %vm5344_vm2, %v5299_v62, -inf  ;;  %vm5359_vm11 = vmand %vm5156_vm5, %vm1637_vm3  ;;  %3810 = vmatmul.mubr.msk.f32.gmra.mxu1 %vm7179_vm6, %v4036_v23  ;;  %v2105_v4 = vsel %vm5208_vm7, %v5348_v5, -inf  ;;  %v2233_v49 = vsel %vm5216_vm8, %v5348_v5, inf  ;;  %vm1586_vm5 = vcmp.eq.s32.totalorder %v1454_v61, %v4634_v42  ;;  %v4039_v14 = vld [vmem:[%s7045_s0 + $0x90] sm:$0xff] }
 0x128   :  { %vm1853_vm10 = vmxor %vm1582_vm1, %vm7136_vm14  ;;  %v2217_v13 = vsel %vm5359_vm11, %v5299_v62, inf  ;;  %658 = vmatprep.mubr.f32.mxu1 %v7074_v11  ;;  %2638 = vmin.xlane.f32.xlu0 %v2205_v9  ;;  %v5389_v40 = vsub.f32 %v1053_v59, %v1181_v20  ;;  %v439_v35 = vpop.f32.mrf.mxu0  ;;  %v1460_v56 = vpop.permute.xlu0 %1459  ;;  %v1061_v61 = vadd.f32 %v4622_v33, %v4601_v16  ;;  %v1085_v30 = vadd.f32 %v4622_v33, %v4620_v31  ;;  %v4049_v20 = vld [vmem:[%s7045_s0 + $0xe0] sm:$0xff] }
 0x129   :  { %vm5385_vm2 = vmand %vm1582_vm1, %vm1637_vm3  ;;  %v1185_v9 = vmul.f32 2.0, %v439_v35  ;;  %v1089_v51 = vadd.f32 %v4622_v33, %v4629_v39 }
 0x12a   :  { %vm5393_vm11 = vmand %vm1853_vm10, %vm1637_vm3  ;;  %v2109_v62 = vsel %vm5385_vm2, %v5389_v40, -inf  ;;  %2643 = vmin.xlane.f32.xlu1 %v2209_v15  ;;  %v441_v47 = vpop.f32.mrf.mxu0  ;;  %vm7188_vm10 = vcmask 261120  }
 0x12b   :  { %3811 = vmatmul.mubr.msk.f32.gmra.mxu1 %vm7179_vm6, %v4037_v0  ;;  %vm1857_vm1 = vmxor %vm1586_vm5, %vm7136_vm14  ;;  %v2237_v2 = vsel %vm5393_vm11, %v5389_v40, inf  ;;  %v5422_v7 = vsub.f32 %v1057_v41, %v1185_v9 }
 0x12c   :  { %664 = vmatprep.mubr.f32.mxu1 %v7074_v11  ;;  %vm5418_vm6 = vmand %vm1586_vm5, %vm1637_vm3  ;;  %2391 = vmax.xlane.f32.xlu0 %v2085_v29  ;;  %v445_v15 = vpop.f32.mrf.mxu0  ;;  %vm7189_vm5 = vcmp.eq.s32.totalorder %v1457_v53, %v4634_v42  ;;  %v1065_v53 = vadd.f32 %v4622_v33, %v4607_v22  ;;  %v1466_v9 = vpop.permute.xlu0 %1465 }
 0x12d   :  { %vm5426_vm11 = vmand %vm1857_vm1, %vm1637_vm3  ;;  %v1189_v29 = vmul.f32 2.0, %v445_v15  ;;  %v2113_v38 = vsel %vm5418_vm6, %v5422_v7, -inf  ;;  %vm7195_vm1 = vcmask 261120  }
 0x12e   :  { %vm1861_vm2 = vmxor %vm7189_vm5, %vm7136_vm14  ;;  %v2241_v59 = vsel %vm5426_vm11, %v5422_v7, inf  ;;  %2396 = vmax.xlane.f32.xlu1 %v2089_v36  ;;  %v447_v26 = vpop.f32.mrf.mxu0 }
 0x12f   :  { %3812 = vmatmul.mubr.msk.f32.gmra.mxu1 %vm7188_vm10, %v4038_v52  ;;  %vm7190_vm10 = vmmov %vm7189_vm5  ;;  %v5455_v23 = vsub.f32 %v1061_v61, %v1189_v29  ;;  %v1469_v26 = vpop.permute.xlu1 %1468 }
 0x130   :  { %670 = vmatprep.mubr.f32.mxu1 %v7074_v11  ;;  %vm5451_vm5 = vmand %vm7190_vm10, %vm1637_vm3  ;;  %2648 = vmin.xlane.f32.xlu0 %v2213_v58  ;;  %v451_v36 = vpop.f32.mrf.mxu0  ;;  %vm7196_vm10 = vcmp.eq.s32.totalorder %v1460_v56, %v4634_v42  ;;  %v4040_v56 = vld [vmem:[%s7045_s0 + $0x98] sm:$0xff] }
 0x131   :  { %vm5459_vm11 = vmand %vm1861_vm2, %vm1637_vm3  ;;  %v1193_v58 = vmul.f32 2.0, %v451_v36  ;;  %v2117_v35 = vsel %vm5451_vm5, %v5455_v23, -inf }
 0x132   :  { %vm1865_vm6 = vmxor %vm7196_vm10, %vm7136_vm14  ;;  %v2245_v0 = vsel %vm5459_vm11, %v5455_v23, inf  ;;  %2653 = vmin.xlane.f32.xlu1 %v2217_v13  ;;  %v453_v41 = vpop.f32.mrf.mxu0  ;;  %v2281_v13 = vld [vmem:[#allocation2] sm:$0xff] }
 0x133   :  { %3813 = vmatmul.mubr.msk.f32.gmra.mxu1 %vm7195_vm1, %v4039_v14  ;;  %vm7197_vm1 = vmmov %vm7196_vm10  ;;  %v5492_v47 = vsub.f32 %v1065_v53, %v1193_v58  ;;  %v1472_v58 = vpop.permute.xlu0 %1471 }
 0x134   :  { %676 = vmatprep.mubr.f32.mxu1 %v7074_v11  ;;  %vm5484_vm10 = vmand %vm7197_vm1, %vm1637_vm3  ;;  %2401 = vmax.xlane.f32.xlu0 %v2093_v50  ;;  %v457_v15 = vpop.f32.mrf.mxu0  ;;  %vm7202_vm1 = vcmask 261120  }
 0x135   :  { %vm5496_vm2 = vmand %vm1865_vm6, %vm1637_vm3  ;;  %v1197_v50 = vmul.f32 2.0, %v457_v15  ;;  %v2121_v52 = vsel %vm5484_vm10, %v5492_v47, -inf  ;;  %vm1602_vm6 = vcmp.eq.s32.totalorder %v1466_v9, %v4634_v42 }
 0x136   :  { %vm1869_vm11 = vmxor %vm7203_vm13, %vm7136_vm14  ;;  %v2249_v61 = vsel %vm5496_vm2, %v5492_v47, inf  ;;  %2406 = vmax.xlane.f32.xlu1 %v2097_v57  ;;  %v459_v21 = vpop.f32.mrf.mxu0  ;;  %v2538_v47 = vld [vmem:[#allocation3] sm:$0xff] }
 0x137   :  { %3814 = vmatmul.mubr.msk.f32.gmra.mxu1 %vm7202_vm1, %v4040_v56  ;;  %vm7204_vm1 = vmmov %vm7203_vm13  ;;  %v5533_v36 = vsub.f32 %v1069_v48, %v1197_v50  ;;  %v1475_v48 = vpop.permute.xlu1 %1474  ;;  %v4043_v21 = vld [vmem:[%s7045_s0 + $0xb0] sm:$0xff] }
 0x138   :  { %682 = vmatprep.mubr.f32.mxu1 %v7074_v11  ;;  %vm5525_vm13 = vmand %vm7204_vm1, %vm1637_vm3  ;;  %2658 = vmin.xlane.f32.xlu0 %v2221_v3  ;;  %v463_v57 = vpop.f32.mrf.mxu0  ;;  %vm7209_vm1 = vcmask 261120   ;;  %v2540_v56 = vld [vmem:[#allocation3 + $0x10] sm:$0xff] }
 0x139   :  { %vm5537_vm12 = vmand %vm1869_vm11, %vm1637_vm3  ;;  %v1201_v1 = vmul.f32 2.0, %v463_v57  ;;  %v2125_v3 = vsel %vm5525_vm13, %v5533_v36, -inf  ;;  %vm1606_vm11 = vcmp.eq.s32.totalorder %v1469_v26, %v4634_v42 }
 0x13a   :  { %vm1873_vm9 = vmxor %vm1602_vm6, %vm7136_vm14  ;;  %v2253_v14 = vsel %vm5537_vm12, %v5533_v36, inf  ;;  %2663 = vmin.xlane.f32.xlu1 %v2225_v12  ;;  %v465_v27 = vpop.f32.mrf.mxu0  ;;  %v4042_v12 = vld [vmem:[%s7045_s0 + $0xa8] sm:$0xff] }
 0x13b   :  { %3815 = vmatmul.mubr.msk.f32.gmra.mxu1 %vm7209_vm1, %v4041_v32  ;;  %vm5566_vm1 = vmand %vm1602_vm6, %vm1637_vm3  ;;  %v5574_v41 = vsub.f32 %v1073_v44, %v1201_v1  ;;  %vm7214_vm6 = vcmask 261120   ;;  %v1478_v32 = vpop.permute.xlu0 %1477 }
 0x13c   :  { %688 = vmatprep.mubr.f32.mxu1 %v7074_v11  ;;  %2411 = vmax.xlane.f32.xlu0 %v2101_v28  ;;  %vm5578_vm0 = vmand %vm1873_vm9, %vm1637_vm3  ;;  %v469_v8 = vpop.f32.mrf.mxu0  ;;  %vm1610_vm9 = vcmp.eq.s32.totalorder %v1472_v58, %v4634_v42 }
 0x13d   :  { %vm1877_vm15 = vmxor %vm1606_vm11, %vm7136_vm14  ;;  %v1205_v28 = vmul.f32 2.0, %v469_v8  ;;  %v2129_v9 = vsel %vm5566_vm1, %v5574_v41, -inf  ;;  %v2257_v15 = vsel %vm5578_vm0, %v5574_v41, inf  ;;  %v1481_v8 = vpop.permute.xlu1 %1480 }
 0x13e   :  { %2416 = vmax.xlane.f32.xlu1 %v2105_v4  ;;  %v471_v25 = vpop.f32.mrf.mxu0  ;;  %vm5619_vm7 = vmand %vm1877_vm15, %vm1637_vm3  ;;  %vm1614_vm15 = vcmp.eq.s32.totalorder %v1475_v48, %v4634_v42 }
 0x13f   :  { %3816 = vmatmul.mubr.msk.f32.gmra.mxu1 %vm7214_vm6, %v4042_v12  ;;  %vm5607_vm6 = vmand %vm1606_vm11, %vm1637_vm3  ;;  %v5615_v50 = vsub.f32 %v1077_v45, %v1205_v28  ;;  %vm7219_vm11 = vcmask 261120   ;;  %v4045_v45 = vld [vmem:[%s7045_s0 + $0xc0] sm:$0xff] }
 0x140   :  { %694 = vmatprep.mubr.f32.mxu1 %v7074_v11  ;;  %2668 = vmin.xlane.f32.xlu0 %v2229_v43  ;;  %v475_v4 = vpop.f32.mrf.mxu0  ;;  %vm1881_vm4 = vmxor %vm1610_vm9, %vm7136_vm14 }
 0x141   :  { %v1209_v60 = vmul.f32 2.0, %v475_v4  ;;  %v2133_v43 = vsel %vm5607_vm6, %v5615_v50, -inf  ;;  %v2261_v26 = vsel %vm5619_vm7, %v5615_v50, inf  ;;  %vm5660_vm8 = vmand %vm1881_vm4, %vm1637_vm3  ;;  %vm1618_vm4 = vcmp.eq.s32.totalorder %v1478_v32, %v4634_v42  ;;  %v2283_v50 = vld [vmem:[#allocation2 + $0x10] sm:$0xff] }
 0x142   :  { %2673 = vmin.xlane.f32.xlu1 %v2233_v49  ;;  %v477_v34 = vpop.f32.mrf.mxu0  ;;  %v4044_v49 = vld [vmem:[%s7045_s0 + $0xb8] sm:$0xff]  ;;  %vm1885_vm7 = vmxor %vm1614_vm15, %vm7136_vm14 }
 0x143   :  { %3817 = vmatmul.mubr.msk.f32.gmra.mxu1 %vm7219_vm11, %v4043_v21  ;;  %vm5648_vm11 = vmand %vm1610_vm9, %vm1637_vm3  ;;  %v5656_v44 = vsub.f32 %v1081_v55, %v1209_v60  ;;  %vm7225_vm9 = vcmask 261120   ;;  %v2284_v34 = vld [vmem:[#allocation2 + $0x18] sm:$0xff] }
 0x144   :  { %700 = vmatprep.mubr.f32.mxu1 %v7074_v11  ;;  %2421 = vmax.xlane.f32.xlu0 %v2109_v62  ;;  %v481_v5 = vpop.f32.mrf.mxu0  ;;  %vm5689_vm6 = vmand %vm1614_vm15, %vm1637_vm3  ;;  %vm7232_vm15 = vcmask 261120  }
 0x145   :  { %v1213_v62 = vmul.f32 2.0, %v481_v5  ;;  %v2137_v1 = vsel %vm5648_vm11, %v5656_v44, -inf  ;;  %v2265_v27 = vsel %vm5660_vm8, %v5656_v44, inf  ;;  %vm1889_vm11 = vmxor %vm1618_vm4, %vm7136_vm14 }
 0x146   :  { %2426 = vmax.xlane.f32.xlu1 %v2113_v38  ;;  %v483_v31 = vpop.f32.mrf.mxu0  ;;  %vm5730_vm8 = vmand %vm1618_vm4, %vm1637_vm3  ;;  %vm7238_vm4 = vcmask 261120  }
 0x147   :  { %3818 = vmatmul.mubr.msk.f32.gmra.mxu1 %vm7225_vm9, %v4044_v49  ;;  %v5697_v12 = vsub.f32 %v1085_v30, %v1213_v62  ;;  %vm5701_vm9 = vmand %vm1885_vm7, %vm1637_vm3  ;;  %vm1622_vm7 = vcmp.eq.s32.totalorder %v1481_v8, %v4634_v42  ;;  %v4047_v42 = vld [vmem:[%s7045_s0 + $0xd0] sm:$0xff]  ;;  %v2541_v49 = vld [vmem:[#allocation3 + $0x18] sm:$0xff] }
 0x148   :  { %706 = vmatprep.mubr.f32.mxu1 %v7074_v11  ;;  %2678 = vmin.xlane.f32.xlu0 %v2237_v2  ;;  %v487_v38 = vpop.f32.mrf.mxu0  ;;  %vm1893_vm5 = vmxor %vm1622_vm7, %vm7136_vm14  ;;  %v2285_v62 = vld [vmem:[#allocation2 + $0x20] sm:$0xff] }
 0x149   :  { %v1217_v40 = vmul.f32 2.0, %v487_v38  ;;  %v2141_v2 = vsel %vm5689_vm6, %v5697_v12, -inf  ;;  %v2269_v28 = vsel %vm5701_vm9, %v5697_v12, inf  ;;  %vm5742_vm6 = vmand %vm1889_vm11, %vm1637_vm3 }
 0x14a   :  { %2683 = vmin.xlane.f32.xlu1 %v2241_v59  ;;  %v489_v33 = vpop.f32.mrf.mxu0  ;;  %v4046_v59 = vld [vmem:[%s7045_s0 + $0xc8] sm:$0xff]  ;;  %vm5768_vm14 = vmand %vm1622_vm7, %vm1637_vm3 }
 0x14b   :  { %3819 = vmatmul.mubr.msk.f32.gmra.mxu1 %vm7232_vm15, %v4045_v45  ;;  %v5738_v25 = vsub.f32 %v1089_v51, %v1217_v40  ;;  %vm5781_vm10 = vmand %vm1893_vm5, %vm1637_vm3  ;;  %vm7252_vm15 = vcmask 7168   ;;  %v2542_v45 = vld [vmem:[#allocation3 + $0x20] sm:$0xff]  ;;  %v2286_v51 = vld [vmem:[#allocation2 + $0x28] sm:$0xff] }
 0x14c   :  { %712 = vmatprep.mubr.f32.mxu1 %v7074_v11  ;;  %2431 = vmax.xlane.f32.xlu0 %v2117_v35  ;;  %v493_v10 = vpop.f32.mrf.mxu0  ;;  %vm7244_vm11 = vmmov %vm7238_vm4 }
 0x14d   :  { %v1221_v16 = vmul.f32 2.0, %v493_v10  ;;  %v2145_v35 = vsel %vm5730_vm8, %v5738_v25, -inf  ;;  %v2273_v48 = vsel %vm5742_vm6, %v5738_v25, inf  ;;  %vm7245_vm3 = vmmov %vm7238_vm4 }
 0x14e   :  { %2436 = vmax.xlane.f32.xlu1 %v2121_v52  ;;  %v495_v4 = vpop.f32.mrf.mxu0  ;;  %vm7246_vm2 = vmmov %vm7245_vm3 }
 0x14f   :  { %3820 = vmatmul.mubr.msk.f32.gmra.mxu1 %vm7238_vm4, %v4046_v59  ;;  %v5777_v55 = vsub.f32 %v4627_v37, %v1221_v16  ;;  %vm7248_vm12 = vmmov %vm7246_vm2  ;;  %v2543_v59 = vld [vmem:[#allocation3 + $0x28] sm:$0xff]  ;;  %v2287_v16 = vld [vmem:[#allocation2 + $0x30] sm:$0xff] }
 0x150   :  { %718 = vmatprep.mubr.f32.mxu1 %v7074_v11  ;;  %2688 = vmin.xlane.f32.xlu0 %v2245_v0  ;;  %v4050_v0 = vld [vmem:[%s7045_s0 + $0xe8] sm:$0xff]  ;;  %vm7250_vm0 = vmmov %vm7246_vm2 }
 0x151   :  { %v2149_v23 = vsel %vm5768_vm14, %v5777_v55, -inf  ;;  %v2277_v37 = vsel %vm5781_vm10, %v5777_v55, inf  ;;  %vm7253_vm4 = vmmov %vm7252_vm15 }
 0x152   :  { %2693 = vmin.xlane.f32.xlu1 %v2249_v61  ;;  %vm7254_vm5 = vmmov %vm7250_vm0 }
 0x153   :  { %3821 = vmatmul.mubr.msk.f32.gmra.mxu1 %vm7244_vm11, %v4047_v42  ;;  %vm7255_vm14 = vmmov %vm7253_vm4  ;;  %v2544_v42 = vld [vmem:[#allocation3 + $0x30] sm:$0xff] }
 0x154   :  { %724 = vmatprep.mubr.f32.mxu1 %v7074_v11  ;;  %2441 = vmax.xlane.f32.xlu0 %v2125_v3  ;;  %v2539_v3 = vld [vmem:[#allocation3 + $0x8] sm:$0xff]  ;;  %vm7256_vm8 = vmmov %vm7253_vm4 }
 0x155   :  { %vm7257_vm11 = vmmov %vm7253_vm4 }
 0x156   :  { %2446 = vmax.xlane.f32.xlu1 %v2129_v9 }
 0x157   :  { %3822 = vmatmul.mubr.msk.f32.gmra.mxu1 %vm7245_vm3, %v4048_v46  ;;  %vm7258_vm3 = vmmov %vm7253_vm4 }
 0x158   :  { %730 = vmatprep.mubr.f32.mxu1 %v7074_v11  ;;  %2698 = vmin.xlane.f32.xlu0 %v2253_v14  ;;  %v2282_v14 = vld [vmem:[#allocation2 + $0x8] sm:$0xff]  ;;  %vm7259_vm9 = vmmov %vm7258_vm3 }
 0x159   :  { %v2574_v52 = vpop.xlane.xlu1 %2573  ;;  %v2317_v61 = vpop.xlane.xlu0 %2316  ;;  %vm7260_vm6 = vmmov %vm7258_vm3 }
 0x15a   :  { %2703 = vmin.xlane.f32.xlu1 %v2257_v15  ;;  %v2730_v29 = vmin.f32 %v2538_v47, %v2574_v52  ;;  %v2473_v36 = vmax.f32 %v2281_v13, %v2317_v61  ;;  %v4052_v15 = vld [vmem:[%s7045_s0 + $0xf8] sm:$0xff]  ;;  %s4103_s0 = smov [#allocation4]  }
 0x15b   :  { %3823 = vmatmul.mubr.msk.f32.gmra.mxu1 %vm7246_vm2, %v4049_v20  ;;  %vm7261_vm2 = vmmov %vm7258_vm3  ;;  %s3741_s22 = sshll.u32 %s4103_s0, 4  ;;  %s3742_s22 = int_to_ptr.vmem [resolvable:$true] %s3741_s22 }
 0x15c   :  { %736 = vmatprep.mubr.f32.mxu1 %v7074_v11  ;;  %2451 = vmax.xlane.f32.xlu0 %v2133_v43  ;;  %2762 = vst.msk [vmem:[#allocation3] sm:$0xff] %vm7252_vm15, %v2730_v29  ;;  %vm7262_vm10 = vmmov %vm7261_vm2  ;;  %s4053_s2 = scalar_lea.vmem %s3742_s22, 32  ;;  %p4058_p1 = scmp.lt.s32.totalorder %s3742_s22, %s3742_s22 }
 0x15d   :  { %2506 = vst.msk [vmem:[#allocation2] sm:$0xff] %vm7253_vm4, %v2473_v36  ;;  %v2579_v53 = vpop.xlane.xlu0 %2578  ;;  %v2322_v41 = vpop.xlane.xlu1 %2321  ;;  %vm7263_vm13 = vmmov %vm7261_vm2  ;;  %p4054_p0 = scmp.ne.s32.totalorder %s3742_s22, %s4053_s2  ;;  %p4059_p2 = scmp.lt.s32.totalorder %s4053_s2, %s4053_s2 }
 0x15e   :  { %2456 = vmax.xlane.f32.xlu1 %v2137_v1  ;;  %v2731_v54 = vmin.f32 %v2539_v3, %v2579_v53  ;;  %v2474_v9 = vmax.f32 %v2282_v14, %v2322_v41  ;;  %vm7265_vm1 = vmmov %vm7261_vm2 }
 0x15f   :  { %3824 = vmatmul.mubr.msk.f32.gmra.mxu1 %vm7248_vm12, %v4050_v0  ;;  %vm7264_vm12 = vmmov %vm7261_vm2  ;;  %p4060_p3 = por %p4059_p2, %p4058_p1 }
 0x160   :  { %742 = vmatprep.mubr.f32.mxu1 %v7074_v11  ;;  %2708 = vmin.xlane.f32.xlu0 %v2261_v26  ;;  %2763 = vst.msk [vmem:[#allocation3 + $0x8] sm:$0xff] %vm7255_vm14, %v2731_v54 }
 0x161   :  { %2507 = vst.msk [vmem:[#allocation2 + $0x8] sm:$0xff] %vm7256_vm8, %v2474_v9  ;;  %v2584_v6 = vpop.xlane.xlu1 %2583  ;;  %v2327_v60 = vpop.xlane.xlu0 %2326  ;;  %p4061_p4 = pnand %p4060_p3, %p4054_p0 }
 0x162   :  { %2713 = vmin.xlane.f32.xlu1 %v2265_v27  ;;  %v2732_v43 = vmin.f32 %v2540_v56, %v2584_v6  ;;  %v2475_v26 = vmax.f32 %v2283_v50, %v2327_v60 }
 0x163   :  { %3825 = vmatmul.mubr.msk.f32.gmra.mxu1 %vm7250_vm0, %v4051_v17  ;;  %v3085_v32 = vld [vmem:[#allocation3] sm:$0xff]  ;;  %v2545_v17 = vld [vmem:[#allocation3 + $0x38] sm:$0xff]  ;;  %vm7266_vm0 = vmmov %vm7265_vm1 }
 0x164   :  { %748 = vmatprep.mubr.f32.mxu1 %v7074_v11  ;;  %2461 = vmax.xlane.f32.xlu0 %v2141_v2  ;;  %v2797_v57 = vld [vmem:[#allocation2] sm:$0xff]  ;;  %2764 = vst.msk [vmem:[#allocation3 + $0x10] sm:$0xff] %vm7257_vm11, %v2732_v43  ;;  %v5868_v30 = vmax.f32 %v3085_v32, 1e-12  ;;  %vm7267_vm7 = vmmov %vm7266_vm0 }
 0x165   :  { %2508 = vst.msk [vmem:[#allocation2 + $0x10] sm:$0xff] %vm7258_vm3, %v2475_v26  ;;  %v2332_v44 = vpop.xlane.xlu0 %2331  ;;  %v5866_v63 = vmax.f32 %v2797_v57, 1e-12  ;;  %vm7268_vm8 = vmmov %vm7266_vm0 }
 0x166   :  { %2466 = vmax.xlane.f32.xlu1 %v2145_v35  ;;  %v2476_v5 = vmax.f32 %v2284_v34, %v2332_v44  ;;  %vm3153_vm14 = vcmp.eq.f32.partialorder %v5868_v30, 0.0  ;;  %v3154_v6 = vand.u32 2147483648, %v5868_v30 }
 0x167   :  { %3826 = vmatmul.mubr.msk.f32.gmra.mxu1 %vm7254_vm5, %v4052_v15  ;;  %v3086_v27 = vld [vmem:[#allocation3 + $0x8] sm:$0xff]  ;;  %3906 = vrsqrt.f32 %v5866_v63  ;;  %vm2863_vm15 = vcmp.eq.f32.partialorder %v5866_v63, inf  ;;  %vm2865_vm4 = vcmp.eq.f32.partialorder %v5866_v63, 0.0  ;;  %v2866_v15 = vand.u32 2147483648, %v5866_v63 }
 0x168   :  { %2718 = vmin.xlane.f32.xlu0 %v2269_v28  ;;  %v2798_v1 = vld [vmem:[#allocation2 + $0x8] sm:$0xff]  ;;  %2509 = vst.msk [vmem:[#allocation2 + $0x18] sm:$0xff] %vm7259_vm9, %v2476_v5  ;;  %v5873_v58 = vmax.f32 %v3086_v27, 1e-12  ;;  %3908 = vrsqrt.f32 %v5868_v30  ;;  %vm3151_vm5 = vcmp.eq.f32.partialorder %v5868_v30, inf }
 0x169   :  { %v5871_v31 = vmax.f32 %v2798_v1, 1e-12  ;;  %v2589_v8 = vpop.xlane.xlu0 %2588  ;;  %v2337_v12 = vpop.xlane.xlu1 %2336 }
 0x16a   :  { %2723 = vmin.xlane.f32.xlu1 %v2273_v48  ;;  %v2733_v18 = vmin.f32 %v2541_v49, %v2589_v8  ;;  %v2477_v38 = vmax.f32 %v2285_v62, %v2337_v12  ;;  %vm3158_vm9 = vcmp.eq.f32.partialorder %v5873_v58, inf  ;;  %v3161_v49 = vand.u32 2147483648, %v5873_v58 }
 0x16b   :  { %3910 = vrsqrt.f32 %v5871_v31  ;;  %v3087_v2 = vld [vmem:[#allocation3 + $0x10] sm:$0xff]  ;;  %vm2870_vm11 = vcmp.eq.f32.partialorder %v5871_v31, inf  ;;  %vm2872_vm3 = vcmp.eq.f32.partialorder %v5871_v31, 0.0  ;;  %v2873_v32 = vand.u32 2147483648, %v5871_v31 }
 0x16c   :  { %2471 = vmax.xlane.f32.xlu0 %v2149_v23  ;;  %v2799_v40 = vld [vmem:[#allocation2 + $0x10] sm:$0xff]  ;;  %2765 = vst.msk [vmem:[#allocation3 + $0x18] sm:$0xff] %vm7260_vm6, %v2733_v18  ;;  %3912 = vrsqrt.f32 %v5873_v58  ;;  %v5887_v25 = vmax.f32 %v3087_v2, 1e-12  ;;  %v2288_v23 = vld [vmem:[#allocation2 + $0x38] sm:$0xff]  ;;  %vm3160_vm6 = vcmp.eq.f32.partialorder %v5873_v58, 0.0 }
 0x16d   :  { %2510 = vst.msk [vmem:[#allocation2 + $0x20] sm:$0xff] %vm7261_vm2, %v2477_v38  ;;  %v5885_v28 = vmax.f32 %v2799_v40, 1e-12  ;;  %v2594_v33 = vpop.xlane.xlu1 %2593  ;;  %v2342_v39 = vpop.xlane.xlu0 %2341 }
 0x16e   :  { %v2734_v7 = vmin.f32 %v2542_v45, %v2594_v33  ;;  %v2478_v10 = vmax.f32 %v2286_v51, %v2342_v39 }
 0x16f   :  { %v2800_v35 = vld [vmem:[#allocation2 + $0x18] sm:$0xff]  ;;  %3914 = vrsqrt.f32 %v5885_v28  ;;  %vm2877_vm2 = vcmp.eq.f32.partialorder %v5885_v28, inf  ;;  %v2880_v27 = vand.u32 2147483648, %v5885_v28 }
 0x170   :  { %2728 = vmin.xlane.f32.xlu0 %v2277_v37  ;;  %2766 = vst.msk [vmem:[#allocation3 + $0x20] sm:$0xff] %vm7262_vm10, %v2734_v7  ;;  %3916 = vrsqrt.f32 %v5887_v25  ;;  %v5893_v21 = vmax.f32 %v2800_v35, 1e-12  ;;  %vm2879_vm10 = vcmp.eq.f32.partialorder %v5885_v28, 0.0  ;;  %v3168_v7 = vand.u32 2147483648, %v5887_v25 }
 0x171   :  { %2511 = vst.msk [vmem:[#allocation2 + $0x28] sm:$0xff] %vm7263_vm13, %v2478_v10  ;;  %v2599_v48 = vpop.xlane.xlu0 %2598  ;;  %v2347_v4 = vpop.xlane.xlu1 %2346  ;;  %vm3165_vm13 = vcmp.eq.f32.partialorder %v5887_v25, inf }
 0x172   :  { %v2735_v55 = vmin.f32 %v2543_v59, %v2599_v48  ;;  %v2479_v22 = vmax.f32 %v2287_v16, %v2347_v4  ;;  %3918 = vrsqrt.f32 %v5893_v21  ;;  %v2887_v10 = vand.u32 2147483648, %v5893_v21  ;;  %v2289_v4 = vld [vmem:[#allocation2 + $0x40] sm:$0xff] }
 0x173   :  { %v3088_v37 = vld [vmem:[#allocation3 + $0x18] sm:$0xff] }
 0x174   :  { %v2801_v46 = vld [vmem:[#allocation2 + $0x20] sm:$0xff]  ;;  %2767 = vst.msk [vmem:[#allocation3 + $0x28] sm:$0xff] %vm7264_vm12, %v2735_v55  ;;  %v5897_v20 = vmax.f32 %v3088_v37, 1e-12  ;;  %v3907_v52 = vpop.eup %3906  ;;  %vm3167_vm12 = vcmp.eq.f32.partialorder %v5887_v25, 0.0 }
 0x175   :  { %2512 = vst.msk [vmem:[#allocation2 + $0x30] sm:$0xff] %vm7265_vm1, %v2479_v22  ;;  %v5899_v0 = vmax.f32 %v2801_v46, 1e-12  ;;  %v2604_v47 = vpop.xlane.xlu1 %2603  ;;  %v2352_v13 = vpop.xlane.xlu0 %2351  ;;  %v2862_v50 = vmul.f32 %v3907_v52, %v5866_v63  ;;  %vm2884_vm1 = vcmp.eq.f32.partialorder %v5893_v21, inf }
 0x176   :  { %v2736_v61 = vmin.f32 %v2544_v42, %v2604_v47  ;;  %v2480_v29 = vmax.f32 %v2288_v23, %v2352_v13  ;;  %3920 = vrsqrt.f32 %v5897_v20  ;;  %v3909_v36 = vpop.eup %3908  ;;  %v3175_v13 = vand.u32 2147483648, %v5897_v20 }
 0x177   :  { %v3089_v3 = vld [vmem:[#allocation3 + $0x20] sm:$0xff]  ;;  %3922 = vrsqrt.f32 %v5899_v0  ;;  %v3150_v43 = vmul.f32 %v3909_v36, %v5868_v30  ;;  %v2864_v1 = vsel %vm2863_vm15, %v5866_v63, %v2862_v50  ;;  %vm3174_vm15 = vcmp.eq.f32.partialorder %v5897_v20, 0.0 }
 0x178   :  { %v3911_v14 = vpop.eup %3910  ;;  %2768 = vst.msk [vmem:[#allocation3 + $0x30] sm:$0xff] %vm7266_vm0, %v2736_v61  ;;  %v2802_v53 = vld [vmem:[#allocation2 + $0x28] sm:$0xff]  ;;  %v5910_v56 = vmax.f32 %v3089_v3, 1e-12  ;;  %v5960_v16 = vsel %vm2865_vm4, %v2866_v15, %v2864_v1  ;;  %vm2886_vm0 = vcmp.eq.f32.partialorder %v5893_v21, 0.0  ;;  %v2546_v50 = vld [vmem:[#allocation3 + $0x40] sm:$0xff] }
 0x179   :  { %2513 = vst.msk [vmem:[#allocation2 + $0x38] sm:$0xff] %vm7267_vm7, %v2480_v29  ;;  %v3913_v41 = vpop.eup %3912  ;;  %v2609_v54 = vpop.xlane.xlu0 %2608  ;;  %v5915_v60 = vmax.f32 %v2802_v53, 1e-12  ;;  %v2869_v26 = vmul.f32 %v3911_v14, %v5871_v31  ;;  %v3152_v12 = vsel %vm3151_vm5, %v5868_v30, %v3150_v43  ;;  %vm3172_vm7 = vcmp.eq.f32.partialorder %v5897_v20, inf  ;;  %vm7269_vm5 = vmmov %vm7268_vm8 }
 0x17a   :  { %v2737_v9 = vmin.f32 %v2545_v17, %v2609_v54  ;;  %v3157_v34 = vmul.f32 %v3913_v41, %v5873_v58  ;;  %3924 = vrsqrt.f32 %v5910_v56  ;;  %v5964_v35 = vsel %vm3153_vm14, %v3154_v6, %v3152_v12 }
 0x17b   :  { %v3090_v44 = vld [vmem:[#allocation3 + $0x28] sm:$0xff]  ;;  %3926 = vrsqrt.f32 %v5915_v60  ;;  %v2871_v18 = vsel %vm2870_vm11, %v5871_v31, %v2869_v26  ;;  %v3373_v46 = vsub.f32 %v5960_v16, %v5964_v35  ;;  %vm3556_vm4 = vcmp.gt.f32.partialorder %v5964_v35, %v5960_v16 }
 0x17c   :  { %2769 = vst.msk [vmem:[#allocation3 + $0x38] sm:$0xff] %vm7268_vm8, %v2737_v9  ;;  %v3915_v57 = vpop.eup %3914  ;;  %v2803_v62 = vld [vmem:[#allocation2 + $0x30] sm:$0xff]  ;;  %v3159_v38 = vsel %vm3158_vm9, %v5873_v58, %v3157_v34  ;;  %v5946_v45 = vmax.f32 %v3090_v44, 1e-12  ;;  %v5971_v55 = vsel %vm2872_vm3, %v2873_v32, %v2871_v18  ;;  %v2357_v58 = vpop.xlane.xlu1 %2356  ;;  %vm2891_vm14 = vcmp.eq.f32.partialorder %v5899_v0, inf  ;;  %v2290_v26 = vld [vmem:[#allocation2 + $0x48] sm:$0xff] }
 0x17d   :  { %v3917_v5 = vpop.eup %3916  ;;  %v2876_v51 = vmul.f32 %v3915_v57, %v5885_v28  ;;  %v5950_v2 = vmax.f32 %v2803_v62, 1e-12  ;;  %v5975_v63 = vsel %vm3160_vm6, %v3161_v49, %v3159_v38  ;;  %v2481_v61 = vmax.f32 %v2289_v4, %v2357_v58 }
 0x17e   :  { %v3164_v40 = vmul.f32 %v3917_v5, %v5887_v25  ;;  %3928 = vrsqrt.f32 %v5946_v45  ;;  %v3374_v17 = vsub.f32 %v5971_v55, %v5975_v63  ;;  %v2894_v54 = vand.u32 2147483648, %v5899_v0 }
 0x17f   :  { %v3091_v8 = vld [vmem:[#allocation3 + $0x30] sm:$0xff]  ;;  %v3919_v39 = vpop.eup %3918  ;;  %3930 = vrsqrt.f32 %v5950_v2  ;;  %v2878_v23 = vsel %vm2877_vm2, %v5885_v28, %v2876_v51  ;;  %2514 = vst.msk [vmem:[#allocation2 + $0x40] sm:$0xff] %vm7269_vm5, %v2481_v61  ;;  %v6018_v28 = vadd.f32 0.3, %v3373_v46  ;;  %vm3179_vm8 = vcmp.eq.f32.partialorder %v5910_v56, inf }
 0x180   :  { %v5952_v33 = vmax.f32 %v3091_v8, 1e-12  ;;  %v2804_v48 = vld [vmem:[#allocation2 + $0x38] sm:$0xff]  ;;  %v3166_v31 = vsel %vm3165_vm13, %v5887_v25, %v3164_v40  ;;  %v2883_v37 = vmul.f32 %v3919_v39, %v5893_v21  ;;  %v6004_v3 = vsel %vm2879_vm10, %v2880_v27, %v2878_v23  ;;  %v2291_v23 = vld [vmem:[#allocation2 + $0x50] sm:$0xff] }
 0x181   :  { %v5993_v52 = vmax.f32 %v2804_v48, 1e-12  ;;  %v6008_v14 = vsel %vm3167_vm12, %v3168_v7, %v3166_v31  ;;  %v3182_v43 = vand.u32 2147483648, %v5910_v56  ;;  %vm3557_vm11 = vcmp.gt.f32.partialorder %v5975_v63, %v5971_v55 }
 0x182   :  { %3932 = vrsqrt.f32 %v5952_v33  ;;  %v2885_v41 = vsel %vm2884_vm1, %v5893_v21, %v2883_v37  ;;  %vm3558_vm3 = vcmp.gt.f32.partialorder %v6008_v14, %v6004_v3  ;;  %vm3181_vm9 = vcmp.eq.f32.partialorder %v5910_v56, 0.0  ;;  %vm7270_vm1 = vmmov %vm7269_vm5 }
 0x183   :  { %v3921_v59 = vpop.eup %3920  ;;  %v3092_v22 = vld [vmem:[#allocation3 + $0x38] sm:$0xff]  ;;  %3934 = vrsqrt.f32 %v5993_v52  ;;  %v6036_v34 = vsel %vm2886_vm0, %v2887_v10, %v2885_v41  ;;  %vm2893_vm6 = vcmp.eq.f32.partialorder %v5899_v0, 0.0  ;;  %v3437_v21 = vmax.f32 %v6018_v28, 0.0 }
 0x184   :  { %v3171_v30 = vmul.f32 %v3921_v59, %v5897_v20  ;;  %v3923_v42 = vpop.eup %3922  ;;  %v5996_v36 = vmax.f32 %v3092_v22, 1e-12  ;;  %v3375_v1 = vsub.f32 %v6004_v3, %v6008_v14  ;;  %vm2898_vm10 = vcmp.eq.f32.partialorder %v5915_v60, inf }
 0x185   :  { %v2890_v29 = vmul.f32 %v3923_v42, %v5899_v0  ;;  %vm2900_vm13 = vcmp.eq.f32.partialorder %v5915_v60, 0.0  ;;  %v2901_v18 = vand.u32 2147483648, %v5915_v60  ;;  %vm3186_vm0 = vcmp.eq.f32.partialorder %v5946_v45, inf }
 0x186   :  { %v3173_v47 = vsel %vm3172_vm7, %v5897_v20, %v3171_v30  ;;  %3936 = vrsqrt.f32 %v5996_v36  ;;  %v6032_v20 = vadd.f32 0.3, %v3374_v17  ;;  %v2805_v51 = vld [vmem:[#allocation2 + $0x40] sm:$0xff]  ;;  %vm7271_vm7 = vmmov %vm7270_vm1  ;;  %v3189_v39 = vand.u32 2147483648, %v5946_v45  ;;  %v2547_v30 = vld [vmem:[#allocation3 + $0x48] sm:$0xff] }
 0x187   :  { %v3925_v53 = vpop.eup %3924  ;;  %v6022_v25 = vsel %vm3174_vm15, %v3175_v13, %v3173_v47  ;;  %v2892_v6 = vsel %vm2891_vm14, %v5899_v0, %v2890_v29  ;;  %v6064_v10 = vmax.f32 %v2805_v51, 1e-12  ;;  %v3407_v48 = vadd.f32 0.3, %v3375_v1 }
 0x188   :  { %v3178_v9 = vmul.f32 %v3925_v53, %v5910_v56  ;;  %v3927_v15 = vpop.eup %3926  ;;  %vm3559_vm2 = vcmp.gt.f32.partialorder %v6022_v25, %v6036_v34  ;;  %v6049_v27 = vsel %vm2893_vm6, %v2894_v54, %v2892_v6  ;;  %v3438_v12 = vmax.f32 %v6032_v20, 0.0 }
 0x189   :  { %v2897_v5 = vmul.f32 %v3927_v15, %v5915_v60  ;;  %vm3188_vm15 = vcmp.eq.f32.partialorder %v5946_v45, 0.0  ;;  %vm2905_vm5 = vcmp.eq.f32.partialorder %v5950_v2, inf  ;;  %vm2907_vm14 = vcmp.eq.f32.partialorder %v5950_v2, 0.0 }
 0x18a   :  { %v3180_v57 = vsel %vm3179_vm8, %v5910_v56, %v3178_v9  ;;  %vm3193_vm8 = vcmp.eq.f32.partialorder %v5952_v33, inf  ;;  %3938 = vrsqrt.f32 %v6064_v10  ;;  %v2908_v47 = vand.u32 2147483648, %v5950_v2 }
 0x18b   :  { %v6041_v44 = vsel %vm3181_vm9, %v3182_v43, %v3180_v57  ;;  %v3929_v56 = vpop.eup %3928  ;;  %v2899_v40 = vsel %vm2898_vm10, %v5915_v60, %v2897_v5  ;;  %vm3195_vm9 = vcmp.eq.f32.partialorder %v5952_v33, 0.0  ;;  %v3376_v17 = vsub.f32 %v6036_v34, %v6022_v25 }
 0x18c   :  { %vm3560_vm12 = vcmp.gt.f32.partialorder %v6041_v44, %v6049_v27  ;;  %v3931_v0 = vpop.eup %3930  ;;  %v3185_v38 = vmul.f32 %v3929_v56, %v5946_v45  ;;  %v6076_v31 = vsel %vm2900_vm13, %v2901_v18, %v2899_v40  ;;  %vm2912_vm10 = vcmp.eq.f32.partialorder %v5993_v52, inf  ;;  %vm7272_vm13 = vmmov %vm7270_vm1  ;;  %v2549_v40 = vld [vmem:[#allocation3 + $0x58] sm:$0xff] }
 0x18d   :  { %v2904_v7 = vmul.f32 %v3931_v0, %v5950_v2  ;;  %v3203_v15 = vand.u32 2147483648, %v5996_v36  ;;  %v2915_v20 = vand.u32 2147483648, %v5993_v52  ;;  %v3439_v5 = vmax.f32 %v3407_v48, 0.0 }
 0x18e   :  { %v2614_v32 = vpop.xlane.xlu1 %2613  ;;  %v3187_v4 = vsel %vm3186_vm0, %v5946_v45, %v3185_v38  ;;  %v3196_v45 = vand.u32 2147483648, %v5952_v33  ;;  %v2922_v3 = vand.u32 2147483648, %v6064_v10 }
 0x18f   :  { %v2738_v49 = vmin.f32 %v2546_v50, %v2614_v32  ;;  %v2362_v62 = vpop.xlane.xlu0 %2361  ;;  %v3933_v59 = vpop.eup %3932  ;;  %v6069_v22 = vsel %vm3188_vm15, %v3189_v39, %v3187_v4  ;;  %v2906_v37 = vsel %vm2905_vm5, %v5950_v2, %v2904_v7  ;;  %vm3202_vm15 = vcmp.eq.f32.partialorder %v5996_v36, 0.0  ;;  %v2548_v32 = vld [vmem:[#allocation3 + $0x50] sm:$0xff] }
 0x190   :  { %v2482_v8 = vmax.f32 %v2290_v26, %v2362_v62  ;;  %v3192_v42 = vmul.f32 %v3933_v59, %v5952_v33  ;;  %v3935_v58 = vpop.eup %3934  ;;  %vm3561_vm6 = vcmp.gt.f32.partialorder %v6069_v22, %v6076_v31  ;;  %v6093_v28 = vsel %vm2907_vm14, %v2908_v47, %v2906_v37 }
 0x191   :  { %2770 = vst.msk [vmem:[#allocation3 + $0x40] sm:$0xff] %vm7270_vm1, %v2738_v49  ;;  %v2911_v41 = vmul.f32 %v3935_v58, %v5993_v52  ;;  %vm3200_vm1 = vcmp.eq.f32.partialorder %v5996_v36, inf  ;;  %v3408_v49 = vadd.f32 0.3, %v3376_v17  ;;  %v3377_v62 = vsub.f32 %v6049_v27, %v6041_v44  ;;  %v2550_v58 = vld [vmem:[#allocation3 + $0x60] sm:$0xff] }
 0x192   :  { %2515 = vst.msk [vmem:[#allocation2 + $0x48] sm:$0xff] %vm7271_vm7, %v2482_v8  ;;  %v3194_v13 = vsel %vm3193_vm8, %v5952_v33, %v3192_v42  ;;  %vm2914_vm5 = vcmp.eq.f32.partialorder %v5993_v52, 0.0  ;;  %v3378_v51 = vsub.f32 %v6076_v31, %v6069_v22  ;;  %vm7273_vm8 = vmmov %vm7271_vm7  ;;  %v6141_v17 = vsel %vm3556_vm4, 1.0, %v7074_v11  ;;  %v2297_v27 = vld [vmem:[#allocation2 + $0x80] sm:$0xff]  ;;  %v2553_v31 = vld [vmem:[#allocation3 + $0x78] sm:$0xff] }
 0x193   :  { %v3937_v60 = vpop.eup %3936  ;;  %v6088_v53 = vsel %vm3195_vm9, %v3196_v45, %v3194_v13  ;;  %v2913_v2 = vsel %vm2912_vm10, %v5993_v52, %v2911_v41  ;;  %v3440_v18 = vmax.f32 %v3408_v49, 0.0  ;;  %v3409_v38 = vadd.f32 0.3, %v3377_v62  ;;  %vm7274_vm9 = vmmov %vm7271_vm7  ;;  %v2294_v13 = vld [vmem:[#allocation2 + $0x68] sm:$0xff] }
 0x194   :  { %v3199_v33 = vmul.f32 %v3937_v60, %v5996_v36  ;;  %vm3562_vm0 = vcmp.gt.f32.partialorder %v6088_v53, %v6093_v28  ;;  %v6117_v1 = vsel %vm2914_vm5, %v2915_v20, %v2913_v2  ;;  %v3410_v47 = vadd.f32 0.3, %v3378_v51  ;;  %vm7275_vm10 = vmmov %vm7271_vm7  ;;  %v2295_v2 = vld [vmem:[#allocation2 + $0x70] sm:$0xff]  ;;  %v2551_v20 = vld [vmem:[#allocation3 + $0x68] sm:$0xff] }
 0x195   :  { %v2619_v46 = vpop.xlane.xlu0 %2618  ;;  %v6147_v41 = vsel %vm3557_vm11, 1.0, %v7074_v11  ;;  %vm2921_vm4 = vcmp.eq.f32.partialorder %v6064_v10, 0.0  ;;  %vm7277_vm11 = vmmov %vm7271_vm7  ;;  %v6207_v25 = vsel %vm3561_vm6, 1.0, %v7074_v11 }
 0x196   :  { %v2739_v61 = vmin.f32 %v2547_v30, %v2619_v46  ;;  %v3201_v43 = vsel %vm3200_vm1, %v5996_v36, %v3199_v33  ;;  %v3441_v46 = vmax.f32 %v3409_v38, 0.0  ;;  %vm2919_vm1 = vcmp.eq.f32.partialorder %v6064_v10, inf }
 0x197   :  { %v2367_v29 = vpop.xlane.xlu1 %2366  ;;  %v6111_v57 = vsel %vm3202_vm15, %v3203_v15, %v3201_v43  ;;  %v3939_v59 = vpop.eup %3938  ;;  %v6156_v15 = vsel %vm3558_vm3, 1.0, %v7074_v11  ;;  %v3442_v55 = vmax.f32 %v3410_v47, 0.0  ;;  %vm7278_vm3 = vmmov %vm7271_vm7  ;;  %v6201_v47 = vsel %vm3560_vm12, 1.0, %v7074_v11 }
 0x198   :  { %v2483_v54 = vmax.f32 %v2291_v23, %v2367_v29  ;;  %v3093_v9 = vld [vmem:[#allocation3 + $0x40] sm:$0xff]  ;;  %2771 = vst.msk [vmem:[#allocation3 + $0x48] sm:$0xff] %vm7272_vm13, %v2739_v61  ;;  %vm3563_vm14 = vcmp.gt.f32.partialorder %v6111_v57, %v6117_v1  ;;  %v3379_v23 = vsub.f32 %v6093_v28, %v6088_v53  ;;  %v2918_v60 = vmul.f32 %v3939_v59, %v6064_v10  ;;  %vm7276_vm13 = vmmov %vm7271_vm7  ;;  %v2569_v53 = vld [vmem:[#allocation3 + $0xf8] sm:$0xff] }
 0x199   :  { %v6100_v50 = vmax.f32 %v3093_v9, 1e-12  ;;  %v2806_v6 = vld [vmem:[#allocation2 + $0x48] sm:$0xff]  ;;  %v3380_v63 = vsub.f32 %v6117_v1, %v6111_v57  ;;  %vm7279_vm5 = vmmov %vm7278_vm3 }
 0x19a   :  { %2516 = vst.msk [vmem:[#allocation2 + $0x50] sm:$0xff] %vm7271_vm7, %v2483_v54  ;;  %v6108_v26 = vmax.f32 %v2806_v6, 1e-12  ;;  %v6149_v9 = vadd.f32 0.3, %v3379_v23  ;;  %vm7281_vm12 = vmmov %vm7278_vm3 }
 0x19b   :  { %3940 = vrsqrt.f32 %v6100_v50  ;;  %vm3207_vm7 = vcmp.eq.f32.partialorder %v6100_v50, inf  ;;  %vm3209_vm15 = vcmp.eq.f32.partialorder %v6100_v50, 0.0  ;;  %vm7282_vm6 = vmmov %vm7278_vm3 }
 0x19c   :  { %3942 = vrsqrt.f32 %v6108_v26 }
 0x19d   :  { %3469 = vxpose.xlu1.b32.start [1/16] (narrow) %v3437_v21, 8  ;;  %v2292_v21 = vld [vmem:[#allocation2 + $0x58] sm:$0xff]  ;;  %v564_v37 = vpop.f32.mrf.mxu1 }
 0x19f   :  { %v3094_v52 = vld [vmem:[#allocation3 + $0x48] sm:$0xff]  ;;  %v566_v61 = vpop.f32.mrf.mxu1 }
 0x1a0   :  { %v6125_v39 = vmax.f32 %v3094_v52, 1e-12 }
 0x1a1   :  { %3470 = vxpose.xlu1.b32.cont [2/16] (narrow) %v3438_v12, 8  ;;  %v2293_v12 = vld [vmem:[#allocation2 + $0x60] sm:$0xff]  ;;  %v2807_v7 = vld [vmem:[#allocation2 + $0x50] sm:$0xff]  ;;  %v570_v16 = vpop.f32.mrf.mxu1 }
 0x1a2   :  { %v6128_v4 = vmax.f32 %v2807_v7, 1e-12  ;;  %3944 = vrsqrt.f32 %v6125_v39  ;;  %v3412_v7 = vadd.f32 0.3, %v3380_v63  ;;  %v2929_v16 = vand.u32 2147483648, %v6108_v26 }
 0x1a3   :  { %v2624_v36 = vpop.xlane.xlu1 %2623  ;;  %v572_v62 = vpop.f32.mrf.mxu1 }
 0x1a4   :  { %v2740_v56 = vmin.f32 %v2548_v32, %v2624_v36  ;;  %3946 = vrsqrt.f32 %v6128_v4  ;;  %v2920_v32 = vsel %vm2919_vm1, %v6064_v10, %v2918_v60  ;;  %v6191_v10 = vsel %vm3559_vm2, 1.0, %v7074_v11 }
 0x1a5   :  { %v2372_v8 = vpop.xlane.xlu0 %2371  ;;  %3471 = vxpose.xlu1.b32.cont [3/16] (narrow) %v3439_v5, 8  ;;  %v576_v51 = vpop.f32.mrf.mxu1  ;;  %v6178_v59 = vsel %vm2921_vm4, %v2922_v3, %v2920_v32  ;;  %vm2928_vm2 = vcmp.eq.f32.partialorder %v6108_v26, 0.0  ;;  %vm3216_vm1 = vcmp.eq.f32.partialorder %v6125_v39, 0.0  ;;  %vm2933_vm4 = vcmp.eq.f32.partialorder %v6128_v4, inf }
 0x1a6   :  { %v2484_v0 = vmax.f32 %v2292_v21, %v2372_v8  ;;  %2772 = vst.msk [vmem:[#allocation3 + $0x50] sm:$0xff] %vm7273_vm8, %v2740_v56  ;;  %v3210_v56 = vand.u32 2147483648, %v6100_v50  ;;  %vm7280_vm8 = vmmov %vm7278_vm3 }
 0x1a7   :  { %v2377_v48 = vpop.xlane.xlu1 %2376 }
 0x1a8   :  { %2517 = vst.msk [vmem:[#allocation2 + $0x58] sm:$0xff] %vm7274_vm9, %v2484_v0  ;;  %v2485_v42 = vmax.f32 %v2293_v12, %v2377_v48  ;;  %v3941_v35 = vpop.eup %3940  ;;  %vm2926_vm9 = vcmp.eq.f32.partialorder %v6108_v26, inf }
 0x1a9   :  { %v2629_v30 = vpop.xlane.xlu0 %2628  ;;  %3472 = vxpose.xlu1.b32.cont [4/16] (narrow) %v3440_v18, 8  ;;  %v3206_v14 = vmul.f32 %v3941_v35, %v6100_v50  ;;  %v3943_v21 = vpop.eup %3942  ;;  %v3443_v18 = vmax.f32 %v6149_v9, 0.0 }
 0x1aa   :  { %v2741_v45 = vmin.f32 %v2549_v40, %v2629_v30  ;;  %2518 = vst.msk [vmem:[#allocation2 + $0x60] sm:$0xff] %vm7275_vm10, %v2485_v42  ;;  %v2552_v40 = vld [vmem:[#allocation3 + $0x70] sm:$0xff]  ;;  %v2296_v42 = vld [vmem:[#allocation2 + $0x78] sm:$0xff]  ;;  %v2925_v23 = vmul.f32 %v3943_v21, %v6108_v26 }
 0x1ab   :  { %v2634_v29 = vpop.xlane.xlu1 %2633  ;;  %v3208_v38 = vsel %vm3207_vm7, %v6100_v50, %v3206_v14  ;;  %vm7284_vm7 = vmmov %vm7279_vm5 }
 0x1ac   :  { %2773 = vst.msk [vmem:[#allocation3 + $0x58] sm:$0xff] %vm7276_vm13, %v2741_v45  ;;  %v2742_v54 = vmin.f32 %v2550_v58, %v2634_v29  ;;  %v6180_v48 = vsel %vm3209_vm15, %v3210_v56, %v3208_v38  ;;  %v578_v45 = vpop.f32.mrf.mxu1  ;;  %v2927_v9 = vsel %vm2926_vm9, %v6108_v26, %v2925_v23  ;;  %vm3214_vm13 = vcmp.eq.f32.partialorder %v6125_v39, inf }
 0x1ad   :  { %v2382_v33 = vpop.xlane.xlu0 %2381  ;;  %3473 = vxpose.xlu1.b32.cont [5/16] (narrow) %v3441_v46, 8  ;;  %v3095_v43 = vld [vmem:[#allocation3 + $0x50] sm:$0xff]  ;;  %v3381_v50 = vsub.f32 %v6178_v59, %v6180_v48  ;;  %vm3564_vm10 = vcmp.gt.f32.partialorder %v6180_v48, %v6178_v59 }
 0x1ae   :  { %v2486_v6 = vmax.f32 %v2294_v13, %v2382_v33  ;;  %2774 = vst.msk [vmem:[#allocation3 + $0x60] sm:$0xff] %vm7277_vm11, %v2742_v54  ;;  %v6165_v5 = vmax.f32 %v3095_v43, 1e-12  ;;  %v582_v61 = vpop.f32.mrf.mxu1  ;;  %v3444_v54 = vmax.f32 %v3412_v7, 0.0  ;;  %v3217_v43 = vand.u32 2147483648, %v6125_v39  ;;  %vm7283_vm11 = vmmov %vm7278_vm3 }
 0x1af   :  { %v2808_v49 = vld [vmem:[#allocation2 + $0x58] sm:$0xff]  ;;  %v2387_v36 = vpop.xlane.xlu1 %2386  ;;  %v3945_v29 = vpop.eup %3944  ;;  %v3413_v33 = vadd.f32 0.3, %v3381_v50  ;;  %v2936_v7 = vand.u32 2147483648, %v6128_v4  ;;  %v2299_v50 = vld [vmem:[#allocation2 + $0x90] sm:$0xff]  ;;  %v6619_v28 = vsel %vm3564_vm10, 1.0, %v7074_v11 }
 0x1b0   :  { %2519 = vst.msk [vmem:[#allocation2 + $0x68] sm:$0xff] %vm7278_vm3, %v2486_v6  ;;  %v6171_v8 = vmax.f32 %v2808_v49, 1e-12  ;;  %v2487_v12 = vmax.f32 %v2295_v2, %v2387_v36  ;;  %3948 = vrsqrt.f32 %v6165_v5  ;;  %v3213_v35 = vmul.f32 %v3945_v29, %v6125_v39  ;;  %v584_v2 = vpop.f32.mrf.mxu1  ;;  %v2554_v36 = vld [vmem:[#allocation3 + $0x80] sm:$0xff] }
 0x1b1   :  { %v2639_v0 = vpop.xlane.xlu0 %2638  ;;  %3474 = vxpose.xlu1.b32.cont [6/16] (narrow) %v3442_v55, 8  ;;  %v2809_v30 = vld [vmem:[#allocation2 + $0x60] sm:$0xff]  ;;  %v3947_v55 = vpop.eup %3946  ;;  %v3445_v56 = vmax.f32 %v3413_v33, 0.0  ;;  %vm2935_vm3 = vcmp.eq.f32.partialorder %v6128_v4, 0.0  ;;  %vm3221_vm15 = vcmp.eq.f32.partialorder %v6165_v5, inf }
 0x1b2   :  { %v2743_v52 = vmin.f32 %v2551_v20, %v2639_v0  ;;  %2520 = vst.msk [vmem:[#allocation2 + $0x70] sm:$0xff] %vm7279_vm5, %v2487_v12  ;;  %3950 = vrsqrt.f32 %v6171_v8  ;;  %v6210_v60 = vmax.f32 %v2809_v30, 1e-12  ;;  %v3215_v3 = vsel %vm3214_vm13, %v6125_v39, %v3213_v35  ;;  %v588_v62 = vpop.f32.mrf.mxu1 }
 0x1b3   :  { %v3096_v37 = vld [vmem:[#allocation3 + $0x58] sm:$0xff]  ;;  %v2644_v58 = vpop.xlane.xlu1 %2643  ;;  %v6234_v0 = vsel %vm2928_vm2, %v2929_v16, %v2927_v9  ;;  %v6236_v12 = vsel %vm3216_vm1, %v3217_v43, %v3215_v3  ;;  %v2932_v38 = vmul.f32 %v3947_v55, %v6128_v4  ;;  %vm3223_vm5 = vcmp.eq.f32.partialorder %v6165_v5, 0.0  ;;  %vm7285_vm2 = vmmov %vm7282_vm6 }
 0x1b4   :  { %2775 = vst.msk [vmem:[#allocation3 + $0x68] sm:$0xff] %vm7280_vm8, %v2743_v52  ;;  %v6195_v46 = vmax.f32 %v3096_v37, 1e-12  ;;  %v2744_v34 = vmin.f32 %v2552_v40, %v2644_v58  ;;  %v3382_v39 = vsub.f32 %v6234_v0, %v6236_v12  ;;  %v590_v40 = vpop.f32.mrf.mxu1  ;;  %v3224_v37 = vand.u32 2147483648, %v6165_v5 }
 0x1b5   :  { %v2392_v13 = vpop.xlane.xlu0 %2391  ;;  %3475 = vxpose.xlu1.b32.cont [7/16] (narrow) %v3443_v18, 8  ;;  %v3097_v22 = vld [vmem:[#allocation3 + $0x60] sm:$0xff]  ;;  %v2298_v18 = vld [vmem:[#allocation2 + $0x88] sm:$0xff]  ;;  %vm2940_vm8 = vcmp.eq.f32.partialorder %v6171_v8, inf  ;;  %vm3565_vm9 = vcmp.gt.f32.partialorder %v6236_v12, %v6234_v0  ;;  %v2943_v35 = vand.u32 2147483648, %v6171_v8 }
 0x1b6   :  { %v2488_v44 = vmax.f32 %v2296_v42, %v2392_v13  ;;  %3952 = vrsqrt.f32 %v6195_v46  ;;  %2776 = vst.msk [vmem:[#allocation3 + $0x70] sm:$0xff] %vm7281_vm12, %v2744_v34  ;;  %v6228_v14 = vmax.f32 %v3097_v22, 1e-12  ;;  %v3414_v23 = vadd.f32 0.3, %v3382_v39  ;;  %v594_v45 = vpop.f32.mrf.mxu1  ;;  %vm7286_vm12 = vmmov %vm7285_vm2 }
 0x1b7   :  { %3954 = vrsqrt.f32 %v6210_v60  ;;  %v2810_v6 = vld [vmem:[#allocation2 + $0x68] sm:$0xff]  ;;  %v2397_v63 = vpop.xlane.xlu1 %2396  ;;  %vm3228_vm13 = vcmp.eq.f32.partialorder %v6195_v46, inf  ;;  %vm3230_vm1 = vcmp.eq.f32.partialorder %v6195_v46, 0.0  ;;  %v2301_v45 = vld [vmem:[#allocation2 + $0xa0] sm:$0xff] }
 0x1b8   :  { %2521 = vst.msk [vmem:[#allocation2 + $0x78] sm:$0xff] %vm7282_vm6, %v2488_v44  ;;  %v2489_v32 = vmax.f32 %v2297_v27, %v2397_v63  ;;  %v6230_v49 = vmax.f32 %v2810_v6, 1e-12  ;;  %3956 = vrsqrt.f32 %v6228_v14  ;;  %v2555_v44 = vld [vmem:[#allocation3 + $0x88] sm:$0xff]  ;;  %v3446_v27 = vmax.f32 %v3414_v23, 0.0 }
 0x1b9   :  { %v2649_v20 = vpop.xlane.xlu0 %2648  ;;  %3476 = vxpose.xlu1.b32.cont [8/16] (narrow) %v3444_v54, 8  ;;  %v2811_v52 = vld [vmem:[#allocation2 + $0x70] sm:$0xff]  ;;  %v2934_v54 = vsel %vm2933_vm4, %v6128_v4, %v2932_v38  ;;  %vm2942_vm6 = vcmp.eq.f32.partialorder %v6171_v8, 0.0  ;;  %vm7287_vm4 = vmmov %vm7285_vm2 }
 0x1ba   :  { %v2745_v21 = vmin.f32 %v2553_v31, %v2649_v20  ;;  %2522 = vst.msk [vmem:[#allocation2 + $0x80] sm:$0xff] %vm7283_vm11, %v2489_v32  ;;  %3958 = vrsqrt.f32 %v6230_v49  ;;  %v6253_v61 = vmax.f32 %v2811_v52, 1e-12  ;;  %v596_v31 = vpop.f32.mrf.mxu1  ;;  %v2556_v32 = vld [vmem:[#allocation3 + $0x90] sm:$0xff]  ;;  %v6276_v3 = vsel %vm2935_vm3, %v2936_v7, %v2934_v54  ;;  %vm7288_vm3 = vmmov %vm7285_vm2 }
 0x1bb   :  { %v3098_v51 = vld [vmem:[#allocation3 + $0x68] sm:$0xff]  ;;  %v2654_v26 = vpop.xlane.xlu1 %2653  ;;  %vm2947_vm11 = vcmp.eq.f32.partialorder %v6210_v60, inf }
 0x1bc   :  { %2777 = vst.msk [vmem:[#allocation3 + $0x78] sm:$0xff] %vm7284_vm7, %v2745_v21  ;;  %v2746_v30 = vmin.f32 %v2554_v36, %v2654_v26  ;;  %v6251_v13 = vmax.f32 %v3098_v51, 1e-12  ;;  %v600_v43 = vpop.f32.mrf.mxu1  ;;  %v2300_v36 = vld [vmem:[#allocation2 + $0x98] sm:$0xff]  ;;  %vm2949_vm7 = vcmp.eq.f32.partialorder %v6210_v60, 0.0  ;;  %v2950_v26 = vand.u32 2147483648, %v6210_v60 }
 0x1bd   :  { %v2402_v42 = vpop.xlane.xlu0 %2401  ;;  %v3949_v58 = vpop.eup %3948  ;;  %3477 = vxpose.xlu1.b32.cont [9/16] (narrow) %v3445_v56, 8  ;;  %v3099_v29 = vld [vmem:[#allocation3 + $0x70] sm:$0xff] }
 0x1be   :  { %v2490_v34 = vmax.f32 %v2298_v18, %v2402_v42  ;;  %2778 = vst.msk [vmem:[#allocation3 + $0x80] sm:$0xff] %vm7285_vm2, %v2746_v30  ;;  %v3220_v33 = vmul.f32 %v3949_v58, %v6165_v5  ;;  %v6262_v22 = vmax.f32 %v3099_v29, 1e-12  ;;  %3960 = vrsqrt.f32 %v6251_v13 }
 0x1bf   :  { %v3951_v9 = vpop.eup %3950  ;;  %v2407_v16 = vpop.xlane.xlu1 %2406  ;;  %3962 = vrsqrt.f32 %v6253_v61  ;;  %v3231_v18 = vand.u32 2147483648, %v6195_v46  ;;  %v2812_v4 = vld [vmem:[#allocation2 + $0x78] sm:$0xff] }
 0x1c0   :  { %2523 = vst.msk [vmem:[#allocation2 + $0x88] sm:$0xff] %vm7286_vm12, %v2490_v34  ;;  %v2491_v2 = vmax.f32 %v2299_v50, %v2407_v16  ;;  %v3222_v55 = vsel %vm3221_vm15, %v6165_v5, %v3220_v33  ;;  %v2939_v63 = vmul.f32 %v3951_v9, %v6171_v8  ;;  %3964 = vrsqrt.f32 %v6262_v22  ;;  %v602_v5 = vpop.f32.mrf.mxu1 }
 0x1c1   :  { %v2659_v6 = vpop.xlane.xlu0 %2658  ;;  %3478 = vxpose.xlu1.b32.cont [10/16] (narrow) %v3446_v27, 8  ;;  %v6280_v62 = vsel %vm3223_vm5, %v3224_v37, %v3222_v55  ;;  %vm3235_vm15 = vcmp.eq.f32.partialorder %v6228_v14, inf  ;;  %v6301_v34 = vmax.f32 %v2812_v4, 1e-12  ;;  %vm7289_vm5 = vmmov %vm7285_vm2  ;;  %v2557_v27 = vld [vmem:[#allocation3 + $0x98] sm:$0xff]  ;;  %v3238_v55 = vand.u32 2147483648, %v6228_v14 }
 0x1c2   :  { %v2747_v20 = vmin.f32 %v2555_v44, %v2659_v6  ;;  %2524 = vst.msk [vmem:[#allocation2 + $0x90] sm:$0xff] %vm7287_vm4, %v2491_v2  ;;  %v3383_v56 = vsub.f32 %v6276_v3, %v6280_v62  ;;  %v2941_v52 = vsel %vm2940_vm8, %v6171_v8, %v2939_v63  ;;  %v606_v23 = vpop.f32.mrf.mxu1  ;;  %v2813_v44 = vld [vmem:[#allocation2 + $0x80] sm:$0xff]  ;;  %vm3237_vm8 = vcmp.eq.f32.partialorder %v6228_v14, 0.0  ;;  %v2302_v4 = vld [vmem:[#allocation2 + $0xa8] sm:$0xff]  ;;  %vm7292_vm4 = vmmov %vm7285_vm2 }
 0x1c3   :  { %v3953_v21 = vpop.eup %3952  ;;  %v3100_v39 = vld [vmem:[#allocation3 + $0x78] sm:$0xff]  ;;  %v2664_v51 = vpop.xlane.xlu1 %2663  ;;  %v6308_v33 = vsel %vm2942_vm6, %v2943_v35, %v2941_v52  ;;  %vm2954_vm12 = vcmp.eq.f32.partialorder %v6230_v49, inf  ;;  %3966 = vrsqrt.f32 %v6301_v34  ;;  %vm7291_vm6 = vmmov %vm7285_vm2  ;;  %v2957_v5 = vand.u32 2147483648, %v6230_v49 }
 0x1c4   :  { %v3955_v38 = vpop.eup %3954  ;;  %2779 = vst.msk [vmem:[#allocation3 + $0x88] sm:$0xff] %vm7288_vm3, %v2747_v20  ;;  %v3227_v40 = vmul.f32 %v3953_v21, %v6195_v46  ;;  %v2748_v7 = vmin.f32 %v2556_v32, %v2664_v51  ;;  %v3415_v42 = vadd.f32 0.3, %v3383_v56  ;;  %v6303_v29 = vmax.f32 %v3100_v39, 1e-12  ;;  %v608_v9 = vpop.f32.mrf.mxu1 }
 0x1c5   :  { %v2412_v30 = vpop.xlane.xlu0 %2411  ;;  %v2946_v50 = vmul.f32 %v3955_v38, %v6210_v60  ;;  %v3957_v16 = vpop.eup %3956  ;;  %v6325_v20 = vmax.f32 %v2813_v44, 1e-12  ;;  %vm2961_vm3 = vcmp.eq.f32.partialorder %v6253_v61, inf  ;;  %v2559_v9 = vld [vmem:[#allocation3 + $0xa8] sm:$0xff] }
 0x1c6   :  { %v2492_v37 = vmax.f32 %v2300_v36, %v2412_v30  ;;  %v3229_v58 = vsel %vm3228_vm13, %v6195_v46, %v3227_v40  ;;  %2780 = vst.msk [vmem:[#allocation3 + $0x90] sm:$0xff] %vm7289_vm5, %v2748_v7  ;;  %v3447_v54 = vmax.f32 %v3415_v42, 0.0  ;;  %v3234_v43 = vmul.f32 %v3957_v16, %v6228_v14  ;;  %v612_v32 = vpop.f32.mrf.mxu1  ;;  %v2558_v36 = vld [vmem:[#allocation3 + $0xa0] sm:$0xff]  ;;  %vm7296_vm5 = vmmov %vm7285_vm2 }
 0x1c7   :  { %v6312_v31 = vsel %vm3230_vm1, %v3231_v18, %v3229_v58  ;;  %v2417_v6 = vpop.xlane.xlu1 %2416  ;;  %v3959_v8 = vpop.eup %3958  ;;  %v2948_v63 = vsel %vm2947_vm11, %v6210_v60, %v2946_v50  ;;  %3968 = vrsqrt.f32 %v6303_v29  ;;  %vm2956_vm13 = vcmp.eq.f32.partialorder %v6230_v49, 0.0  ;;  %v3101_v30 = vld [vmem:[#allocation3 + $0x80] sm:$0xff]  ;;  %v2814_v60 = vld [vmem:[#allocation2 + $0x88] sm:$0xff] }
 0x1c8   :  { %7290 = vst [vmem:[#allocation11_spill] sm:$0xff] %v6312_v31  ;;  %2525 = vst.msk [vmem:[#allocation2 + $0x98] sm:$0xff] %vm7285_vm2, %v2492_v37  ;;  %v3384_v2 = vsub.f32 %v6308_v33, %v6312_v31  ;;  %v2493_v35 = vmax.f32 %v2301_v45, %v2417_v6  ;;  %3479 = vxpose.xlu1.b32.cont [11/16] (narrow) %v3447_v54, 8  ;;  %v2953_v18 = vmul.f32 %v3959_v8, %v6230_v49  ;;  %v614_v38 = vpop.f32.mrf.mxu1 }
 0x1c9   :  { %v2669_v46 = vpop.xlane.xlu0 %2668  ;;  %v3236_v39 = vsel %vm3235_vm15, %v6228_v14, %v3234_v43  ;;  %vm3242_vm1 = vcmp.eq.f32.partialorder %v6251_v13, inf  ;;  %v6339_v40 = vsel %vm2949_vm7, %v2950_v26, %v2948_v63  ;;  %vm3244_vm11 = vcmp.eq.f32.partialorder %v6251_v13, 0.0  ;;  %v2303_v14 = vld [vmem:[#allocation2 + $0xb0] sm:$0xff]  ;;  %vm7295_vm7 = vmmov %vm7285_vm2 }
 0x1ca   :  { %v2749_v21 = vmin.f32 %v2557_v27, %v2669_v46  ;;  %v3416_v56 = vadd.f32 0.3, %v3384_v2  ;;  %2526 = vst.msk [vmem:[#allocation2 + $0xa0] sm:$0xff] %vm7291_vm6, %v2493_v35  ;;  %7293 = vst [vmem:[#allocation12_spill] sm:$0xff] %v6339_v40  ;;  %v6343_v7 = vsel %vm3237_vm8, %v3238_v55, %v3236_v39  ;;  %v3245_v45 = vand.u32 2147483648, %v6251_v13  ;;  %v618_v26 = vpop.f32.mrf.mxu1  ;;  %v2815_v39 = vld [vmem:[#allocation2 + $0x90] sm:$0xff] }
 0x1cb   :  { %v2674_v51 = vpop.xlane.xlu1 %2673  ;;  %7294 = vst [vmem:[#allocation13_spill] sm:$0xff] %v6343_v7  ;;  %v3961_v42 = vpop.eup %3960  ;;  %v3385_v37 = vsub.f32 %v6339_v40, %v6343_v7  ;;  %3970 = vrsqrt.f32 %v6325_v20  ;;  %v2955_v27 = vsel %vm2954_vm12, %v6230_v49, %v2953_v18  ;;  %vm2963_vm15 = vcmp.eq.f32.partialorder %v6253_v61, 0.0  ;;  %v3102_v32 = vld [vmem:[#allocation3 + $0x88] sm:$0xff]  ;;  %v2304_v49 = vld [vmem:[#allocation2 + $0xb8] sm:$0xff]  ;;  %vm7299_vm6 = vmmov %vm7285_vm2 }
 0x1cc   :  { %2781 = vst.msk [vmem:[#allocation3 + $0x98] sm:$0xff] %vm7292_vm4, %v2749_v21  ;;  %v3448_v52 = vmax.f32 %v3416_v56, 0.0  ;;  %v2750_v50 = vmin.f32 %v2558_v36, %v2674_v51  ;;  %v3963_v58 = vpop.eup %3962  ;;  %v3241_v54 = vmul.f32 %v3961_v42, %v6251_v13  ;;  %v6358_v2 = vmax.f32 %v3101_v30, 1e-12  ;;  %v620_v55 = vpop.f32.mrf.mxu1 }
 0x1cd   :  { %v2422_v23 = vpop.xlane.xlu0 %2421  ;;  %v3417_v16 = vadd.f32 0.3, %v3385_v37  ;;  %v2960_v6 = vmul.f32 %v3963_v58, %v6253_v61  ;;  %v3965_v8 = vpop.eup %3964  ;;  %v2964_v63 = vand.u32 2147483648, %v6253_v61  ;;  %vm3249_vm8 = vcmp.eq.f32.partialorder %v6262_v22, inf  ;;  %v3103_v58 = vld [vmem:[#allocation3 + $0x90] sm:$0xff] }
 0x1ce   :  { %v2494_v44 = vmax.f32 %v2302_v4, %v2422_v23  ;;  %3480 = vxpose.xlu1.b32.cont [12/16] (narrow) %v3448_v52, 8  ;;  %2782 = vst.msk [vmem:[#allocation3 + $0xa0] sm:$0xff] %vm7295_vm7, %v2750_v50  ;;  %v3243_v35 = vsel %vm3242_vm1, %v6251_v13, %v3241_v54  ;;  %v6366_v43 = vmax.f32 %v2814_v60, 1e-12  ;;  %v6370_v18 = vsel %vm2956_vm13, %v2957_v5, %v2955_v27  ;;  %v624_v38 = vpop.f32.mrf.mxu1  ;;  %v2560_v52 = vld [vmem:[#allocation3 + $0xb0] sm:$0xff]  ;;  %vm7302_vm1 = vmmov %vm7285_vm2 }
 0x1cf   :  { %v2427_v46 = vpop.xlane.xlu1 %2426  ;;  %v3449_v56 = vmax.f32 %v3417_v16, 0.0  ;;  %7297 = vst [vmem:[#allocation14_spill] sm:$0xff] %v6370_v18  ;;  %v6374_v4 = vsel %vm3244_vm11, %v3245_v45, %v3243_v35  ;;  %v2962_v42 = vsel %vm2961_vm3, %v6253_v61, %v2960_v6  ;;  %v3248_v50 = vmul.f32 %v3965_v8, %v6262_v22  ;;  %v2305_v8 = vld [vmem:[#allocation2 + $0xc0] sm:$0xff]  ;;  %v2561_v61 = vld [vmem:[#allocation3 + $0xb8] sm:$0xff]  ;;  %vm7303_vm11 = vmmov %vm7302_vm1 }
 0x1d0   :  { %2527 = vst.msk [vmem:[#allocation2 + $0xa8] sm:$0xff] %vm7296_vm5, %v2494_v44  ;;  %v2495_v36 = vmax.f32 %v2303_v14, %v2427_v46  ;;  %7298 = vst [vmem:[#allocation15_spill] sm:$0xff] %v6374_v4  ;;  %v3386_v30 = vsub.f32 %v6370_v18, %v6374_v4  ;;  %vm3251_vm12 = vcmp.eq.f32.partialorder %v6262_v22, 0.0  ;;  %v3252_v13 = vand.u32 2147483648, %v6262_v22  ;;  %v626_v23 = vpop.f32.mrf.mxu1  ;;  %v3967_v44 = vpop.eup %3966 }
 0x1d1   :  { %v2679_v21 = vpop.xlane.xlu0 %2678  ;;  %3972 = vrsqrt.f32 %v6358_v2  ;;  %v6386_v5 = vmax.f32 %v3102_v32, 1e-12  ;;  %v3250_v60 = vsel %vm3249_vm8, %v6262_v22, %v3248_v50  ;;  %v6393_v26 = vmax.f32 %v2815_v39, 1e-12  ;;  %v2562_v23 = vld [vmem:[#allocation3 + $0xc0] sm:$0xff]  ;;  %vm7304_vm5 = vmmov %vm7302_vm1 }
 0x1d2   :  { %v2751_v51 = vmin.f32 %v2559_v9, %v2679_v21  ;;  %2528 = vst.msk [vmem:[#allocation2 + $0xb0] sm:$0xff] %vm7285_vm2, %v2495_v36  ;;  %3481 = vxpose.xlu1.b32.cont [13/16] (narrow) %v3449_v56, 8  ;;  %v3418_v45 = vadd.f32 0.3, %v3386_v30  ;;  %3974 = vrsqrt.f32 %v6366_v43  ;;  %v6397_v54 = vsel %vm2963_vm15, %v2964_v63, %v2962_v42  ;;  %v630_v16 = vpop.f32.mrf.mxu1  ;;  %vm7307_vm2 = vmmov %vm7302_vm1 }
 0x1d3   :  { %v2684_v37 = vpop.xlane.xlu1 %2683  ;;  %7300 = vst [vmem:[#allocation16_spill] sm:$0xff] %v6397_v54  ;;  %v6401_v9 = vsel %vm3251_vm12, %v3252_v13, %v3250_v60  ;;  %vm2968_vm13 = vcmp.eq.f32.partialorder %v6301_v34, inf  ;;  %v2967_v35 = vmul.f32 %v3967_v44, %v6301_v34  ;;  %vm2970_vm4 = vcmp.eq.f32.partialorder %v6301_v34, 0.0  ;;  %v3104_v60 = vld [vmem:[#allocation3 + $0x98] sm:$0xff] }
 0x1d4   :  { %2783 = vst.msk [vmem:[#allocation3 + $0xa8] sm:$0xff] %vm7299_vm6, %v2751_v51  ;;  %v2752_v14 = vmin.f32 %v2560_v52, %v2684_v37  ;;  %7301 = vst [vmem:[#allocation17_spill] sm:$0xff] %v6401_v9  ;;  %v3450_v55 = vmax.f32 %v3418_v45, 0.0  ;;  %v3387_v46 = vsub.f32 %v6397_v54, %v6401_v9  ;;  %v3969_v32 = vpop.eup %3968  ;;  %v2971_v22 = vand.u32 2147483648, %v6301_v34  ;;  %v632_v21 = vpop.f32.mrf.mxu1  ;;  %v2816_v45 = vld [vmem:[#allocation2 + $0x98] sm:$0xff] }
 0x1d5   :  { %v2432_v27 = vpop.xlane.xlu0 %2431  ;;  %3976 = vrsqrt.f32 %v6386_v5  ;;  %v6411_v63 = vmax.f32 %v3103_v58, 1e-12  ;;  %v2969_v39 = vsel %vm2968_vm13, %v6301_v34, %v2967_v35  ;;  %v3255_v38 = vmul.f32 %v3969_v32, %v6303_v29  ;;  %v2306_v58 = vld [vmem:[#allocation2 + $0xc8] sm:$0xff] }
 0x1d6   :  { %v2496_v6 = vmax.f32 %v2304_v49, %v2432_v27  ;;  %2784 = vst.msk [vmem:[#allocation3 + $0xb0] sm:$0xff] %vm7302_vm1, %v2752_v14  ;;  %3482 = vxpose.xlu1.b32.cont [14/16] (narrow) %v3450_v55, 8  ;;  %v3419_v56 = vadd.f32 0.3, %v3387_v46  ;;  %3978 = vrsqrt.f32 %v6393_v26  ;;  %vm3256_vm3 = vcmp.eq.f32.partialorder %v6303_v29, inf }
 0x1d7   :  { %v2437_v36 = vpop.xlane.xlu1 %2436  ;;  %vm3258_vm7 = vcmp.eq.f32.partialorder %v6303_v29, 0.0  ;;  %v3259_v30 = vand.u32 2147483648, %v6303_v29  ;;  %v636_v42 = vpop.f32.mrf.mxu1  ;;  %v3257_v37 = vsel %vm3256_vm3, %v6303_v29, %v3255_v38  ;;  %vm2975_vm15 = vcmp.eq.f32.partialorder %v6325_v20, inf  ;;  %v2817_v29 = vld [vmem:[#allocation2 + $0xa0] sm:$0xff] }
 0x1d8   :  { %2529 = vst.msk [vmem:[#allocation2 + $0xb8] sm:$0xff] %vm7303_vm11, %v2496_v6  ;;  %v2497_v52 = vmax.f32 %v2305_v8, %v2437_v36  ;;  %v3971_v50 = vpop.eup %3970  ;;  %v3451_v13 = vmax.f32 %v3419_v56, 0.0  ;;  %v6427_v44 = vsel %vm2970_vm4, %v2971_v22, %v2969_v39  ;;  %vm2977_vm8 = vcmp.eq.f32.partialorder %v6325_v20, 0.0  ;;  %v3105_v8 = vld [vmem:[#allocation3 + $0xa0] sm:$0xff]  ;;  %v2307_v39 = vld [vmem:[#allocation2 + $0xd0] sm:$0xff]  ;;  %vm7308_vm11 = vmmov %vm7302_vm1 }
 0x1d9   :  { %v2689_v51 = vpop.xlane.xlu0 %2688  ;;  %7305 = vst [vmem:[#allocation18_spill] sm:$0xff] %v6427_v44  ;;  %v6429_v14 = vsel %vm3258_vm7, %v3259_v30, %v3257_v37  ;;  %v2978_v27 = vand.u32 2147483648, %v6325_v20  ;;  %3980 = vrsqrt.f32 %v6411_v63  ;;  %v638_v16 = vpop.f32.mrf.mxu1  ;;  %vm3263_vm12 = vcmp.eq.f32.partialorder %v6358_v2, inf }
 0x1da   :  { %v2753_v49 = vmin.f32 %v2561_v61, %v2689_v51  ;;  %2530 = vst.msk [vmem:[#allocation2 + $0xc0] sm:$0xff] %vm7304_vm5, %v2497_v52  ;;  %7306 = vst [vmem:[#allocation19_spill] sm:$0xff] %v6429_v14  ;;  %3483 = vxpose.xlu1.b32.cont [15/16] (narrow) %v3451_v13, 8  ;;  %v3388_v55 = vsub.f32 %v6427_v44, %v6429_v14  ;;  %vm3265_vm6 = vcmp.eq.f32.partialorder %v6358_v2, 0.0  ;;  %v3266_v34 = vand.u32 2147483648, %v6358_v2  ;;  %v2563_v51 = vld [vmem:[#allocation3 + $0xc8] sm:$0xff] }
 0x1db   :  { %v2694_v6 = vpop.xlane.xlu1 %2693  ;;  %v2974_v32 = vmul.f32 %v3971_v50, %v6325_v20  ;;  %v6441_v61 = vmax.f32 %v2816_v45, 1e-12  ;;  %v6443_v22 = vmax.f32 %v3104_v60, 1e-12  ;;  %vm2982_vm13 = vcmp.eq.f32.partialorder %v6366_v43, inf }
 0x1dc   :  { %2785 = vst.msk [vmem:[#allocation3 + $0xb8] sm:$0xff] %vm7307_vm2, %v2753_v49  ;;  %v2754_v46 = vmin.f32 %v2562_v23, %v2694_v6  ;;  %v3420_v56 = vadd.f32 0.3, %v3388_v55  ;;  %v6446_v38 = vmax.f32 %v2817_v29, 1e-12  ;;  %vm2984_vm4 = vcmp.eq.f32.partialorder %v6366_v43, 0.0  ;;  %vm7309_vm2 = vmmov %vm7302_vm1 }
 0x1dd   :  { %v2442_v35 = vpop.xlane.xlu0 %2441  ;;  %v2985_v52 = vand.u32 2147483648, %v6366_v43  ;;  %3982 = vrsqrt.f32 %v6441_v61  ;;  %v6452_v30 = vmax.f32 %v3105_v8, 1e-12  ;;  %vm3270_vm3 = vcmp.eq.f32.partialorder %v6386_v5, inf  ;;  %v2564_v6 = vld [vmem:[#allocation3 + $0xd0] sm:$0xff] }
 0x1de   :  { %v2498_v36 = vmax.f32 %v2306_v58, %v2442_v35  ;;  %2786 = vst.msk [vmem:[#allocation3 + $0xc0] sm:$0xff] %vm7302_vm1, %v2754_v46  ;;  %v3973_v50 = vpop.eup %3972  ;;  %v3452_v49 = vmax.f32 %v3420_v56, 0.0  ;;  %vm3272_vm7 = vcmp.eq.f32.partialorder %v6386_v5, 0.0  ;;  %3984 = vrsqrt.f32 %v6443_v22  ;;  %v2308_v35 = vld [vmem:[#allocation2 + $0xd8] sm:$0xff] }
 0x1df   :  { %v642_v21 = vpop.f32.mrf.mxu1  ;;  %v2447_v13 = vpop.xlane.xlu1 %2446  ;;  %v2976_v60 = vsel %vm2975_vm15, %v6325_v20, %v2974_v32  ;;  %v3262_v58 = vmul.f32 %v3973_v50, %v6358_v2  ;;  %3986 = vrsqrt.f32 %v6446_v38  ;;  %v3273_v8 = vand.u32 2147483648, %v6386_v5 }
 0x1e0   :  { %2531 = vst.msk [vmem:[#allocation2 + $0xc8] sm:$0xff] %vm7308_vm11, %v2498_v36  ;;  %v3975_v23 = vpop.eup %3974  ;;  %v2499_v45 = vmax.f32 %v2307_v39, %v2447_v13  ;;  %3484 = vxpose.xlu1.b32.end [16/16] (narrow) %v3452_v49, 8  ;;  %vm2989_vm5 = vcmp.eq.f32.partialorder %v6393_v26, inf  ;;  %vm2991_vm15 = vcmp.eq.f32.partialorder %v6393_v26, 0.0  ;;  %v2992_v32 = vand.u32 2147483648, %v6393_v26  ;;  %v2818_v21 = vld [vmem:[#allocation2 + $0xa8] sm:$0xff]  ;;  %vm7310_vm11 = vmmov %vm7309_vm2 }
 0x1e1   :  { %v644_v42 = vpop.f32.mrf.mxu1  ;;  %v2699_v37 = vpop.xlane.xlu0 %2698  ;;  %v2981_v55 = vmul.f32 %v3975_v23, %v6366_v43  ;;  %v3264_v46 = vsel %vm3263_vm12, %v6358_v2, %v3262_v58  ;;  %vm3277_vm1 = vcmp.eq.f32.partialorder %v6411_v63, inf  ;;  %3988 = vrsqrt.f32 %v6452_v30  ;;  %v3106_v49 = vld [vmem:[#allocation3 + $0xa8] sm:$0xff]  ;;  %v2309_v58 = vld [vmem:[#allocation2 + $0xe0] sm:$0xff] }
 0x1e2   :  { %v2755_v16 = vmin.f32 %v2563_v51, %v2699_v37  ;;  %2532 = vst.msk [vmem:[#allocation2 + $0xd0] sm:$0xff] %vm7309_vm2, %v2499_v45  ;;  %v3977_v56 = vpop.eup %3976  ;;  %v6477_v39 = vsel %vm2977_vm8, %v2978_v27, %v2976_v60  ;;  %v6481_v51 = vsel %vm3265_vm6, %v3266_v34, %v3264_v46  ;;  %vm3279_vm12 = vcmp.eq.f32.partialorder %v6411_v63, 0.0  ;;  %v2819_v27 = vld [vmem:[#allocation2 + $0xb0] sm:$0xff]  ;;  %vm7311_vm6 = vmmov %vm7309_vm2 }
 0x1e3   :  { %v648_v29 = vpop.f32.mrf.mxu1  ;;  %v2704_v42 = vpop.xlane.xlu1 %2703  ;;  %v3280_v50 = vand.u32 2147483648, %v6411_v63  ;;  %v3389_v23 = vsub.f32 %v6477_v39, %v6481_v51  ;;  %v2983_v20 = vsel %vm2982_vm13, %v6366_v43, %v2981_v55  ;;  %v3269_v2 = vmul.f32 %v3977_v56, %v6386_v5  ;;  %v2565_v55 = vld [vmem:[#allocation3 + $0xd8] sm:$0xff] }
 0x1e4   :  { %2787 = vst.msk [vmem:[#allocation3 + $0xc8] sm:$0xff] %vm7310_vm11, %v2755_v16  ;;  %v3979_v13 = vpop.eup %3978  ;;  %v2756_v37 = vmin.f32 %v2564_v6, %v2704_v42  ;;  %vm2996_vm8 = vcmp.eq.f32.partialorder %v6441_v61, inf  ;;  %v6493_v16 = vmax.f32 %v2818_v21, 1e-12  ;;  %vm2998_vm13 = vcmp.eq.f32.partialorder %v6441_v61, 0.0 }
 0x1e5   :  { %v650_v36 = vpop.f32.mrf.mxu1  ;;  %v2452_v45 = vpop.xlane.xlu0 %2451  ;;  %v2988_v29 = vmul.f32 %v3979_v13, %v6393_v26  ;;  %v3421_v46 = vadd.f32 0.3, %v3389_v23  ;;  %v3271_v6 = vsel %vm3270_vm3, %v6386_v5, %v3269_v2  ;;  %v6508_v21 = vsel %vm2984_vm4, %v2985_v52, %v2983_v20  ;;  %v2566_v20 = vld [vmem:[#allocation3 + $0xe0] sm:$0xff] }
 0x1e6   :  { %v2500_v60 = vmax.f32 %v2308_v35, %v2452_v45  ;;  %2788 = vst.msk [vmem:[#allocation3 + $0xd0] sm:$0xff] %vm7311_vm6, %v2756_v37  ;;  %v2999_v36 = vand.u32 2147483648, %v6441_v61  ;;  %v6501_v35 = vmax.f32 %v3106_v49, 1e-12  ;;  %v3981_v42 = vpop.eup %3980  ;;  %v6512_v13 = vsel %vm3272_vm7, %v3273_v8, %v3271_v6  ;;  %v3107_v49 = vld [vmem:[#allocation3 + $0xb0] sm:$0xff]  ;;  %v2310_v6 = vld [vmem:[#allocation2 + $0xe8] sm:$0xff]  ;;  %vm7312_vm7 = vmmov %vm7309_vm2 }
 0x1e7   :  { %v654_v34 = vpop.f32.mrf.mxu1  ;;  %v2457_v23 = vpop.xlane.xlu1 %2456  ;;  %3990 = vrsqrt.f32 %v6493_v16  ;;  %v6515_v37 = vmax.f32 %v2819_v27, 1e-12  ;;  %v3453_v45 = vmax.f32 %v3421_v46, 0.0  ;;  %v3390_v2 = vsub.f32 %v6508_v21, %v6512_v13 }
 0x1e8   :  { %2533 = vst.msk [vmem:[#allocation2 + $0xd8] sm:$0xff] %vm7309_vm2, %v2500_v60  ;;  %v2501_v60 = vmax.f32 %v2309_v58, %v2457_v23  ;;  %v2990_v43 = vsel %vm2989_vm5, %v6393_v26, %v2988_v29  ;;  %v3276_v8 = vmul.f32 %v3981_v42, %v6411_v63  ;;  %vm3284_vm4 = vcmp.eq.f32.partialorder %v6443_v22, inf  ;;  %vm7313_vm5 = vmmov %vm7309_vm2 }
 0x1e9   :  { %v656_v56 = vpop.f32.mrf.mxu1  ;;  %v2709_v34 = vpop.xlane.xlu0 %2708  ;;  %vm3286_vm3 = vcmp.eq.f32.partialorder %v6443_v22, 0.0  ;;  %3501 = vxpose.xlu0.b32.start [1/16] (narrow) %v3453_v45, 8  ;;  %v3422_v27 = vadd.f32 0.3, %v3390_v2  ;;  %v3287_v58 = vand.u32 2147483648, %v6443_v22  ;;  %3992 = vrsqrt.f32 %v6501_v35 }
 0x1ea   :  { %v2757_v5 = vmin.f32 %v2565_v55, %v2709_v34  ;;  %2534 = vst.msk [vmem:[#allocation2 + $0xe0] sm:$0xff] %vm7312_vm7, %v2501_v60  ;;  %v6528_v46 = vmax.f32 %v3107_v49, 1e-12  ;;  %v3983_v55 = vpop.eup %3982  ;;  %v6535_v56 = vsel %vm2991_vm15, %v2992_v32, %v2990_v43  ;;  %v3278_v42 = vsel %vm3277_vm1, %v6411_v63, %v3276_v8  ;;  %vm7314_vm1 = vmmov %vm7309_vm2 }
 0x1eb   :  { %v660_v52 = vpop.f32.mrf.mxu1  ;;  %v2714_v23 = vpop.xlane.xlu1 %2713  ;;  %vm3003_vm11 = vcmp.eq.f32.partialorder %v6446_v38, inf  ;;  %3994 = vrsqrt.f32 %v6515_v37  ;;  %v3454_v45 = vmax.f32 %v3422_v27, 0.0  ;;  %v6544_v2 = vsel %vm3279_vm12, %v3280_v50, %v3278_v42  ;;  %v2567_v50 = vld [vmem:[#allocation3 + $0xe8] sm:$0xff]  ;;  %vm7315_vm12 = vmmov %vm7314_vm1 }
 0x1ec   :  { %2789 = vst.msk [vmem:[#allocation3 + $0xd8] sm:$0xff] %vm7313_vm5, %v2757_v5  ;;  %v3985_v49 = vpop.eup %3984  ;;  %v2758_v34 = vmin.f32 %v2566_v20, %v2714_v23  ;;  %v2995_v26 = vmul.f32 %v3983_v55, %v6441_v61  ;;  %v3391_v52 = vsub.f32 %v6535_v56, %v6544_v2  ;;  %vm3005_vm15 = vcmp.eq.f32.partialorder %v6446_v38, 0.0  ;;  %vm7316_vm6 = vmmov %vm7314_vm1 }
 0x1ed   :  { %v662_v29 = vpop.f32.mrf.mxu1  ;;  %v2462_v60 = vpop.xlane.xlu0 %2461  ;;  %v3283_v8 = vmul.f32 %v3985_v49, %v6443_v22  ;;  %3502 = vxpose.xlu0.b32.cont [2/16] (narrow) %v3454_v45, 8  ;;  %v3006_v27 = vand.u32 2147483648, %v6446_v38  ;;  %3996 = vrsqrt.f32 %v6528_v46  ;;  %vm7317_vm2 = vmmov %vm7314_vm1  ;;  %vm3010_vm7 = vcmp.eq.f32.partialorder %v6493_v16, inf }
 0x1ee   :  { %v3987_v43 = vpop.eup %3986  ;;  %v2502_v5 = vmax.f32 %v2310_v6, %v2462_v60  ;;  %v2311_v29 = vld [vmem:[#allocation2 + $0xf0] sm:$0xff]  ;;  %2790 = vst.msk [vmem:[#allocation3 + $0xe0] sm:$0xff] %vm7314_vm1, %v2758_v34  ;;  %v2997_v63 = vsel %vm2996_vm8, %v6441_v61, %v2995_v26  ;;  %v3423_v42 = vadd.f32 0.3, %v3391_v52  ;;  %vm3291_vm8 = vcmp.eq.f32.partialorder %v6452_v30, inf  ;;  %v2820_v34 = vld [vmem:[#allocation2 + $0xb8] sm:$0xff] }
 0x1ef   :  { %v666_v32 = vpop.f32.mrf.mxu1  ;;  %v3002_v20 = vmul.f32 %v3987_v43, %v6446_v38  ;;  %v3989_v55 = vpop.eup %3988  ;;  %v6561_v23 = vsel %vm2998_vm13, %v2999_v36, %v2997_v63  ;;  %v3285_v49 = vsel %vm3284_vm4, %v6443_v22, %v3283_v8  ;;  %v3108_v43 = vld [vmem:[#allocation3 + $0xb8] sm:$0xff]  ;;  %v2568_v22 = vld [vmem:[#allocation3 + $0xf0] sm:$0xff]  ;;  %vm3293_vm13 = vcmp.eq.f32.partialorder %v6452_v30, 0.0 }
 0x1f0   :  { %2535 = vst.msk [vmem:[#allocation2 + $0xe8] sm:$0xff] %vm7315_vm12, %v2502_v5  ;;  %v2467_v45 = vpop.xlane.xlu1 %2466  ;;  %v6569_v60 = vsel %vm3286_vm3, %v3287_v58, %v3285_v49  ;;  %v3290_v36 = vmul.f32 %v3989_v55, %v6452_v30  ;;  %v3455_v5 = vmax.f32 %v3423_v42, 0.0  ;;  %v6587_v55 = vmax.f32 %v2820_v34, 1e-12  ;;  %vm7318_vm3 = vmmov %vm7314_vm1 }
 0x1f1   :  { %v668_v6 = vpop.f32.mrf.mxu1  ;;  %v2719_v26 = vpop.xlane.xlu0 %2718  ;;  %v2503_v32 = vmax.f32 %v2311_v29, %v2467_v45  ;;  %v3004_v61 = vsel %vm3003_vm11, %v6446_v38, %v3002_v20  ;;  %v3392_v8 = vsub.f32 %v6561_v23, %v6569_v60  ;;  %v2312_v20 = vld [vmem:[#allocation2 + $0xf8] sm:$0xff]  ;;  %v6592_v38 = vmax.f32 %v3108_v43, 1e-12 }
 0x1f2   :  { %v2759_v63 = vmin.f32 %v2567_v50, %v2719_v26  ;;  %v3294_v6 = vand.u32 2147483648, %v6452_v30  ;;  %v6581_v58 = vsel %vm3005_vm15, %v3006_v27, %v3004_v61  ;;  %v3292_v29 = vsel %vm3291_vm8, %v6452_v30, %v3290_v36  ;;  %3503 = vxpose.xlu0.b32.cont [3/16] (narrow) %v3455_v5, 8 }
 0x1f3   :  { %v672_v52 = vpop.f32.mrf.mxu1  ;;  %2536 = vst.msk [vmem:[#allocation2 + $0xf0] sm:$0xff] %vm7316_vm6, %v2503_v32  ;;  %v3424_v50 = vadd.f32 0.3, %v3392_v8  ;;  %vm3572_vm4 = vcmp.gt.f32.partialorder %v6481_v51, %v6477_v39  ;;  %3998 = vrsqrt.f32 %v6587_v55  ;;  %v2821_v32 = vld [vmem:[#allocation2 + $0xc0] sm:$0xff]  ;;  %v6603_v61 = vsel %vm3562_vm0, 1.0, %v7074_v11  ;;  %vm7319_vm0 = vmmov %vm7314_vm1 }
 0x1f4   :  { %2791 = vst.msk [vmem:[#allocation3 + $0xe8] sm:$0xff] %vm7317_vm2, %v2759_v63  ;;  %v6590_v49 = vsel %vm3293_vm13, %v3294_v6, %v3292_v29  ;;  %v2724_v45 = vpop.xlane.xlu1 %2723  ;;  %v3991_v27 = vpop.eup %3990  ;;  %v3109_v8 = vld [vmem:[#allocation3 + $0xc0] sm:$0xff]  ;;  %v6610_v63 = vsel %vm3563_vm14, 1.0, %v7074_v11  ;;  %4000 = vrsqrt.f32 %v6592_v38  ;;  %vm3012_vm14 = vcmp.eq.f32.partialorder %v6493_v16, 0.0  ;;  %vm7320_vm15 = vmmov %vm7319_vm0 }
 0x1f5   :  { %v674_v42 = vpop.f32.mrf.mxu1  ;;  %v3393_v30 = vsub.f32 %v6581_v58, %v6590_v49  ;;  %v2760_v26 = vmin.f32 %v2568_v22, %v2724_v45  ;;  %v2472_v34 = vpop.xlane.xlu0 %2471  ;;  %v3456_v43 = vmax.f32 %v3424_v50, 0.0  ;;  %v3009_v5 = vmul.f32 %v3991_v27, %v6493_v16 }
 0x1f6   :  { %v2504_v52 = vmax.f32 %v2312_v20, %v2472_v34  ;;  %v3993_v29 = vpop.eup %3992  ;;  %v3013_v57 = vand.u32 2147483648, %v6493_v16  ;;  %vm3298_vm5 = vcmp.eq.f32.partialorder %v6501_v35, inf  ;;  %v6625_v1 = vmax.f32 %v2821_v32, 1e-12 }
 0x1f7   :  { %v678_v36 = vpop.f32.mrf.mxu1  ;;  %v3425_v6 = vadd.f32 0.3, %v3393_v30  ;;  %2792 = vst.msk [vmem:[#allocation3 + $0xf0] sm:$0xff] %vm7318_vm3, %v2760_v26  ;;  %3504 = vxpose.xlu0.b32.cont [4/16] (narrow) %v3456_v43, 8  ;;  %v3011_v50 = vsel %vm3010_vm7, %v6493_v16, %v3009_v5  ;;  %v3297_v59 = vmul.f32 %v3993_v29, %v6501_v35  ;;  %v6629_v45 = vmax.f32 %v3109_v8, 1e-12 }
 0x1f8   :  { %2537 = vst.msk [vmem:[#allocation2 + $0xf8] sm:$0xff] %vm7319_vm0, %v2504_v52  ;;  %v3995_v20 = vpop.eup %3994  ;;  %v3301_v30 = vand.u32 2147483648, %v6501_v35  ;;  %4002 = vrsqrt.f32 %v6625_v1  ;;  %vm3300_vm10 = vcmp.eq.f32.partialorder %v6501_v35, 0.0  ;;  %vm3017_vm11 = vcmp.eq.f32.partialorder %v6515_v37, inf  ;;  %v2822_v36 = vld [vmem:[#allocation2 + $0xc8] sm:$0xff]  ;;  %v2823_v52 = vld [vmem:[#allocation2 + $0xd0] sm:$0xff] }
 0x1f9   :  { %v680_v22 = vpop.f32.mrf.mxu1  ;;  %v3457_v42 = vmax.f32 %v3425_v6, 0.0  ;;  %v2729_v48 = vpop.xlane.xlu0 %2728  ;;  %v3016_v34 = vmul.f32 %v3995_v20, %v6515_v37  ;;  %v3299_v32 = vsel %vm3298_vm5, %v6501_v35, %v3297_v59  ;;  %4004 = vrsqrt.f32 %v6629_v45  ;;  %v3110_v43 = vld [vmem:[#allocation3 + $0xc8] sm:$0xff]  ;;  %v3111_v16 = vld [vmem:[#allocation3 + $0xd0] sm:$0xff] }
 0x1fa   :  { %v2761_v26 = vmin.f32 %v2569_v53, %v2729_v48  ;;  %v3997_v8 = vpop.eup %3996  ;;  %v6640_v6 = vsel %vm3012_vm14, %v3013_v57, %v3011_v50  ;;  %v6642_v53 = vsel %vm3300_vm10, %v3301_v30, %v3299_v32  ;;  %v3020_v35 = vand.u32 2147483648, %v6515_v37 }
 0x1fb   :  { %v684_v27 = vpop.f32.mrf.mxu1  ;;  %3505 = vxpose.xlu0.b32.cont [5/16] (narrow) %v3457_v42, 8  ;;  %vm3305_vm1 = vcmp.eq.f32.partialorder %v6528_v46, inf  ;;  %v3394_v22 = vsub.f32 %v6640_v6, %v6642_v53  ;;  %v3018_v29 = vsel %vm3017_vm11, %v6515_v37, %v3016_v34  ;;  %v3304_v20 = vmul.f32 %v3997_v8, %v6528_v46 }
 0x1fc   :  { %2793 = vst.msk [vmem:[#allocation3 + $0xf8] sm:$0xff] %vm7320_vm15, %v2761_v26  ;;  %v3308_v42 = vand.u32 2147483648, %v6528_v46  ;;  %v6652_v50 = vmax.f32 %v2822_v36, 1e-12  ;;  %v6654_v59 = vmax.f32 %v3110_v43, 1e-12  ;;  %vm3573_vm12 = vcmp.gt.f32.partialorder %v6512_v13, %v6508_v21 }
 0x1fd   :  { %v686_v5 = vpop.f32.mrf.mxu1  ;;  %v6656_v48 = vmax.f32 %v2823_v52, 1e-12  ;;  %v3426_v27 = vadd.f32 0.3, %v3394_v22  ;;  %vm3019_vm8 = vcmp.eq.f32.partialorder %v6515_v37, 0.0  ;;  %v3306_v30 = vsel %vm3305_vm1, %v6528_v46, %v3304_v20  ;;  %v2824_v26 = vld [vmem:[#allocation2 + $0xd8] sm:$0xff] }
 0x1fe   :  { %vm3307_vm6 = vcmp.eq.f32.partialorder %v6528_v46, 0.0  ;;  %v6663_v32 = vsel %vm3019_vm8, %v3020_v35, %v3018_v29  ;;  %4006 = vrsqrt.f32 %v6652_v50  ;;  %v6668_v43 = vmax.f32 %v3111_v16, 1e-12 }
 0x1ff   :  { %v690_v57 = vpop.f32.mrf.mxu1  ;;  %v6665_v36 = vsel %vm3307_vm6, %v3308_v42, %v3306_v30  ;;  %v3458_v52 = vmax.f32 %v3426_v27, 0.0  ;;  %vm3024_vm13 = vcmp.eq.f32.partialorder %v6587_v55, inf  ;;  %4008 = vrsqrt.f32 %v6654_v59  ;;  %v2825_v27 = vld [vmem:[#allocation2 + $0xe0] sm:$0xff] }
 0x200   :  { %v3395_v5 = vsub.f32 %v6663_v32, %v6665_v36  ;;  %v3999_v46 = vpop.eup %3998  ;;  %vm3026_vm2 = vcmp.eq.f32.partialorder %v6587_v55, 0.0  ;;  %v3027_v8 = vand.u32 2147483648, %v6587_v55  ;;  %4010 = vrsqrt.f32 %v6656_v48  ;;  %v3112_v57 = vld [vmem:[#allocation3 + $0xd8] sm:$0xff] }
 0x201   :  { %v692_v34 = vpop.f32.mrf.mxu1  ;;  %v6677_v35 = vmax.f32 %v2824_v26, 1e-12  ;;  %3506 = vxpose.xlu0.b32.cont [6/16] (narrow) %v3458_v52, 8  ;;  %v3023_v29 = vmul.f32 %v3999_v46, %v6587_v55  ;;  %vm3312_vm3 = vcmp.eq.f32.partialorder %v6592_v38, inf  ;;  %vm3314_vm7 = vcmp.eq.f32.partialorder %v6592_v38, 0.0  ;;  %v4001_v42 = vpop.eup %4000 }
 0x202   :  { %v3427_v22 = vadd.f32 0.3, %v3395_v5  ;;  %v3315_v16 = vand.u32 2147483648, %v6592_v38  ;;  %vm3031_vm0 = vcmp.eq.f32.partialorder %v6625_v1, inf  ;;  %vm3033_vm14 = vcmp.eq.f32.partialorder %v6625_v1, 0.0  ;;  %v3113_v5 = vld [vmem:[#allocation3 + $0xe0] sm:$0xff] }
 0x203   :  { %v696_v37 = vpop.f32.mrf.mxu1  ;;  %4012 = vrsqrt.f32 %v6668_v43  ;;  %v3025_v26 = vsel %vm3024_vm13, %v6587_v55, %v3023_v29  ;;  %v3311_v34 = vmul.f32 %v4001_v42, %v6592_v38  ;;  %v3034_v52 = vand.u32 2147483648, %v6625_v1 }
 0x204   :  { %v3459_v30 = vmax.f32 %v3427_v22, 0.0  ;;  %vm3319_vm5 = vcmp.eq.f32.partialorder %v6629_v45, inf  ;;  %vm3321_vm10 = vcmp.eq.f32.partialorder %v6629_v45, 0.0  ;;  %v3322_v46 = vand.u32 2147483648, %v6629_v45 }
 0x205   :  { %v698_v20 = vpop.f32.mrf.mxu1  ;;  %4014 = vrsqrt.f32 %v6677_v35  ;;  %v4003_v22 = vpop.eup %4002  ;;  %v3313_v29 = vsel %vm3312_vm3, %v6592_v38, %v3311_v34  ;;  %vm3038_vm11 = vcmp.eq.f32.partialorder %v6652_v50, inf  ;;  %v3041_v42 = vand.u32 2147483648, %v6652_v50 }
 0x206   :  { %v2826_v20 = vld [vmem:[#allocation2 + $0xe8] sm:$0xff]  ;;  %3507 = vxpose.xlu0.b32.cont [7/16] (narrow) %v3459_v30, 8  ;;  %v6702_v19 = vmax.f32 %v2825_v27, 1e-12  ;;  %v4005_v24 = vpop.eup %4004  ;;  %v6706_v14 = vsel %vm3026_vm2, %v3027_v8, %v3025_v26  ;;  %v6710_v30 = vsel %vm3314_vm7, %v3315_v16, %v3313_v29  ;;  %v3030_v34 = vmul.f32 %v4003_v22, %v6625_v1 }
 0x207   :  { %v702_v37 = vpop.f32.mrf.mxu1  ;;  %vm3040_vm15 = vcmp.eq.f32.partialorder %v6652_v50, 0.0  ;;  %v6714_v44 = vmax.f32 %v3113_v5, 1e-12  ;;  %vm3326_vm1 = vcmp.eq.f32.partialorder %v6654_v59, inf  ;;  %vm3328_vm8 = vcmp.eq.f32.partialorder %v6654_v59, 0.0 }
 0x208   :  { %v6700_v37 = vmax.f32 %v3112_v57, 1e-12  ;;  %v3396_v57 = vsub.f32 %v6706_v14, %v6710_v30  ;;  %v3032_v38 = vsel %vm3031_vm0, %v6625_v1, %v3030_v34  ;;  %v6726_v8 = vmax.f32 %v2826_v20, 1e-12  ;;  %v3114_v1 = vld [vmem:[#allocation3 + $0xe8] sm:$0xff] }
 0x209   :  { %v704_v11 = vpop.f32.mrf.mxu1  ;;  %v3329_v27 = vand.u32 2147483648, %v6654_v59  ;;  %vm3045_vm6 = vcmp.eq.f32.partialorder %v6656_v48, inf  ;;  %v6735_v5 = vsel %vm3033_vm14, %v3034_v52, %v3032_v38  ;;  %vm3047_vm13 = vcmp.eq.f32.partialorder %v6656_v48, 0.0  ;;  %v2827_v52 = vld [vmem:[#allocation2 + $0xf0] sm:$0xff] }
 0x20a   :  { %v3318_v11 = vmul.f32 %v4005_v24, %v6629_v45  ;;  %4016 = vrsqrt.f32 %v6700_v37  ;;  %v3428_v16 = vadd.f32 0.3, %v3396_v57  ;;  %v3048_v57 = vand.u32 2147483648, %v6656_v48  ;;  %v3115_v38 = vld [vmem:[#allocation3 + $0xf0] sm:$0xff] }
 0x20b   :  { %v708_v55 = vpop.f32.mrf.mxu1  ;;  %4018 = vrsqrt.f32 %v6702_v19  ;;  %v4007_v20 = vpop.eup %4006  ;;  %vm3333_vm2 = vcmp.eq.f32.partialorder %v6668_v43, inf  ;;  %vm3335_vm3 = vcmp.eq.f32.partialorder %v6668_v43, 0.0  ;;  %vm3052_vm7 = vcmp.eq.f32.partialorder %v6677_v35, inf }
 0x20c   :  { %v3320_v24 = vsel %vm3319_vm5, %v6629_v45, %v3318_v11  ;;  %4020 = vrsqrt.f32 %v6714_v44  ;;  %v3460_v29 = vmax.f32 %v3428_v16, 0.0  ;;  %v4009_v55 = vpop.eup %4008  ;;  %v3037_v45 = vmul.f32 %v4007_v20, %v6652_v50 }
 0x20d   :  { %v710_v26 = vpop.f32.mrf.mxu1  ;;  %v6739_v22 = vsel %vm3321_vm10, %v3322_v46, %v3320_v24  ;;  %v3336_v46 = vand.u32 2147483648, %v6668_v43  ;;  %4022 = vrsqrt.f32 %v6726_v8  ;;  %v4011_v16 = vpop.eup %4010  ;;  %v3055_v9 = vand.u32 2147483648, %v6677_v35 }
 0x20e   :  { %v3397_v34 = vsub.f32 %v6735_v5, %v6739_v22  ;;  %3508 = vxpose.xlu0.b32.cont [8/16] (narrow) %v3460_v29, 8  ;;  %v3325_v26 = vmul.f32 %v4009_v55, %v6654_v59  ;;  %v3039_v20 = vsel %vm3038_vm11, %v6652_v50, %v3037_v45  ;;  %v3044_v54 = vmul.f32 %v4011_v16, %v6656_v48 }
 0x20f   :  { %v714_v11 = vpop.f32.mrf.mxu1  ;;  %vm3054_vm0 = vcmp.eq.f32.partialorder %v6677_v35, 0.0  ;;  %vm3340_vm14 = vcmp.eq.f32.partialorder %v6700_v37, inf  ;;  %v6760_v4 = vmax.f32 %v3114_v1, 1e-12  ;;  %v6762_v29 = vmax.f32 %v2827_v52, 1e-12 }
 0x210   :  { %v3429_v24 = vadd.f32 0.3, %v3397_v34  ;;  %v4013_v34 = vpop.eup %4012  ;;  %v6766_v18 = vsel %vm3040_vm15, %v3041_v42, %v3039_v20  ;;  %v3327_v45 = vsel %vm3326_vm1, %v6654_v59, %v3325_v26  ;;  %v3046_v1 = vsel %vm3045_vm6, %v6656_v48, %v3044_v54  ;;  %v2828_v48 = vld [vmem:[#allocation2 + $0xf8] sm:$0xff] }
 0x211   :  { %v716_v11 = vpop.f32.mrf.mxu1  ;;  %v6775_v7 = vsel %vm3328_vm8, %v3329_v27, %v3327_v45  ;;  %v3332_v52 = vmul.f32 %v4013_v34, %v6668_v43  ;;  %4024 = vrsqrt.f32 %v6760_v4  ;;  %vm3342_vm5 = vcmp.eq.f32.partialorder %v6700_v37, 0.0 }
 0x212   :  { %v3461_v55 = vmax.f32 %v3429_v24, 0.0  ;;  %v6771_v11 = vmax.f32 %v3115_v38, 1e-12  ;;  %v4015_v50 = vpop.eup %4014  ;;  %v3398_v42 = vsub.f32 %v6766_v18, %v6775_v7  ;;  %v3343_v38 = vand.u32 2147483648, %v6700_v37 }
 0x213   :  { %v720_v16 = vpop.f32.mrf.mxu1  ;;  %vm3059_vm10 = vcmp.eq.f32.partialorder %v6702_v19, inf  ;;  %v3334_v54 = vsel %vm3333_vm2, %v6668_v43, %v3332_v52  ;;  %v3051_v27 = vmul.f32 %v4015_v50, %v6677_v35  ;;  %vm3061_vm11 = vcmp.eq.f32.partialorder %v6702_v19, 0.0 }
 0x214   :  { %3509 = vxpose.xlu0.b32.cont [9/16] (narrow) %v3461_v55, 8  ;;  %v3062_v24 = vand.u32 2147483648, %v6702_v19  ;;  %4026 = vrsqrt.f32 %v6762_v29  ;;  %v3430_v26 = vadd.f32 0.3, %v3398_v42  ;;  %v6796_v20 = vsel %vm3047_vm13, %v3048_v57, %v3046_v1  ;;  %v3116_v57 = vld [vmem:[#allocation3 + $0xf8] sm:$0xff] }
 0x215   :  { %v722_v59 = vpop.f32.mrf.mxu1  ;;  %v6800_v34 = vsel %vm3335_vm3, %v3336_v46, %v3334_v54  ;;  %vm3347_vm15 = vcmp.eq.f32.partialorder %v6714_v44, inf  ;;  %v3053_v52 = vsel %vm3052_vm7, %v6677_v35, %v3051_v27  ;;  %vm3349_vm1 = vcmp.eq.f32.partialorder %v6714_v44, 0.0 }
 0x216   :  { %v3399_v16 = vsub.f32 %v6796_v20, %v6800_v34  ;;  %4028 = vrsqrt.f32 %v6771_v11  ;;  %v3462_v46 = vmax.f32 %v3430_v26, 0.0  ;;  %v3350_v50 = vand.u32 2147483648, %v6714_v44 }
 0x217   :  { %v726_v55 = vpop.f32.mrf.mxu1  ;;  %v4017_v45 = vpop.eup %4016  ;;  %vm3066_vm8 = vcmp.eq.f32.partialorder %v6726_v8, inf  ;;  %vm3068_vm6 = vcmp.eq.f32.partialorder %v6726_v8, 0.0  ;;  %v3069_v27 = vand.u32 2147483648, %v6726_v8  ;;  %v6818_v40 = vsel %vm3054_vm0, %v3055_v9, %v3053_v52 }
 0x218   :  { %v4019_v43 = vpop.eup %4018  ;;  %v3339_v1 = vmul.f32 %v4017_v45, %v6700_v37  ;;  %v3431_v59 = vadd.f32 0.3, %v3399_v16  ;;  %3510 = vxpose.xlu0.b32.cont [10/16] (narrow) %v3462_v46, 8  ;;  %vm3354_vm13 = vcmp.eq.f32.partialorder %v6760_v4, inf  ;;  %v6824_v45 = vmax.f32 %v2828_v48, 1e-12 }
 0x219   :  { %v728_v42 = vpop.f32.mrf.mxu1  ;;  %v3058_v54 = vmul.f32 %v4019_v43, %v6702_v19  ;;  %v4021_v55 = vpop.eup %4020  ;;  %v6826_v16 = vmax.f32 %v3116_v57, 1e-12  ;;  %vm3356_vm2 = vcmp.eq.f32.partialorder %v6760_v4, 0.0  ;;  %v3357_v57 = vand.u32 2147483648, %v6760_v4 }
 0x21a   :  { %v3341_v26 = vsel %vm3340_vm14, %v6700_v37, %v3339_v1  ;;  %v3463_v42 = vmax.f32 %v3431_v59, 0.0  ;;  %v3346_v35 = vmul.f32 %v4021_v55, %v6714_v44  ;;  %v4023_v52 = vpop.eup %4022  ;;  %vm3073_vm3 = vcmp.eq.f32.partialorder %v6762_v29, inf }
 0x21b   :  { %v732_v43 = vpop.f32.mrf.mxu1  ;;  %v6830_v31 = vsel %vm3342_vm5, %v3343_v38, %v3341_v26  ;;  %v3060_v9 = vsel %vm3059_vm10, %v6702_v19, %v3058_v54  ;;  %4030 = vrsqrt.f32 %v6824_v45  ;;  %v3065_v46 = vmul.f32 %v4023_v52, %v6726_v8 }
 0x21c   :  { %v3400_v48 = vsub.f32 %v6818_v40, %v6830_v31  ;;  %v3348_v38 = vsel %vm3347_vm15, %v6714_v44, %v3346_v35  ;;  %vm3075_vm7 = vcmp.eq.f32.partialorder %v6762_v29, 0.0  ;;  %v3076_v1 = vand.u32 2147483648, %v6762_v29  ;;  %3511 = vxpose.xlu0.b32.cont [11/16] (narrow) %v3463_v42, 8 }
 0x21d   :  { %v734_v37 = vpop.f32.mrf.mxu1  ;;  %v7321_v59 = vmov 0.0   ;;  %v6856_v26 = vsel %vm3061_vm11, %v3062_v24, %v3060_v9  ;;  %v6860_v43 = vsel %vm3349_vm1, %v3350_v50, %v3348_v38  ;;  %vm3361_vm0 = vcmp.eq.f32.partialorder %v6771_v11, inf }
 0x21e   :  { %v6852_v54 = vsel %vm3572_vm4, 1.0, %v7321_v59  ;;  %v3432_v55 = vadd.f32 0.3, %v3400_v48  ;;  %4032 = vrsqrt.f32 %v6826_v16  ;;  %v3401_v39 = vsub.f32 %v6856_v26, %v6860_v43  ;;  %v4025_v24 = vpop.eup %4024 }
 0x21f   :  { %v738_v35 = vpop.f32.mrf.mxu1  ;;  %v3067_v51 = vsel %vm3066_vm8, %v6726_v8, %v3065_v46  ;;  %vm3363_vm4 = vcmp.eq.f32.partialorder %v6771_v11, 0.0  ;;  %v3364_v19 = vand.u32 2147483648, %v6771_v11  ;;  %v3869_v42 = vpack.i.bf16 %v6852_v54, %v6141_v17 }
 0x220   :  { %v3464_v44 = vmax.f32 %v3432_v55, 0.0  ;;  %v6873_v50 = vsel %vm3068_vm6, %v3069_v27, %v3067_v51  ;;  %v6881_v9 = vsel %vm3573_vm12, 1.0, %v7321_v59  ;;  %v3433_v48 = vadd.f32 0.3, %v3401_v39 }
 0x221   :  { %v740_v52 = vpop.f32.mrf.mxu1  ;;  %v3353_v37 = vmul.f32 %v4025_v24, %v6760_v4  ;;  %v3871_v38 = vpack.i.bf16 %v6881_v9, %v6147_v41  ;;  %vm3574_vm14 = vcmp.gt.f32.partialorder %v6544_v2, %v6535_v56  ;;  %v4027_v8 = vpop.eup %4026  ;;  %vm3575_vm5 = vcmp.gt.f32.partialorder %v6569_v60, %v6561_v23  ;;  %v7324_v9 = vld [vmem:[#allocation13_spill] sm:$0xff] }
 0x222   :  { %3512 = vxpose.xlu0.b32.cont [12/16] (narrow) %v3464_v44, 8  ;;  %v6889_v27 = vsel %vm3574_vm14, 1.0, %v7321_v59  ;;  %vm3576_vm12 = vcmp.gt.f32.partialorder %v6590_v49, %v6581_v58  ;;  %vm3577_vm10 = vcmp.gt.f32.partialorder %v6642_v53, %v6640_v6  ;;  %v3465_v13 = vmax.f32 %v3433_v48, 0.0 }
 0x223   :  { %v744_v21 = vpop.f32.mrf.mxu1  ;;  %v3355_v56 = vsel %vm3354_vm13, %v6760_v4, %v3353_v37  ;;  %v3072_v2 = vmul.f32 %v4027_v8, %v6762_v29  ;;  %v3873_v46 = vpack.i.bf16 %v6889_v27, %v6156_v15  ;;  %v4029_v55 = vpop.eup %4028  ;;  %v6908_v60 = vsel %vm3575_vm5, 1.0, %v7321_v59  ;;  %v7322_v15 = vld [vmem:[#allocation11_spill] sm:$0xff] }
 0x224   :  { %v6905_v23 = vsel %vm3356_vm2, %v3357_v57, %v3355_v56  ;;  %v6911_v58 = vsel %vm3576_vm12, 1.0, %v7321_v59  ;;  %v6914_v49 = vsel %vm3577_vm10, 1.0, %v7321_v59  ;;  %v3360_v4 = vmul.f32 %v4029_v55, %v6771_v11  ;;  %v7326_v27 = vld [vmem:[#allocation15_spill] sm:$0xff] }
 0x225   :  { %v746_v6 = vpop.f32.mrf.mxu1  ;;  %v3402_v53 = vsub.f32 %v6873_v50, %v6905_v23  ;;  %v3074_v35 = vsel %vm3073_vm3, %v6762_v29, %v3072_v2  ;;  %v3875_v57 = vpack.i.bf16 %v6908_v60, %v6191_v10  ;;  %v3877_v51 = vpack.i.bf16 %v6911_v58, %v6201_v47  ;;  %v7327_v60 = vld [vmem:[#allocation16_spill] sm:$0xff]  ;;  %v7328_v58 = vld [vmem:[#allocation17_spill] sm:$0xff] }
 0x226   :  { %3513 = vxpose.xlu0.b32.cont [13/16] (narrow) %v3465_v13, 8  ;;  %v6926_v39 = vsel %vm3075_vm7, %v3076_v1, %v3074_v35  ;;  %v3879_v24 = vpack.i.bf16 %v6914_v49, %v6207_v25  ;;  %vm3578_vm11 = vcmp.gt.f32.partialorder %v6665_v36, %v6663_v32  ;;  %v3362_v10 = vsel %vm3361_vm0, %v6771_v11, %v3360_v4 }
 0x227   :  { %v750_v44 = vpop.f32.mrf.mxu1  ;;  %v3434_v52 = vadd.f32 0.3, %v3402_v53  ;;  %v3849_v48 = vsel %vm3578_vm11, 1.0, %v7321_v59  ;;  %vm3579_vm15 = vcmp.gt.f32.partialorder %v6710_v30, %v6706_v14  ;;  %v6942_v47 = vsel %vm3363_vm4, %v3364_v19, %v3362_v10 }
 0x228   :  { %v3881_v25 = vpack.i.bf16 %v3849_v48, %v6603_v61  ;;  %v3850_v29 = vsel %vm3579_vm15, 1.0, %v7321_v59  ;;  %vm3580_vm1 = vcmp.gt.f32.partialorder %v6739_v22, %v6735_v5  ;;  %v4031_v36 = vpop.eup %4030  ;;  %v3403_v37 = vsub.f32 %v6926_v39, %v6942_v47 }
 0x229   :  { %v752_v32 = vpop.f32.mrf.mxu1  ;;  %v3466_v1 = vmax.f32 %v3434_v52, 0.0  ;;  %v3883_v8 = vpack.i.bf16 %v3850_v29, %v6610_v63  ;;  %v3851_v14 = vsel %vm3580_vm1, 1.0, %v7321_v59  ;;  %v3079_v30 = vmul.f32 %v4031_v36, %v6824_v45 }
 0x22a   :  { %v3885_v11 = vpack.i.bf16 %v3851_v14, %v6619_v28  ;;  %vm3581_vm8 = vcmp.gt.f32.partialorder %v6775_v7, %v6766_v18  ;;  %v3836_v61 = vsel %vm3565_vm9, 1.0, %v7321_v59  ;;  %v3435_v22 = vadd.f32 0.3, %v3403_v37 }
 0x22b   :  { %v4033_v5 = vpop.eup %4032  ;;  %3514 = vxpose.xlu0.b32.cont [14/16] (narrow) %v3466_v1, 8  ;;  %vm3080_vm6 = vcmp.eq.f32.partialorder %v6824_v45, inf  ;;  %v3852_v63 = vsel %vm3581_vm8, 1.0, %v7321_v59  ;;  %vm3582_vm13 = vcmp.gt.f32.partialorder %v6800_v34, %v6796_v20  ;;  %v3083_v21 = vand.u32 2147483648, %v6824_v45 }
 0x22c   :  { %v3081_v28 = vsel %vm3080_vm6, %v6824_v45, %v3079_v30  ;;  %v3367_v19 = vmul.f32 %v4033_v5, %v6826_v16  ;;  %v3887_v7 = vpack.i.bf16 %v3852_v63, %v3836_v61  ;;  %v3467_v18 = vmax.f32 %v3435_v22, 0.0 }
 0x22d   :  { %vm3368_vm9 = vcmp.eq.f32.partialorder %v6826_v16, inf  ;;  %v3371_v0 = vand.u32 2147483648, %v6826_v16  ;;  %vm3082_vm2 = vcmp.eq.f32.partialorder %v6824_v45, 0.0  ;;  %vm3370_vm3 = vcmp.eq.f32.partialorder %v6826_v16, 0.0 }
 0x22e   :  { %v3369_v12 = vsel %vm3368_vm9, %v6826_v16, %v3367_v19  ;;  %vm3583_vm7 = vcmp.gt.f32.partialorder %v6830_v31, %v6818_v40  ;;  %v3084_v13 = vsel %vm3082_vm2, %v3083_v21, %v3081_v28  ;;  %vm3584_vm0 = vcmp.gt.f32.partialorder %v6860_v43, %v6856_v26 }
 0x22f   :  { %3515 = vxpose.xlu0.b32.cont [15/16] (narrow) %v3467_v18, 8  ;;  %v3372_v56 = vsel %vm3370_vm3, %v3371_v0, %v3369_v12  ;;  %vm3585_vm4 = vcmp.gt.f32.partialorder %v6905_v23, %v6873_v50  ;;  %vm3586_vm14 = vcmp.gt.f32.partialorder %v6942_v47, %v6926_v39  ;;  %vm3566_vm12 = vcmp.gt.f32.partialorder %v6280_v62, %v6276_v3  ;;  %v7329_v50 = vld [vmem:[#allocation18_spill] sm:$0xff]  ;;  %v7330_v23 = vld [vmem:[#allocation19_spill] sm:$0xff] }
 0x230   :  { %v3404_v2 = vsub.f32 %v3084_v13, %v3372_v56  ;;  %vm3587_vm5 = vcmp.gt.f32.partialorder %v3372_v56, %v3084_v13  ;;  %v3853_v17 = vsel %vm3582_vm13, 1.0, %v7321_v59  ;;  %v3837_v41 = vsel %vm3566_vm12, 1.0, %v7321_v59  ;;  %v7331_v39 = vld [vmem:[#allocation10_spill] sm:$0xff] }
 0x231   :  { %v3889_v16 = vpack.i.bf16 %v3853_v17, %v3837_v41  ;;  %vm3567_vm10 = vcmp.gt.f32.partialorder %v7322_v15, %v6308_v33  ;;  %v3854_v54 = vsel %vm3583_vm7, 1.0, %v7321_v59  ;;  %v3855_v20 = vsel %vm3584_vm0, 1.0, %v7321_v59 }
 0x232   :  { %v3436_v55 = vadd.f32 0.3, %v3404_v2  ;;  %v3838_v3 = vsel %vm3567_vm10, 1.0, %v7321_v59  ;;  %v3856_v31 = vsel %vm3585_vm4, 1.0, %v7321_v59  ;;  %vm3570_vm1 = vcmp.gt.f32.partialorder %v7328_v58, %v7327_v60 }
 0x233   :  { %v3891_v62 = vpack.i.bf16 %v3854_v54, %v3838_v3  ;;  %v3857_v26 = vsel %vm3586_vm14, 1.0, %v7321_v59  ;;  %v4102_v43 = vmov 1966171168   ;;  %v3841_v6 = vsel %vm3570_vm1, 1.0, %v7321_v59 }
 0x234   :  { %v3468_v45 = vmax.f32 %v3436_v55, 0.0  ;;  %v3537_v49 = vunpack.c.l.s4 %v4102_v43  ;;  %v3897_v53 = vpack.i.bf16 %v3857_v26, %v3841_v6  ;;  %vm3571_vm8 = vcmp.gt.f32.partialorder %v7330_v23, %v7329_v50 }
 0x235   :  { %v3858_v35 = vsel %vm3587_vm5, 1.0, %v7321_v59  ;;  %v7332_v47 = vlaneseq }
 0x236   :  { %3516 = vxpose.xlu0.b32.end [16/16] (narrow) %v3468_v45, 8  ;;  %v3538_v4 = vunpack.c.0.s8 %v3537_v49 }
 0x237   :  { %vm7031_vm6 = vcmp.lt.s32.totalorder %v7332_v47, 256 }
 0x238   :  { %v3541_v44 = vsub.s32 %v3538_v4, %v7331_v39 }
 0x23a   :  { %3870 = vxpose.xlu0.b32.start [1/16] (narrow) %v3869_v42, 8  ;;  %v7323_v42 = vld [vmem:[#allocation12_spill] sm:$0xff] }
 0x23b   :  { %vm3568_vm11 = vcmp.gt.f32.partialorder %v7324_v9, %v7323_v42 }
 0x23c   :  { %v3839_v33 = vsel %vm3568_vm11, 1.0, %v7321_v59 }
 0x23d   :  { %v3893_v34 = vpack.i.bf16 %v3855_v20, %v3839_v33 }
 0x23e   :  { %3872 = vxpose.xlu0.b32.cont [2/16] (narrow) %v3871_v38, 8  ;;  %v7325_v38 = vld [vmem:[#allocation14_spill] sm:$0xff] }
 0x23f   :  { %vm3569_vm15 = vcmp.gt.f32.partialorder %v7326_v27, %v7325_v38 }
 0x240   :  { %v3840_v40 = vsel %vm3569_vm15, 1.0, %v7321_v59 }
 0x242   :  { %3874 = vxpose.xlu0.b32.cont [3/16] (narrow) %v3873_v46, 8  ;;  %v3895_v46 = vpack.i.bf16 %v3856_v31, %v3840_v40 }
 0x246   :  { %3876 = vxpose.xlu0.b32.cont [4/16] (narrow) %v3875_v57, 8  ;;  %v3842_v57 = vsel %vm3571_vm8, 1.0, %v7321_v59 }
 0x24a   :  { %3878 = vxpose.xlu0.b32.cont [5/16] (narrow) %v3877_v51, 8  ;;  %v3899_v51 = vpack.i.bf16 %v3858_v35, %v3842_v57 }
 0x24e   :  { %3880 = vxpose.xlu0.b32.cont [6/16] (narrow) %v3879_v24, 8  ;;  %v3485_v24 = vpop.trf.xlu1 }
 0x252   :  { %3882 = vxpose.xlu0.b32.cont [7/16] (narrow) %v3881_v25, 8 }
 0x256   :  { %3884 = vxpose.xlu0.b32.cont [8/16] (narrow) %v3883_v8, 8 }
 0x25a   :  { %3886 = vxpose.xlu0.b32.cont [9/16] (narrow) %v3885_v11, 8 }
 0x25e   :  { %3888 = vxpose.xlu0.b32.cont [10/16] (narrow) %v3887_v7, 8 }
 0x262   :  { %3890 = vxpose.xlu0.b32.cont [11/16] (narrow) %v3889_v16, 8 }
 0x266   :  { %3892 = vxpose.xlu0.b32.cont [12/16] (narrow) %v3891_v62, 8 }
 0x26a   :  { %3894 = vxpose.xlu0.b32.cont [13/16] (narrow) %v3893_v34, 8 }
 0x26e   :  { %3896 = vxpose.xlu0.b32.cont [14/16] (narrow) %v3895_v46, 8 }
 0x272   :  { %3898 = vxpose.xlu0.b32.cont [15/16] (narrow) %v3897_v53, 8 }
 0x276   :  { %3900 = vxpose.xlu0.b32.end [16/16] (narrow) %v3899_v51, 8  ;;  %v3517_v52 = vpop.trf.xlu0 }
 0x277   :  { %v3535_v10 = vcombine.low %v3485_v24, %v3517_v52 }
 0x279   :  { %v3542_v48 = vrot.slane %v3535_v10, %v3541_v44 }
 0x27b   :  { %v3549_v29 = vrot.slane %v3542_v48, %v3541_v44 }
 0x27d   :  { %3555 = vst.msk [vmem:[#allocation4] sm:$0x3] %vm7031_vm6, %v3549_v29 }
 0x27e   :  { %4064 = shalt.err (!%p4061_p4)
}
 0x27f   :  { %3744 = dma.vmem_to_hbm [thread:$0]  %s3742_s22, 32, %s7051_s6, [#allocation5]  }
 0x280   :  { %s4104_s23 = smov [#allocation6]  }
 0x281   :  { %s3751_s24 = sshll.u32 %s4104_s23, 4  ;;  %s3752_s24 = int_to_ptr.vmem [resolvable:$true] %s3751_s24 }
 0x282   :  { %s4073_s25 = scalar_lea.vmem %s3752_s24, 32  ;;  %p4078_p6 = scmp.lt.s32.totalorder %s3752_s24, %s3752_s24 }
 0x283   :  { %p4074_p5 = scmp.ne.s32.totalorder %s3752_s24, %s4073_s25  ;;  %p4079_p7 = scmp.lt.s32.totalorder %s4073_s25, %s4073_s25 }
 0x285   :  { %p4080_p8 = por %p4079_p7, %p4078_p6 }
 0x287   :  { %p4081_p9 = pnand %p4080_p8, %p4074_p5 }
 0x2b6   :  { %v3901_v59 = vpop.trf.xlu0 }
 0x2b7   :  { %v3905_v32 = vunpack.i.h.bf16 %v3901_v59  ;;  %v3902_v36 = vunpack.i.l.bf16 %v3901_v59 }
 0x2b9   :  { %v3718_v1 = vcombine.low %v3902_v36, %v3905_v32 }
 0x2bb   :  { %v3725_v37 = vrot.slane %v3718_v1, %v3541_v44 }
 0x2bd   :  { %v3732_v8 = vrot.slane %v3725_v37, %v3541_v44 }
 0x2bf   :  { %3734 = vst.msk [vmem:[#allocation6] sm:$0x3] %vm7031_vm6, %v3732_v8 }
 0x2c0   :  { %4084 = shalt.err (!%p4081_p9)
}
 0x2c1   :  { %3754 = dma.vmem_to_hbm [thread:$0]  %s3752_s24, 32, %s7052_s7, [#allocation7]  }
 0x2c2   :  { %4093 = dma.done.wait [#allocation5], 32  }
 0x2c3   :  { %4094 = vsyncadd [#allocation5], 4294967264 }
 0x2c4   :  { %4095 = dma.done.wait [#allocation7], 32  }
 0x2c5   :  { %4096 = vsyncadd [#allocation7], 4294967264 }
 0x2c6   :  { %3761 = vsyncpa [#allocation5], 1 }
 0x2c7   :  { %3762 = vsyncpa [#allocation7], 1 }

</bundles_post_ra>
